<compile_context>
chip_gen: v7x
topology: tpu7x:2x2x1
jax: 0.10.0
libtpu: 0.0.40
codegen_flags: <defaults>
</compile_context>

<pallas_src>
import functools

import jax
import jax.numpy as jnp
from jax.experimental import pallas as pl
from jax.experimental.pallas import tpu as pltpu


# ----------------------------------------------------------------------------
# The single fused kernel.
#
# Ref order (inputs):
#   x            (Tw*B, 4096) f32    time-major flattened input window
#   feat_w       (4096, 128)  bf16
#   feat_b       (1, 128)     f32
#   per layer l: w_ih (Din_l, 8H) bf16, w_hh (H, 8H) bf16, b (1, 8H) f32
#                (gate cols: [fwd i,f,g,o | bwd i,f,g,o], PyTorch gate order)
#   h0, c0       (nlayers*2, B, H) f32    (dir 0 = fwd, dir 1 = bwd per layer)
#   rf_w (2H, 128), rf_b (1, 128), cls_w (128, E), cls_b (1, E)   f32
# Output:
#   o            (B, E) f32
# Scratch:
#   xp_ref       (Tw*B, 8H) f32    current layer's input projection (both dirs)
#   act_ref      (2, Tw*B, H) f32  inter-layer activations, per-direction slabs
# ----------------------------------------------------------------------------
def _fused_kernel(*refs, Tw, B, H, nlayers):
    x_ref, feat_w_ref, feat_b_ref = refs[0:3]
    lstm_refs = refs[3:3 + 3 * nlayers]
    base = 3 + 3 * nlayers
    (h0_ref, c0_ref, rf_w_ref, rf_b_ref,
     cls_w_ref, cls_b_ref, o_ref, xp_ref, act_ref) = refs[base:base + 9]

    f32, bf16 = jnp.float32, jnp.bfloat16

    # ---- feat_extract: Linear(4096 -> 128) + ReLU (+ Dropout(0.5) -> identity)
    feats = jnp.dot(x_ref[...].astype(bf16), feat_w_ref[...],
                    preferred_element_type=f32) + feat_b_ref[...]
    feats = jnp.maximum(feats, 0.0)                                # (Tw*B, 128)

    def cell(h, c, x_gates, w_hh_dir):
        # One LSTM cell update.  MXU operands bf16, accumulation + gates f32.
        g = x_gates + jnp.dot(h.astype(bf16), w_hh_dir,
                              preferred_element_type=f32)          # (B, 4H)
        i_g = jax.nn.sigmoid(g[:, 0 * H:1 * H])
        f_g = jax.nn.sigmoid(g[:, 1 * H:2 * H])
        g_g = jnp.tanh(g[:, 2 * H:3 * H])
        o_g = jax.nn.sigmoid(g[:, 3 * H:4 * H])
        c_new = f_g * c + i_g * g_g
        h_new = o_g * jnp.tanh(c_new)
        return h_new, c_new

    sum_f = jnp.zeros((B, H), f32)
    sum_b = jnp.zeros((B, H), f32)

    for layer in range(nlayers):
        w_ih_ref, w_hh_ref, b_ref = lstm_refs[3 * layer:3 * layer + 3]
        last = layer == nlayers - 1

        # -- fused fwd+bwd input projection, one matmul over ALL timesteps -----
        if layer == 0:
            xp = jnp.dot(feats.astype(bf16), w_ih_ref[...],
                         preferred_element_type=f32)               # (Tw*B, 8H)
        else:
            # Previous layer's output lives as per-direction slabs; split the
            # contraction over the two H-wide halves (no re-interleave/concat).
            xp = (jnp.dot(act_ref[0].astype(bf16), w_ih_ref[0:H, :],
                          preferred_element_type=f32)
                  + jnp.dot(act_ref[1].astype(bf16), w_ih_ref[H:2 * H, :],
                            preferred_element_type=f32))           # (Tw*B, 8H)
        xp_ref[...] = xp + b_ref[...]

        # Per-direction recurrent weights (loaded once per layer; at H=32 this
        # is a handful of vregs).  Fwd gates in cols [0:4H], bwd in [4H:8H].
        w_hh_f = w_hh_ref[:, 0:4 * H]
        w_hh_b = w_hh_ref[:, 4 * H:8 * H]

        h_f = h0_ref[2 * layer]
        c_f = c0_ref[2 * layer]
        h_b = h0_ref[2 * layer + 1]
        c_b = c0_ref[2 * layer + 1]

        for t in range(Tw):                        # static unroll, Tw <= 30
            tb = Tw - 1 - t
            h_f, c_f = cell(h_f, c_f,
                            xp_ref[t * B:(t + 1) * B, 0:4 * H], w_hh_f)
            h_b, c_b = cell(h_b, c_b,
                            xp_ref[tb * B:(tb + 1) * B, 4 * H:8 * H], w_hh_b)
            if last:
                # mean over time commutes with the purely linear rnn_features
                # layer -> just accumulate per-direction sums.
                sum_f = sum_f + h_f
                sum_b = sum_b + h_b
            else:
                act_ref[0, t * B:(t + 1) * B, :] = h_f       # fwd slab, time t
                act_ref[1, tb * B:(tb + 1) * B, :] = h_b     # bwd slab, time tb
        # inter-layer dropout(0.2) -> identity (eval semantics)

    # ---- fused head: mean_t -> rnn_features -> classifier (split contractions)
    inv_t = 1.0 / float(Tw)
    mean_f = sum_f * inv_t
    mean_b = sum_b * inv_t
    feat = (jnp.dot(mean_f, rf_w_ref[0:H, :], preferred_element_type=f32)
            + jnp.dot(mean_b, rf_w_ref[H:2 * H, :], preferred_element_type=f32)
            + rf_b_ref[...])                                       # (B, 128)
    out = (jnp.dot(feat, cls_w_ref[...], preferred_element_type=f32)
           + cls_b_ref[...])                                       # (B, E)
    o_ref[...] = out.astype(o_ref.dtype)


def _full_block_spec(shape):
    r = len(shape)
    return pl.BlockSpec(shape, lambda i, _r=r: (0,) * _r)


# ----------------------------------------------------------------------------
# Full forward pass (mirrors Vgg_face_sequence_model.forward, eval semantics).
# ----------------------------------------------------------------------------
def vgg_face_sequence_forward(params, inputs, hidden, *, nhid, nlayers):
    B, T, D = inputs.shape
    assert D == 4096
    Tw = min(30, T)                    # seq_window, rand_start == 0 in reference
    H = nhid
    FF = params["rf_w"].shape[1]
    E = params["cls_w"].shape[1]

    # Single up-front transpose to time-major; everything downstream is
    # row-slicing only (no further relayouts at the XLA level).
    x = jnp.transpose(inputs[:, :Tw, :], (1, 0, 2)).reshape(Tw * B, D)

    h0_all, c0_all = hidden                          # (nlayers*2, B, H) each

    args = [x, params["feat_w"], params["feat_b"].reshape(1, -1)]
    for layer in range(nlayers):
        w_ih, w_hh, bias = params["lstm"][layer]
        args += [w_ih, w_hh, bias.reshape(1, -1)]
    args += [h0_all, c0_all,
             params["rf_w"], params["rf_b"].reshape(1, -1),
             params["cls_w"], params["cls_b"].reshape(1, -1)]

    kernel = functools.partial(_fused_kernel, Tw=Tw, B=B, H=H, nlayers=nlayers)
    return pl.pallas_call(
        kernel,
        out_shape=jax.ShapeDtypeStruct((B, E), jnp.float32),
        grid_spec=pltpu.PrefetchScalarGridSpec(
            num_scalar_prefetch=0,
            grid=(1,),
            in_specs=[_full_block_spec(a.shape) for a in args],
            out_specs=_full_block_spec((B, E)),
            scratch_shapes=[
                pltpu.VMEM((Tw * B, 8 * H), jnp.float32),   # xp (both dirs)
                pltpu.VMEM((2, Tw * B, H), jnp.float32),    # inter-layer slabs
            ]),
        compiler_params=pltpu.CompilerParams(
            dimension_semantics=("arbitrary",)),
    )(*args)


# ----------------------------------------------------------------------------
# Parameter construction (deterministic, synthetic).  Per layer the two
# directions' weights are fused along the gate axis:
#   w_ih_cat : (Din, 8H) bf16   [fwd i,f,g,o | bwd i,f,g,o]
#   w_hh_cat : (H,   8H) bf16
#   b_cat    : (8H,)     f32    (b_ih + b_hh folded per direction)
# (A real PyTorch checkpoint would supply (4H, Din) weights; transpose + concat
#  when packing.  bf16 weight storage trades a little drift for MXU speed.)
# ----------------------------------------------------------------------------
def make_params(key, *, nhid, nlayers, face_embedding_size=16,
                feature_size=128, final_feature_size=128):
    keys = jax.random.split(key, 6 + 6 * nlayers)
    ki = iter(keys)

    def init(k, shape, scale=0.02):
        return (scale * jax.random.normal(k, shape)).astype(jnp.float32)

    params = {
        "feat_w": init(next(ki), (4096, feature_size)).astype(jnp.bfloat16),
        "feat_b": init(next(ki), (feature_size,)),
        "rf_w": init(next(ki), (nhid * 2, final_feature_size)),
        "rf_b": init(next(ki), (final_feature_size,)),
        "cls_w": init(next(ki), (final_feature_size, face_embedding_size)),
        "cls_b": init(next(ki), (face_embedding_size,)),
        "lstm": [],
    }
    H = nhid
    for layer in range(nlayers):
        in_size = feature_size if layer == 0 else 2 * H
        w_ih_f = init(next(ki), (in_size, 4 * H))
        w_ih_b = init(next(ki), (in_size, 4 * H))
        w_hh_f = init(next(ki), (H, 4 * H))
        w_hh_b = init(next(ki), (H, 4 * H))
        b_f = init(next(ki), (4 * H,))
        b_b = init(next(ki), (4 * H,))
        w_ih_cat = jnp.concatenate([w_ih_f, w_ih_b], axis=1).astype(jnp.bfloat16)
        w_hh_cat = jnp.concatenate([w_hh_f, w_hh_b], axis=1).astype(jnp.bfloat16)
        b_cat = jnp.concatenate([b_f, b_b], axis=0)
        params["lstm"].append((w_ih_cat, w_hh_cat, b_cat))
    return params


def init_hidden(bsz, *, nhid, nlayers, num_directions=2):
    shape = (nlayers * num_directions, bsz, nhid)
    return (jnp.zeros(shape, jnp.float32), jnp.zeros(shape, jnp.float32))


if __name__ == "__main__":
    B, T, D = 2, 8, 4096
    NHID, NLAYERS = 32, 2

    key = jax.random.PRNGKey(0)
    k_params, k_in = jax.random.split(key)

    params = make_params(k_params, nhid=NHID, nlayers=NLAYERS)
    inputs = jax.random.normal(k_in, (B, T, D), dtype=jnp.float32)
    hidden = init_hidden(B, nhid=NHID, nlayers=NLAYERS)

    fwd = jax.jit(functools.partial(vgg_face_sequence_forward,
                                    nhid=NHID, nlayers=NLAYERS))
    out = jax.block_until_ready(fwd(params, inputs, hidden))
    assert out.shape == (B, 16), out.shape
    print("KERNEL_OK")
</pallas_src>

<mosaic_0001>
module attributes {stable_mosaic.version = 11 : i64} {
  func.func @_fused_kernel(%arg0: i32, %arg1: memref<16x4096xf32, #tpu.memory_space<vmem>>, %arg2: memref<4096x128xbf16, #tpu.memory_space<vmem>>, %arg3: memref<1x128xf32, #tpu.memory_space<vmem>>, %arg4: memref<128x256xbf16, #tpu.memory_space<vmem>>, %arg5: memref<32x256xbf16, #tpu.memory_space<vmem>>, %arg6: memref<1x256xf32, #tpu.memory_space<vmem>>, %arg7: memref<64x256xbf16, #tpu.memory_space<vmem>>, %arg8: memref<32x256xbf16, #tpu.memory_space<vmem>>, %arg9: memref<1x256xf32, #tpu.memory_space<vmem>>, %arg10: memref<4x2x32xf32, #tpu.memory_space<vmem>>, %arg11: memref<4x2x32xf32, #tpu.memory_space<vmem>>, %arg12: memref<64x128xf32, #tpu.memory_space<vmem>>, %arg13: memref<1x128xf32, #tpu.memory_space<vmem>>, %arg14: memref<128x16xf32, #tpu.memory_space<vmem>>, %arg15: memref<1x16xf32, #tpu.memory_space<vmem>>, %arg16: memref<2x16xf32, #tpu.memory_space<vmem>>, %arg17: memref<16x256xf32, #tpu.memory_space<vmem>>, %arg18: memref<2x16x32xf32, #tpu.memory_space<vmem>>) attributes {dimension_semantics = [#tpu.dimension_semantics<arbitrary>], iteration_bounds = array<i64: 1>, scalar_prefetch = 0 : i64, scratch_operands = 2 : i64, tpu.core_type = #tpu.core_type<tc>, window_params = [{pipeline_mode = #tpu.pipeline_mode<synchronous>, transform_indices = @transform_0, window_bounds = array<i64: 16, 4096>}, {pipeline_mode = #tpu.pipeline_mode<synchronous>, transform_indices = @transform_1, window_bounds = array<i64: 4096, 128>}, {pipeline_mode = #tpu.pipeline_mode<synchronous>, transform_indices = @transform_2, window_bounds = array<i64: 1, 128>}, {pipeline_mode = #tpu.pipeline_mode<synchronous>, transform_indices = @transform_3, window_bounds = array<i64: 128, 256>}, {pipeline_mode = #tpu.pipeline_mode<synchronous>, transform_indices = @transform_4, window_bounds = array<i64: 32, 256>}, {pipeline_mode = #tpu.pipeline_mode<synchronous>, transform_indices = @transform_5, window_bounds = array<i64: 1, 256>}, {pipeline_mode = #tpu.pipeline_mode<synchronous>, transform_indices = @transform_6, window_bounds = array<i64: 64, 256>}, {pipeline_mode = #tpu.pipeline_mode<synchronous>, transform_indices = @transform_7, window_bounds = array<i64: 32, 256>}, {pipeline_mode = #tpu.pipeline_mode<synchronous>, transform_indices = @transform_8, window_bounds = array<i64: 1, 256>}, {pipeline_mode = #tpu.pipeline_mode<synchronous>, transform_indices = @transform_9, window_bounds = array<i64: 4, 2, 32>}, {pipeline_mode = #tpu.pipeline_mode<synchronous>, transform_indices = @transform_10, window_bounds = array<i64: 4, 2, 32>}, {pipeline_mode = #tpu.pipeline_mode<synchronous>, transform_indices = @transform_11, window_bounds = array<i64: 64, 128>}, {pipeline_mode = #tpu.pipeline_mode<synchronous>, transform_indices = @transform_12, window_bounds = array<i64: 1, 128>}, {pipeline_mode = #tpu.pipeline_mode<synchronous>, transform_indices = @transform_13, window_bounds = array<i64: 128, 16>}, {pipeline_mode = #tpu.pipeline_mode<synchronous>, transform_indices = @transform_14, window_bounds = array<i64: 1, 16>}, {pipeline_mode = #tpu.pipeline_mode<synchronous>, transform_indices = @transform_15, window_bounds = array<i64: 2, 16>}]} {
    %c0 = arith.constant 0 : index
    %c0_0 = arith.constant 0 : index
    %0 = vector.load %arg1[%c0, %c0_0] : memref<16x4096xf32, #tpu.memory_space<vmem>>, vector<16x4096xf32>
    %1 = arith.truncf %0 : vector<16x4096xf32> to vector<16x4096xbf16>
    %c0_1 = arith.constant 0 : index
    %c0_2 = arith.constant 0 : index
    %2 = vector.load %arg2[%c0_1, %c0_2] : memref<4096x128xbf16, #tpu.memory_space<vmem>>, vector<4096x128xbf16>
    %cst = arith.constant dense<0.000000e+00> : vector<16x128xf32>
    %3 = tpu.matmul %1, %2, %cst {dimension_numbers = #tpu.dot_dimension_numbers<[1], [0], [0], [1], [0, 0, 1, 1], [], []>} : vector<16x4096xbf16>, vector<4096x128xbf16>, vector<16x128xf32> -> vector<16x128xf32>
    %c0_3 = arith.constant 0 : index
    %c0_4 = arith.constant 0 : index
    %4 = vector.load %arg3[%c0_3, %c0_4] : memref<1x128xf32, #tpu.memory_space<vmem>>, vector<1x128xf32>
    %5 = vector.broadcast %4 : vector<1x128xf32> to vector<16x128xf32>
    %6 = arith.addf %3, %5 : vector<16x128xf32>
    %cst_5 = arith.constant 0.000000e+00 : f32
    %7 = vector.broadcast %cst_5 : f32 to vector<16x128xf32>
    %8 = arith.maximumf %6, %7 : vector<16x128xf32>
    %cst_6 = arith.constant 0.000000e+00 : f32
    %9 = vector.broadcast %cst_6 : f32 to vector<2x32xf32>
    %cst_7 = arith.constant 0.000000e+00 : f32
    %10 = vector.broadcast %cst_7 : f32 to vector<2x32xf32>
    %11 = arith.truncf %8 : vector<16x128xf32> to vector<16x128xbf16>
    %c0_8 = arith.constant 0 : index
    %c0_9 = arith.constant 0 : index
    %12 = vector.load %arg4[%c0_8, %c0_9] : memref<128x256xbf16, #tpu.memory_space<vmem>>, vector<128x256xbf16>
    %cst_10 = arith.constant dense<0.000000e+00> : vector<16x256xf32>
    %13 = tpu.matmul %11, %12, %cst_10 {dimension_numbers = #tpu.dot_dimension_numbers<[1], [0], [0], [1], [0, 0, 1, 1], [], []>} : vector<16x128xbf16>, vector<128x256xbf16>, vector<16x256xf32> -> vector<16x256xf32>
    %c0_11 = arith.constant 0 : index
    %c0_12 = arith.constant 0 : index
    %14 = vector.load %arg6[%c0_11, %c0_12] : memref<1x256xf32, #tpu.memory_space<vmem>>, vector<1x256xf32>
    %15 = vector.broadcast %14 : vector<1x256xf32> to vector<16x256xf32>
    %16 = arith.addf %13, %15 : vector<16x256xf32>
    %c0_13 = arith.constant 0 : index
    %c0_14 = arith.constant 0 : index
    %17 = vector.load %arg17[%c0_13, %c0_14] : memref<16x256xf32, #tpu.memory_space<vmem>>, vector<16x256xf32>
    tpu.vector_store %arg17[%c0_13, %c0_14], %16 {strides = array<i32>} : memref<16x256xf32, #tpu.memory_space<vmem>>, vector<16x256xf32>,
    %c0_15 = arith.constant 0 : index
    %c0_16 = arith.constant 0 : index
    %18 = vector.load %arg5[%c0_15, %c0_16] : memref<32x256xbf16, #tpu.memory_space<vmem>>, vector<32x128xbf16>
    %c0_17 = arith.constant 0 : index
    %c128 = arith.constant 128 : index
    %19 = vector.load %arg5[%c0_17, %c128] : memref<32x256xbf16, #tpu.memory_space<vmem>>, vector<32x128xbf16>
    %c0_18 = arith.constant 0 : index
    %c0_19 = arith.constant 0 : index
    %c0_20 = arith.constant 0 : index
    %20 = vector.load %arg10[%c0_18, %c0_19, %c0_20] : memref<4x2x32xf32, #tpu.memory_space<vmem>>, vector<1x2x32xf32>
    %21 = vector.shape_cast %20 : vector<1x2x32xf32> to vector<2x32xf32>
    %c0_21 = arith.constant 0 : index
    %c0_22 = arith.constant 0 : index
    %c0_23 = arith.constant 0 : index
    %22 = vector.load %arg11[%c0_21, %c0_22, %c0_23] : memref<4x2x32xf32, #tpu.memory_space<vmem>>, vector<1x2x32xf32>
    %23 = vector.shape_cast %22 : vector<1x2x32xf32> to vector<2x32xf32>
    %c1 = arith.constant 1 : index
    %c0_24 = arith.constant 0 : index
    %c0_25 = arith.constant 0 : index
    %24 = vector.load %arg10[%c1, %c0_24, %c0_25] : memref<4x2x32xf32, #tpu.memory_space<vmem>>, vector<1x2x32xf32>
    %25 = vector.shape_cast %24 : vector<1x2x32xf32> to vector<2x32xf32>
    %c1_26 = arith.constant 1 : index
    %c0_27 = arith.constant 0 : index
    %c0_28 = arith.constant 0 : index
    %26 = vector.load %arg11[%c1_26, %c0_27, %c0_28] : memref<4x2x32xf32, #tpu.memory_space<vmem>>, vector<1x2x32xf32>
    %27 = vector.shape_cast %26 : vector<1x2x32xf32> to vector<2x32xf32>
    %c0_29 = arith.constant 0 : index
    %c0_30 = arith.constant 0 : index
    %28 = vector.load %arg17[%c0_29, %c0_30] : memref<16x256xf32, #tpu.memory_space<vmem>>, vector<2x128xf32>
    %29 = arith.truncf %21 : vector<2x32xf32> to vector<2x32xbf16>
    %cst_31 = arith.constant dense<0.000000e+00> : vector<2x128xf32>
    %30 = tpu.matmul %29, %18, %cst_31 {dimension_numbers = #tpu.dot_dimension_numbers<[1], [0], [0], [1], [0, 0, 1, 1], [], []>} : vector<2x32xbf16>, vector<32x128xbf16>, vector<2x128xf32> -> vector<2x128xf32>
    %31 = arith.addf %28, %30 : vector<2x128xf32>
    %32 = vector.extract_strided_slice %31 {offsets = [0, 0], sizes = [2, 32], strides = [1, 1]} : vector<2x128xf32> to vector<2x32xf32>
    %33 = arith.negf %32 : vector<2x32xf32>
    %34 = math.exp %33 : vector<2x32xf32>
    %cst_32 = arith.constant 1.000000e+00 : f32
    %35 = vector.broadcast %cst_32 : f32 to vector<2x32xf32>
    %36 = arith.addf %35, %34 : vector<2x32xf32>
    %37 = arith.divf %35, %36 : vector<2x32xf32>
    %38 = vector.extract_strided_slice %31 {offsets = [0, 32], sizes = [2, 32], strides = [1, 1]} : vector<2x128xf32> to vector<2x32xf32>
    %39 = arith.negf %38 : vector<2x32xf32>
    %40 = math.exp %39 : vector<2x32xf32>
    %cst_33 = arith.constant 1.000000e+00 : f32
    %41 = vector.broadcast %cst_33 : f32 to vector<2x32xf32>
    %42 = arith.addf %41, %40 : vector<2x32xf32>
    %43 = arith.divf %41, %42 : vector<2x32xf32>
    %44 = vector.extract_strided_slice %31 {offsets = [0, 64], sizes = [2, 32], strides = [1, 1]} : vector<2x128xf32> to vector<2x32xf32>
    %45 = math.tanh %44 : vector<2x32xf32>
    %46 = vector.extract_strided_slice %31 {offsets = [0, 96], sizes = [2, 32], strides = [1, 1]} : vector<2x128xf32> to vector<2x32xf32>
    %47 = arith.negf %46 : vector<2x32xf32>
    %48 = math.exp %47 : vector<2x32xf32>
    %cst_34 = arith.constant 1.000000e+00 : f32
    %49 = vector.broadcast %cst_34 : f32 to vector<2x32xf32>
    %50 = arith.addf %49, %48 : vector<2x32xf32>
    %51 = arith.divf %49, %50 : vector<2x32xf32>
    %52 = arith.mulf %43, %23 : vector<2x32xf32>
    %53 = arith.mulf %37, %45 : vector<2x32xf32>
    %54 = arith.addf %52, %53 : vector<2x32xf32>
    %55 = math.tanh %54 : vector<2x32xf32>
    %56 = arith.mulf %51, %55 : vector<2x32xf32>
    %c14 = arith.constant 14 : index
    %c128_35 = arith.constant 128 : index
    %57 = vector.load %arg17[%c14, %c128_35] : memref<16x256xf32, #tpu.memory_space<vmem>>, vector<2x128xf32>
    %58 = arith.truncf %25 : vector<2x32xf32> to vector<2x32xbf16>
    %cst_36 = arith.constant dense<0.000000e+00> : vector<2x128xf32>
    %59 = tpu.matmul %58, %19, %cst_36 {dimension_numbers = #tpu.dot_dimension_numbers<[1], [0], [0], [1], [0, 0, 1, 1], [], []>} : vector<2x32xbf16>, vector<32x128xbf16>, vector<2x128xf32> -> vector<2x128xf32>
    %60 = arith.addf %57, %59 : vector<2x128xf32>
    %61 = vector.extract_strided_slice %60 {offsets = [0, 0], sizes = [2, 32], strides = [1, 1]} : vector<2x128xf32> to vector<2x32xf32>
    %62 = arith.negf %61 : vector<2x32xf32>
    %63 = math.exp %62 : vector<2x32xf32>
    %cst_37 = arith.constant 1.000000e+00 : f32
    %64 = vector.broadcast %cst_37 : f32 to vector<2x32xf32>
    %65 = arith.addf %64, %63 : vector<2x32xf32>
    %66 = arith.divf %64, %65 : vector<2x32xf32>
    %67 = vector.extract_strided_slice %60 {offsets = [0, 32], sizes = [2, 32], strides = [1, 1]} : vector<2x128xf32> to vector<2x32xf32>
    %68 = arith.negf %67 : vector<2x32xf32>
    %69 = math.exp %68 : vector<2x32xf32>
    %cst_38 = arith.constant 1.000000e+00 : f32
    %70 = vector.broadcast %cst_38 : f32 to vector<2x32xf32>
    %71 = arith.addf %70, %69 : vector<2x32xf32>
    %72 = arith.divf %70, %71 : vector<2x32xf32>
    %73 = vector.extract_strided_slice %60 {offsets = [0, 64], sizes = [2, 32], strides = [1, 1]} : vector<2x128xf32> to vector<2x32xf32>
    %74 = math.tanh %73 : vector<2x32xf32>
    %75 = vector.extract_strided_slice %60 {offsets = [0, 96], sizes = [2, 32], strides = [1, 1]} : vector<2x128xf32> to vector<2x32xf32>
    %76 = arith.negf %75 : vector<2x32xf32>
    %77 = math.exp %76 : vector<2x32xf32>
    %cst_39 = arith.constant 1.000000e+00 : f32
    %78 = vector.broadcast %cst_39 : f32 to vector<2x32xf32>
    %79 = arith.addf %78, %77 : vector<2x32xf32>
    %80 = arith.divf %78, %79 : vector<2x32xf32>
    %81 = arith.mulf %72, %27 : vector<2x32xf32>
    %82 = arith.mulf %66, %74 : vector<2x32xf32>
    %83 = arith.addf %81, %82 : vector<2x32xf32>
    %84 = math.tanh %83 : vector<2x32xf32>
    %85 = arith.mulf %80, %84 : vector<2x32xf32>
    %c0_40 = arith.constant 0 : index
    %c0_41 = arith.constant 0 : index
    %c0_42 = arith.constant 0 : index
    %86 = vector.load %arg18[%c0_40, %c0_41, %c0_42] : memref<2x16x32xf32, #tpu.memory_space<vmem>>, vector<1x2x32xf32>
    %87 = vector.shape_cast %86 : vector<1x2x32xf32> to vector<2x32xf32>
    %88 = vector.shape_cast %56 : vector<2x32xf32> to vector<1x2x32xf32>
    tpu.vector_store %arg18[%c0_40, %c0_41, %c0_42], %88 {strides = array<i32>} : memref<2x16x32xf32, #tpu.memory_space<vmem>>, vector<1x2x32xf32>,
    %c1_43 = arith.constant 1 : index
    %c14_44 = arith.constant 14 : index
    %c0_45 = arith.constant 0 : index
    %89 = vector.load %arg18[%c1_43, %c14_44, %c0_45] : memref<2x16x32xf32, #tpu.memory_space<vmem>>, vector<1x2x32xf32>
    %90 = vector.shape_cast %89 : vector<1x2x32xf32> to vector<2x32xf32>
    %91 = vector.shape_cast %85 : vector<2x32xf32> to vector<1x2x32xf32>
    tpu.vector_store %arg18[%c1_43, %c14_44, %c0_45], %91 {strides = array<i32>} : memref<2x16x32xf32, #tpu.memory_space<vmem>>, vector<1x2x32xf32>,
    %c2 = arith.constant 2 : index
    %c0_46 = arith.constant 0 : index
    %92 = vector.load %arg17[%c2, %c0_46] : memref<16x256xf32, #tpu.memory_space<vmem>>, vector<2x128xf32>
    %93 = arith.truncf %56 : vector<2x32xf32> to vector<2x32xbf16>
    %cst_47 = arith.constant dense<0.000000e+00> : vector<2x128xf32>
    %94 = tpu.matmul %93, %18, %cst_47 {dimension_numbers = #tpu.dot_dimension_numbers<[1], [0], [0], [1], [0, 0, 1, 1], [], []>} : vector<2x32xbf16>, vector<32x128xbf16>, vector<2x128xf32> -> vector<2x128xf32>
    %95 = arith.addf %92, %94 : vector<2x128xf32>
    %96 = vector.extract_strided_slice %95 {offsets = [0, 0], sizes = [2, 32], strides = [1, 1]} : vector<2x128xf32> to vector<2x32xf32>
    %97 = arith.negf %96 : vector<2x32xf32>
    %98 = math.exp %97 : vector<2x32xf32>
    %cst_48 = arith.constant 1.000000e+00 : f32
    %99 = vector.broadcast %cst_48 : f32 to vector<2x32xf32>
    %100 = arith.addf %99, %98 : vector<2x32xf32>
    %101 = arith.divf %99, %100 : vector<2x32xf32>
    %102 = vector.extract_strided_slice %95 {offsets = [0, 32], sizes = [2, 32], strides = [1, 1]} : vector<2x128xf32> to vector<2x32xf32>
    %103 = arith.negf %102 : vector<2x32xf32>
    %104 = math.exp %103 : vector<2x32xf32>
    %cst_49 = arith.constant 1.000000e+00 : f32
    %105 = vector.broadcast %cst_49 : f32 to vector<2x32xf32>
    %106 = arith.addf %105, %104 : vector<2x32xf32>
    %107 = arith.divf %105, %106 : vector<2x32xf32>
    %108 = vector.extract_strided_slice %95 {offsets = [0, 64], sizes = [2, 32], strides = [1, 1]} : vector<2x128xf32> to vector<2x32xf32>
    %109 = math.tanh %108 : vector<2x32xf32>
    %110 = vector.extract_strided_slice %95 {offsets = [0, 96], sizes = [2, 32], strides = [1, 1]} : vector<2x128xf32> to vector<2x32xf32>
    %111 = arith.negf %110 : vector<2x32xf32>
    %112 = math.exp %111 : vector<2x32xf32>
    %cst_50 = arith.constant 1.000000e+00 : f32
    %113 = vector.broadcast %cst_50 : f32 to vector<2x32xf32>
    %114 = arith.addf %113, %112 : vector<2x32xf32>
    %115 = arith.divf %113, %114 : vector<2x32xf32>
    %116 = arith.mulf %107, %54 : vector<2x32xf32>
    %117 = arith.mulf %101, %109 : vector<2x32xf32>
    %118 = arith.addf %116, %117 : vector<2x32xf32>
    %119 = math.tanh %118 : vector<2x32xf32>
    %120 = arith.mulf %115, %119 : vector<2x32xf32>
    %c12 = arith.constant 12 : index
    %c128_51 = arith.constant 128 : index
    %121 = vector.load %arg17[%c12, %c128_51] : memref<16x256xf32, #tpu.memory_space<vmem>>, vector<2x128xf32>
    %122 = arith.truncf %85 : vector<2x32xf32> to vector<2x32xbf16>
    %cst_52 = arith.constant dense<0.000000e+00> : vector<2x128xf32>
    %123 = tpu.matmul %122, %19, %cst_52 {dimension_numbers = #tpu.dot_dimension_numbers<[1], [0], [0], [1], [0, 0, 1, 1], [], []>} : vector<2x32xbf16>, vector<32x128xbf16>, vector<2x128xf32> -> vector<2x128xf32>
    %124 = arith.addf %121, %123 : vector<2x128xf32>
    %125 = vector.extract_strided_slice %124 {offsets = [0, 0], sizes = [2, 32], strides = [1, 1]} : vector<2x128xf32> to vector<2x32xf32>
    %126 = arith.negf %125 : vector<2x32xf32>
    %127 = math.exp %126 : vector<2x32xf32>
    %cst_53 = arith.constant 1.000000e+00 : f32
    %128 = vector.broadcast %cst_53 : f32 to vector<2x32xf32>
    %129 = arith.addf %128, %127 : vector<2x32xf32>
    %130 = arith.divf %128, %129 : vector<2x32xf32>
    %131 = vector.extract_strided_slice %124 {offsets = [0, 32], sizes = [2, 32], strides = [1, 1]} : vector<2x128xf32> to vector<2x32xf32>
    %132 = arith.negf %131 : vector<2x32xf32>
    %133 = math.exp %132 : vector<2x32xf32>
    %cst_54 = arith.constant 1.000000e+00 : f32
    %134 = vector.broadcast %cst_54 : f32 to vector<2x32xf32>
    %135 = arith.addf %134, %133 : vector<2x32xf32>
    %136 = arith.divf %134, %135 : vector<2x32xf32>
    %137 = vector.extract_strided_slice %124 {offsets = [0, 64], sizes = [2, 32], strides = [1, 1]} : vector<2x128xf32> to vector<2x32xf32>
    %138 = math.tanh %137 : vector<2x32xf32>
    %139 = vector.extract_strided_slice %124 {offsets = [0, 96], sizes = [2, 32], strides = [1, 1]} : vector<2x128xf32> to vector<2x32xf32>
    %140 = arith.negf %139 : vector<2x32xf32>
    %141 = math.exp %140 : vector<2x32xf32>
    %cst_55 = arith.constant 1.000000e+00 : f32
    %142 = vector.broadcast %cst_55 : f32 to vector<2x32xf32>
    %143 = arith.addf %142, %141 : vector<2x32xf32>
    %144 = arith.divf %142, %143 : vector<2x32xf32>
    %145 = arith.mulf %136, %83 : vector<2x32xf32>
    %146 = arith.mulf %130, %138 : vector<2x32xf32>
    %147 = arith.addf %145, %146 : vector<2x32xf32>
    %148 = math.tanh %147 : vector<2x32xf32>
    %149 = arith.mulf %144, %148 : vector<2x32xf32>
    %c0_56 = arith.constant 0 : index
    %c2_57 = arith.constant 2 : index
    %c0_58 = arith.constant 0 : index
    %150 = vector.load %arg18[%c0_56, %c2_57, %c0_58] : memref<2x16x32xf32, #tpu.memory_space<vmem>>, vector<1x2x32xf32>
    %151 = vector.shape_cast %150 : vector<1x2x32xf32> to vector<2x32xf32>
    %152 = vector.shape_cast %120 : vector<2x32xf32> to vector<1x2x32xf32>
    tpu.vector_store %arg18[%c0_56, %c2_57, %c0_58], %152 {strides = array<i32>} : memref<2x16x32xf32, #tpu.memory_space<vmem>>, vector<1x2x32xf32>,
    %c1_59 = arith.constant 1 : index
    %c12_60 = arith.constant 12 : index
    %c0_61 = arith.constant 0 : index
    %153 = vector.load %arg18[%c1_59, %c12_60, %c0_61] : memref<2x16x32xf32, #tpu.memory_space<vmem>>, vector<1x2x32xf32>
    %154 = vector.shape_cast %153 : vector<1x2x32xf32> to vector<2x32xf32>
    %155 = vector.shape_cast %149 : vector<2x32xf32> to vector<1x2x32xf32>
    tpu.vector_store %arg18[%c1_59, %c12_60, %c0_61], %155 {strides = array<i32>} : memref<2x16x32xf32, #tpu.memory_space<vmem>>, vector<1x2x32xf32>,
    %c4 = arith.constant 4 : index
    %c0_62 = arith.constant 0 : index
    %156 = vector.load %arg17[%c4, %c0_62] : memref<16x256xf32, #tpu.memory_space<vmem>>, vector<2x128xf32>
    %157 = arith.truncf %120 : vector<2x32xf32> to vector<2x32xbf16>
    %cst_63 = arith.constant dense<0.000000e+00> : vector<2x128xf32>
    %158 = tpu.matmul %157, %18, %cst_63 {dimension_numbers = #tpu.dot_dimension_numbers<[1], [0], [0], [1], [0, 0, 1, 1], [], []>} : vector<2x32xbf16>, vector<32x128xbf16>, vector<2x128xf32> -> vector<2x128xf32>
    %159 = arith.addf %156, %158 : vector<2x128xf32>
    %160 = vector.extract_strided_slice %159 {offsets = [0, 0], sizes = [2, 32], strides = [1, 1]} : vector<2x128xf32> to vector<2x32xf32>
    %161 = arith.negf %160 : vector<2x32xf32>
    %162 = math.exp %161 : vector<2x32xf32>
    %cst_64 = arith.constant 1.000000e+00 : f32
    %163 = vector.broadcast %cst_64 : f32 to vector<2x32xf32>
    %164 = arith.addf %163, %162 : vector<2x32xf32>
    %165 = arith.divf %163, %164 : vector<2x32xf32>
    %166 = vector.extract_strided_slice %159 {offsets = [0, 32], sizes = [2, 32], strides = [1, 1]} : vector<2x128xf32> to vector<2x32xf32>
    %167 = arith.negf %166 : vector<2x32xf32>
    %168 = math.exp %167 : vector<2x32xf32>
    %cst_65 = arith.constant 1.000000e+00 : f32
    %169 = vector.broadcast %cst_65 : f32 to vector<2x32xf32>
    %170 = arith.addf %169, %168 : vector<2x32xf32>
    %171 = arith.divf %169, %170 : vector<2x32xf32>
    %172 = vector.extract_strided_slice %159 {offsets = [0, 64], sizes = [2, 32], strides = [1, 1]} : vector<2x128xf32> to vector<2x32xf32>
    %173 = math.tanh %172 : vector<2x32xf32>
    %174 = vector.extract_strided_slice %159 {offsets = [0, 96], sizes = [2, 32], strides = [1, 1]} : vector<2x128xf32> to vector<2x32xf32>
    %175 = arith.negf %174 : vector<2x32xf32>
    %176 = math.exp %175 : vector<2x32xf32>
    %cst_66 = arith.constant 1.000000e+00 : f32
    %177 = vector.broadcast %cst_66 : f32 to vector<2x32xf32>
    %178 = arith.addf %177, %176 : vector<2x32xf32>
    %179 = arith.divf %177, %178 : vector<2x32xf32>
    %180 = arith.mulf %171, %118 : vector<2x32xf32>
    %181 = arith.mulf %165, %173 : vector<2x32xf32>
    %182 = arith.addf %180, %181 : vector<2x32xf32>
    %183 = math.tanh %182 : vector<2x32xf32>
    %184 = arith.mulf %179, %183 : vector<2x32xf32>
    %c10 = arith.constant 10 : index
    %c128_67 = arith.constant 128 : index
    %185 = vector.load %arg17[%c10, %c128_67] : memref<16x256xf32, #tpu.memory_space<vmem>>, vector<2x128xf32>
    %186 = arith.truncf %149 : vector<2x32xf32> to vector<2x32xbf16>
    %cst_68 = arith.constant dense<0.000000e+00> : vector<2x128xf32>
    %187 = tpu.matmul %186, %19, %cst_68 {dimension_numbers = #tpu.dot_dimension_numbers<[1], [0], [0], [1], [0, 0, 1, 1], [], []>} : vector<2x32xbf16>, vector<32x128xbf16>, vector<2x128xf32> -> vector<2x128xf32>
    %188 = arith.addf %185, %187 : vector<2x128xf32>
    %189 = vector.extract_strided_slice %188 {offsets = [0, 0], sizes = [2, 32], strides = [1, 1]} : vector<2x128xf32> to vector<2x32xf32>
    %190 = arith.negf %189 : vector<2x32xf32>
    %191 = math.exp %190 : vector<2x32xf32>
    %cst_69 = arith.constant 1.000000e+00 : f32
    %192 = vector.broadcast %cst_69 : f32 to vector<2x32xf32>
    %193 = arith.addf %192, %191 : vector<2x32xf32>
    %194 = arith.divf %192, %193 : vector<2x32xf32>
    %195 = vector.extract_strided_slice %188 {offsets = [0, 32], sizes = [2, 32], strides = [1, 1]} : vector<2x128xf32> to vector<2x32xf32>
    %196 = arith.negf %195 : vector<2x32xf32>
    %197 = math.exp %196 : vector<2x32xf32>
    %cst_70 = arith.constant 1.000000e+00 : f32
    %198 = vector.broadcast %cst_70 : f32 to vector<2x32xf32>
    %199 = arith.addf %198, %197 : vector<2x32xf32>
    %200 = arith.divf %198, %199 : vector<2x32xf32>
    %201 = vector.extract_strided_slice %188 {offsets = [0, 64], sizes = [2, 32], strides = [1, 1]} : vector<2x128xf32> to vector<2x32xf32>
    %202 = math.tanh %201 : vector<2x32xf32>
    %203 = vector.extract_strided_slice %188 {offsets = [0, 96], sizes = [2, 32], strides = [1, 1]} : vector<2x128xf32> to vector<2x32xf32>
    %204 = arith.negf %203 : vector<2x32xf32>
    %205 = math.exp %204 : vector<2x32xf32>
    %cst_71 = arith.constant 1.000000e+00 : f32
    %206 = vector.broadcast %cst_71 : f32 to vector<2x32xf32>
    %207 = arith.addf %206, %205 : vector<2x32xf32>
    %208 = arith.divf %206, %207 : vector<2x32xf32>
    %209 = arith.mulf %200, %147 : vector<2x32xf32>
    %210 = arith.mulf %194, %202 : vector<2x32xf32>
    %211 = arith.addf %209, %210 : vector<2x32xf32>
    %212 = math.tanh %211 : vector<2x32xf32>
    %213 = arith.mulf %208, %212 : vector<2x32xf32>
    %c0_72 = arith.constant 0 : index
    %c4_73 = arith.constant 4 : index
    %c0_74 = arith.constant 0 : index
    %214 = vector.load %arg18[%c0_72, %c4_73, %c0_74] : memref<2x16x32xf32, #tpu.memory_space<vmem>>, vector<1x2x32xf32>
    %215 = vector.shape_cast %214 : vector<1x2x32xf32> to vector<2x32xf32>
    %216 = vector.shape_cast %184 : vector<2x32xf32> to vector<1x2x32xf32>
    tpu.vector_store %arg18[%c0_72, %c4_73, %c0_74], %216 {strides = array<i32>} : memref<2x16x32xf32, #tpu.memory_space<vmem>>, vector<1x2x32xf32>,
    %c1_75 = arith.constant 1 : index
    %c10_76 = arith.constant 10 : index
    %c0_77 = arith.constant 0 : index
    %217 = vector.load %arg18[%c1_75, %c10_76, %c0_77] : memref<2x16x32xf32, #tpu.memory_space<vmem>>, vector<1x2x32xf32>
    %218 = vector.shape_cast %217 : vector<1x2x32xf32> to vector<2x32xf32>
    %219 = vector.shape_cast %213 : vector<2x32xf32> to vector<1x2x32xf32>
    tpu.vector_store %arg18[%c1_75, %c10_76, %c0_77], %219 {strides = array<i32>} : memref<2x16x32xf32, #tpu.memory_space<vmem>>, vector<1x2x32xf32>,
    %c6 = arith.constant 6 : index
    %c0_78 = arith.constant 0 : index
    %220 = vector.load %arg17[%c6, %c0_78] : memref<16x256xf32, #tpu.memory_space<vmem>>, vector<2x128xf32>
    %221 = arith.truncf %184 : vector<2x32xf32> to vector<2x32xbf16>
    %cst_79 = arith.constant dense<0.000000e+00> : vector<2x128xf32>
    %222 = tpu.matmul %221, %18, %cst_79 {dimension_numbers = #tpu.dot_dimension_numbers<[1], [0], [0], [1], [0, 0, 1, 1], [], []>} : vector<2x32xbf16>, vector<32x128xbf16>, vector<2x128xf32> -> vector<2x128xf32>
    %223 = arith.addf %220, %222 : vector<2x128xf32>
    %224 = vector.extract_strided_slice %223 {offsets = [0, 0], sizes = [2, 32], strides = [1, 1]} : vector<2x128xf32> to vector<2x32xf32>
    %225 = arith.negf %224 : vector<2x32xf32>
    %226 = math.exp %225 : vector<2x32xf32>
    %cst_80 = arith.constant 1.000000e+00 : f32
    %227 = vector.broadcast %cst_80 : f32 to vector<2x32xf32>
    %228 = arith.addf %227, %226 : vector<2x32xf32>
    %229 = arith.divf %227, %228 : vector<2x32xf32>
    %230 = vector.extract_strided_slice %223 {offsets = [0, 32], sizes = [2, 32], strides = [1, 1]} : vector<2x128xf32> to vector<2x32xf32>
    %231 = arith.negf %230 : vector<2x32xf32>
    %232 = math.exp %231 : vector<2x32xf32>
    %cst_81 = arith.constant 1.000000e+00 : f32
    %233 = vector.broadcast %cst_81 : f32 to vector<2x32xf32>
    %234 = arith.addf %233, %232 : vector<2x32xf32>
    %235 = arith.divf %233, %234 : vector<2x32xf32>
    %236 = vector.extract_strided_slice %223 {offsets = [0, 64], sizes = [2, 32], strides = [1, 1]} : vector<2x128xf32> to vector<2x32xf32>
    %237 = math.tanh %236 : vector<2x32xf32>
    %238 = vector.extract_strided_slice %223 {offsets = [0, 96], sizes = [2, 32], strides = [1, 1]} : vector<2x128xf32> to vector<2x32xf32>
    %239 = arith.negf %238 : vector<2x32xf32>
    %240 = math.exp %239 : vector<2x32xf32>
    %cst_82 = arith.constant 1.000000e+00 : f32
    %241 = vector.broadcast %cst_82 : f32 to vector<2x32xf32>
    %242 = arith.addf %241, %240 : vector<2x32xf32>
    %243 = arith.divf %241, %242 : vector<2x32xf32>
    %244 = arith.mulf %235, %182 : vector<2x32xf32>
    %245 = arith.mulf %229, %237 : vector<2x32xf32>
    %246 = arith.addf %244, %245 : vector<2x32xf32>
    %247 = math.tanh %246 : vector<2x32xf32>
    %248 = arith.mulf %243, %247 : vector<2x32xf32>
    %c8 = arith.constant 8 : index
    %c128_83 = arith.constant 128 : index
    %249 = vector.load %arg17[%c8, %c128_83] : memref<16x256xf32, #tpu.memory_space<vmem>>, vector<2x128xf32>
    %250 = arith.truncf %213 : vector<2x32xf32> to vector<2x32xbf16>
    %cst_84 = arith.constant dense<0.000000e+00> : vector<2x128xf32>
    %251 = tpu.matmul %250, %19, %cst_84 {dimension_numbers = #tpu.dot_dimension_numbers<[1], [0], [0], [1], [0, 0, 1, 1], [], []>} : vector<2x32xbf16>, vector<32x128xbf16>, vector<2x128xf32> -> vector<2x128xf32>
    %252 = arith.addf %249, %251 : vector<2x128xf32>
    %253 = vector.extract_strided_slice %252 {offsets = [0, 0], sizes = [2, 32], strides = [1, 1]} : vector<2x128xf32> to vector<2x32xf32>
    %254 = arith.negf %253 : vector<2x32xf32>
    %255 = math.exp %254 : vector<2x32xf32>
    %cst_85 = arith.constant 1.000000e+00 : f32
    %256 = vector.broadcast %cst_85 : f32 to vector<2x32xf32>
    %257 = arith.addf %256, %255 : vector<2x32xf32>
    %258 = arith.divf %256, %257 : vector<2x32xf32>
    %259 = vector.extract_strided_slice %252 {offsets = [0, 32], sizes = [2, 32], strides = [1, 1]} : vector<2x128xf32> to vector<2x32xf32>
    %260 = arith.negf %259 : vector<2x32xf32>
    %261 = math.exp %260 : vector<2x32xf32>
    %cst_86 = arith.constant 1.000000e+00 : f32
    %262 = vector.broadcast %cst_86 : f32 to vector<2x32xf32>
    %263 = arith.addf %262, %261 : vector<2x32xf32>
    %264 = arith.divf %262, %263 : vector<2x32xf32>
    %265 = vector.extract_strided_slice %252 {offsets = [0, 64], sizes = [2, 32], strides = [1, 1]} : vector<2x128xf32> to vector<2x32xf32>
    %266 = math.tanh %265 : vector<2x32xf32>
    %267 = vector.extract_strided_slice %252 {offsets = [0, 96], sizes = [2, 32], strides = [1, 1]} : vector<2x128xf32> to vector<2x32xf32>
    %268 = arith.negf %267 : vector<2x32xf32>
    %269 = math.exp %268 : vector<2x32xf32>
    %cst_87 = arith.constant 1.000000e+00 : f32
    %270 = vector.broadcast %cst_87 : f32 to vector<2x32xf32>
    %271 = arith.addf %270, %269 : vector<2x32xf32>
    %272 = arith.divf %270, %271 : vector<2x32xf32>
    %273 = arith.mulf %264, %211 : vector<2x32xf32>
    %274 = arith.mulf %258, %266 : vector<2x32xf32>
    %275 = arith.addf %273, %274 : vector<2x32xf32>
    %276 = math.tanh %275 : vector<2x32xf32>
    %277 = arith.mulf %272, %276 : vector<2x32xf32>
    %c0_88 = arith.constant 0 : index
    %c6_89 = arith.constant 6 : index
    %c0_90 = arith.constant 0 : index
    %278 = vector.load %arg18[%c0_88, %c6_89, %c0_90] : memref<2x16x32xf32, #tpu.memory_space<vmem>>, vector<1x2x32xf32>
    %279 = vector.shape_cast %278 : vector<1x2x32xf32> to vector<2x32xf32>
    %280 = vector.shape_cast %248 : vector<2x32xf32> to vector<1x2x32xf32>
    tpu.vector_store %arg18[%c0_88, %c6_89, %c0_90], %280 {strides = array<i32>} : memref<2x16x32xf32, #tpu.memory_space<vmem>>, vector<1x2x32xf32>,
    %c1_91 = arith.constant 1 : index
    %c8_92 = arith.constant 8 : index
    %c0_93 = arith.constant 0 : index
    %281 = vector.load %arg18[%c1_91, %c8_92, %c0_93] : memref<2x16x32xf32, #tpu.memory_space<vmem>>, vector<1x2x32xf32>
    %282 = vector.shape_cast %281 : vector<1x2x32xf32> to vector<2x32xf32>
    %283 = vector.shape_cast %277 : vector<2x32xf32> to vector<1x2x32xf32>
    tpu.vector_store %arg18[%c1_91, %c8_92, %c0_93], %283 {strides = array<i32>} : memref<2x16x32xf32, #tpu.memory_space<vmem>>, vector<1x2x32xf32>,
    %c8_94 = arith.constant 8 : index
    %c0_95 = arith.constant 0 : index
    %284 = vector.load %arg17[%c8_94, %c0_95] : memref<16x256xf32, #tpu.memory_space<vmem>>, vector<2x128xf32>
    %285 = arith.truncf %248 : vector<2x32xf32> to vector<2x32xbf16>
    %cst_96 = arith.constant dense<0.000000e+00> : vector<2x128xf32>
    %286 = tpu.matmul %285, %18, %cst_96 {dimension_numbers = #tpu.dot_dimension_numbers<[1], [0], [0], [1], [0, 0, 1, 1], [], []>} : vector<2x32xbf16>, vector<32x128xbf16>, vector<2x128xf32> -> vector<2x128xf32>
    %287 = arith.addf %284, %286 : vector<2x128xf32>
    %288 = vector.extract_strided_slice %287 {offsets = [0, 0], sizes = [2, 32], strides = [1, 1]} : vector<2x128xf32> to vector<2x32xf32>
    %289 = arith.negf %288 : vector<2x32xf32>
    %290 = math.exp %289 : vector<2x32xf32>
    %cst_97 = arith.constant 1.000000e+00 : f32
    %291 = vector.broadcast %cst_97 : f32 to vector<2x32xf32>
    %292 = arith.addf %291, %290 : vector<2x32xf32>
    %293 = arith.divf %291, %292 : vector<2x32xf32>
    %294 = vector.extract_strided_slice %287 {offsets = [0, 32], sizes = [2, 32], strides = [1, 1]} : vector<2x128xf32> to vector<2x32xf32>
    %295 = arith.negf %294 : vector<2x32xf32>
    %296 = math.exp %295 : vector<2x32xf32>
    %cst_98 = arith.constant 1.000000e+00 : f32
    %297 = vector.broadcast %cst_98 : f32 to vector<2x32xf32>
    %298 = arith.addf %297, %296 : vector<2x32xf32>
    %299 = arith.divf %297, %298 : vector<2x32xf32>
    %300 = vector.extract_strided_slice %287 {offsets = [0, 64], sizes = [2, 32], strides = [1, 1]} : vector<2x128xf32> to vector<2x32xf32>
    %301 = math.tanh %300 : vector<2x32xf32>
    %302 = vector.extract_strided_slice %287 {offsets = [0, 96], sizes = [2, 32], strides = [1, 1]} : vector<2x128xf32> to vector<2x32xf32>
    %303 = arith.negf %302 : vector<2x32xf32>
    %304 = math.exp %303 : vector<2x32xf32>
    %cst_99 = arith.constant 1.000000e+00 : f32
    %305 = vector.broadcast %cst_99 : f32 to vector<2x32xf32>
    %306 = arith.addf %305, %304 : vector<2x32xf32>
    %307 = arith.divf %305, %306 : vector<2x32xf32>
    %308 = arith.mulf %299, %246 : vector<2x32xf32>
    %309 = arith.mulf %293, %301 : vector<2x32xf32>
    %310 = arith.addf %308, %309 : vector<2x32xf32>
    %311 = math.tanh %310 : vector<2x32xf32>
    %312 = arith.mulf %307, %311 : vector<2x32xf32>
    %c6_100 = arith.constant 6 : index
    %c128_101 = arith.constant 128 : index
    %313 = vector.load %arg17[%c6_100, %c128_101] : memref<16x256xf32, #tpu.memory_space<vmem>>, vector<2x128xf32>
    %314 = arith.truncf %277 : vector<2x32xf32> to vector<2x32xbf16>
    %cst_102 = arith.constant dense<0.000000e+00> : vector<2x128xf32>
    %315 = tpu.matmul %314, %19, %cst_102 {dimension_numbers = #tpu.dot_dimension_numbers<[1], [0], [0], [1], [0, 0, 1, 1], [], []>} : vector<2x32xbf16>, vector<32x128xbf16>, vector<2x128xf32> -> vector<2x128xf32>
    %316 = arith.addf %313, %315 : vector<2x128xf32>
    %317 = vector.extract_strided_slice %316 {offsets = [0, 0], sizes = [2, 32], strides = [1, 1]} : vector<2x128xf32> to vector<2x32xf32>
    %318 = arith.negf %317 : vector<2x32xf32>
    %319 = math.exp %318 : vector<2x32xf32>
    %cst_103 = arith.constant 1.000000e+00 : f32
    %320 = vector.broadcast %cst_103 : f32 to vector<2x32xf32>
    %321 = arith.addf %320, %319 : vector<2x32xf32>
    %322 = arith.divf %320, %321 : vector<2x32xf32>
    %323 = vector.extract_strided_slice %316 {offsets = [0, 32], sizes = [2, 32], strides = [1, 1]} : vector<2x128xf32> to vector<2x32xf32>
    %324 = arith.negf %323 : vector<2x32xf32>
    %325 = math.exp %324 : vector<2x32xf32>
    %cst_104 = arith.constant 1.000000e+00 : f32
    %326 = vector.broadcast %cst_104 : f32 to vector<2x32xf32>
    %327 = arith.addf %326, %325 : vector<2x32xf32>
    %328 = arith.divf %326, %327 : vector<2x32xf32>
    %329 = vector.extract_strided_slice %316 {offsets = [0, 64], sizes = [2, 32], strides = [1, 1]} : vector<2x128xf32> to vector<2x32xf32>
    %330 = math.tanh %329 : vector<2x32xf32>
    %331 = vector.extract_strided_slice %316 {offsets = [0, 96], sizes = [2, 32], strides = [1, 1]} : vector<2x128xf32> to vector<2x32xf32>
    %332 = arith.negf %331 : vector<2x32xf32>
    %333 = math.exp %332 : vector<2x32xf32>
    %cst_105 = arith.constant 1.000000e+00 : f32
    %334 = vector.broadcast %cst_105 : f32 to vector<2x32xf32>
    %335 = arith.addf %334, %333 : vector<2x32xf32>
    %336 = arith.divf %334, %335 : vector<2x32xf32>
    %337 = arith.mulf %328, %275 : vector<2x32xf32>
    %338 = arith.mulf %322, %330 : vector<2x32xf32>
    %339 = arith.addf %337, %338 : vector<2x32xf32>
    %340 = math.tanh %339 : vector<2x32xf32>
    %341 = arith.mulf %336, %340 : vector<2x32xf32>
    %c0_106 = arith.constant 0 : index
    %c8_107 = arith.constant 8 : index
    %c0_108 = arith.constant 0 : index
    %342 = vector.load %arg18[%c0_106, %c8_107, %c0_108] : memref<2x16x32xf32, #tpu.memory_space<vmem>>, vector<1x2x32xf32>
    %343 = vector.shape_cast %342 : vector<1x2x32xf32> to vector<2x32xf32>
    %344 = vector.shape_cast %312 : vector<2x32xf32> to vector<1x2x32xf32>
    tpu.vector_store %arg18[%c0_106, %c8_107, %c0_108], %344 {strides = array<i32>} : memref<2x16x32xf32, #tpu.memory_space<vmem>>, vector<1x2x32xf32>,
    %c1_109 = arith.constant 1 : index
    %c6_110 = arith.constant 6 : index
    %c0_111 = arith.constant 0 : index
    %345 = vector.load %arg18[%c1_109, %c6_110, %c0_111] : memref<2x16x32xf32, #tpu.memory_space<vmem>>, vector<1x2x32xf32>
    %346 = vector.shape_cast %345 : vector<1x2x32xf32> to vector<2x32xf32>
    %347 = vector.shape_cast %341 : vector<2x32xf32> to vector<1x2x32xf32>
    tpu.vector_store %arg18[%c1_109, %c6_110, %c0_111], %347 {strides = array<i32>} : memref<2x16x32xf32, #tpu.memory_space<vmem>>, vector<1x2x32xf32>,
    %c10_112 = arith.constant 10 : index
    %c0_113 = arith.constant 0 : index
    %348 = vector.load %arg17[%c10_112, %c0_113] : memref<16x256xf32, #tpu.memory_space<vmem>>, vector<2x128xf32>
    %349 = arith.truncf %312 : vector<2x32xf32> to vector<2x32xbf16>
    %cst_114 = arith.constant dense<0.000000e+00> : vector<2x128xf32>
    %350 = tpu.matmul %349, %18, %cst_114 {dimension_numbers = #tpu.dot_dimension_numbers<[1], [0], [0], [1], [0, 0, 1, 1], [], []>} : vector<2x32xbf16>, vector<32x128xbf16>, vector<2x128xf32> -> vector<2x128xf32>
    %351 = arith.addf %348, %350 : vector<2x128xf32>
    %352 = vector.extract_strided_slice %351 {offsets = [0, 0], sizes = [2, 32], strides = [1, 1]} : vector<2x128xf32> to vector<2x32xf32>
    %353 = arith.negf %352 : vector<2x32xf32>
    %354 = math.exp %353 : vector<2x32xf32>
    %cst_115 = arith.constant 1.000000e+00 : f32
    %355 = vector.broadcast %cst_115 : f32 to vector<2x32xf32>
    %356 = arith.addf %355, %354 : vector<2x32xf32>
    %357 = arith.divf %355, %356 : vector<2x32xf32>
    %358 = vector.extract_strided_slice %351 {offsets = [0, 32], sizes = [2, 32], strides = [1, 1]} : vector<2x128xf32> to vector<2x32xf32>
    %359 = arith.negf %358 : vector<2x32xf32>
    %360 = math.exp %359 : vector<2x32xf32>
    %cst_116 = arith.constant 1.000000e+00 : f32
    %361 = vector.broadcast %cst_116 : f32 to vector<2x32xf32>
    %362 = arith.addf %361, %360 : vector<2x32xf32>
    %363 = arith.divf %361, %362 : vector<2x32xf32>
    %364 = vector.extract_strided_slice %351 {offsets = [0, 64], sizes = [2, 32], strides = [1, 1]} : vector<2x128xf32> to vector<2x32xf32>
    %365 = math.tanh %364 : vector<2x32xf32>
    %366 = vector.extract_strided_slice %351 {offsets = [0, 96], sizes = [2, 32], strides = [1, 1]} : vector<2x128xf32> to vector<2x32xf32>
    %367 = arith.negf %366 : vector<2x32xf32>
    %368 = math.exp %367 : vector<2x32xf32>
    %cst_117 = arith.constant 1.000000e+00 : f32
    %369 = vector.broadcast %cst_117 : f32 to vector<2x32xf32>
    %370 = arith.addf %369, %368 : vector<2x32xf32>
    %371 = arith.divf %369, %370 : vector<2x32xf32>
    %372 = arith.mulf %363, %310 : vector<2x32xf32>
    %373 = arith.mulf %357, %365 : vector<2x32xf32>
    %374 = arith.addf %372, %373 : vector<2x32xf32>
    %375 = math.tanh %374 : vector<2x32xf32>
    %376 = arith.mulf %371, %375 : vector<2x32xf32>
    %c4_118 = arith.constant 4 : index
    %c128_119 = arith.constant 128 : index
    %377 = vector.load %arg17[%c4_118, %c128_119] : memref<16x256xf32, #tpu.memory_space<vmem>>, vector<2x128xf32>
    %378 = arith.truncf %341 : vector<2x32xf32> to vector<2x32xbf16>
    %cst_120 = arith.constant dense<0.000000e+00> : vector<2x128xf32>
    %379 = tpu.matmul %378, %19, %cst_120 {dimension_numbers = #tpu.dot_dimension_numbers<[1], [0], [0], [1], [0, 0, 1, 1], [], []>} : vector<2x32xbf16>, vector<32x128xbf16>, vector<2x128xf32> -> vector<2x128xf32>
    %380 = arith.addf %377, %379 : vector<2x128xf32>
    %381 = vector.extract_strided_slice %380 {offsets = [0, 0], sizes = [2, 32], strides = [1, 1]} : vector<2x128xf32> to vector<2x32xf32>
    %382 = arith.negf %381 : vector<2x32xf32>
    %383 = math.exp %382 : vector<2x32xf32>
    %cst_121 = arith.constant 1.000000e+00 : f32
    %384 = vector.broadcast %cst_121 : f32 to vector<2x32xf32>
    %385 = arith.addf %384, %383 : vector<2x32xf32>
    %386 = arith.divf %384, %385 : vector<2x32xf32>
    %387 = vector.extract_strided_slice %380 {offsets = [0, 32], sizes = [2, 32], strides = [1, 1]} : vector<2x128xf32> to vector<2x32xf32>
    %388 = arith.negf %387 : vector<2x32xf32>
    %389 = math.exp %388 : vector<2x32xf32>
    %cst_122 = arith.constant 1.000000e+00 : f32
    %390 = vector.broadcast %cst_122 : f32 to vector<2x32xf32>
    %391 = arith.addf %390, %389 : vector<2x32xf32>
    %392 = arith.divf %390, %391 : vector<2x32xf32>
    %393 = vector.extract_strided_slice %380 {offsets = [0, 64], sizes = [2, 32], strides = [1, 1]} : vector<2x128xf32> to vector<2x32xf32>
    %394 = math.tanh %393 : vector<2x32xf32>
    %395 = vector.extract_strided_slice %380 {offsets = [0, 96], sizes = [2, 32], strides = [1, 1]} : vector<2x128xf32> to vector<2x32xf32>
    %396 = arith.negf %395 : vector<2x32xf32>
    %397 = math.exp %396 : vector<2x32xf32>
    %cst_123 = arith.constant 1.000000e+00 : f32
    %398 = vector.broadcast %cst_123 : f32 to vector<2x32xf32>
    %399 = arith.addf %398, %397 : vector<2x32xf32>
    %400 = arith.divf %398, %399 : vector<2x32xf32>
    %401 = arith.mulf %392, %339 : vector<2x32xf32>
    %402 = arith.mulf %386, %394 : vector<2x32xf32>
    %403 = arith.addf %401, %402 : vector<2x32xf32>
    %404 = math.tanh %403 : vector<2x32xf32>
    %405 = arith.mulf %400, %404 : vector<2x32xf32>
    %c0_124 = arith.constant 0 : index
    %c10_125 = arith.constant 10 : index
    %c0_126 = arith.constant 0 : index
    %406 = vector.load %arg18[%c0_124, %c10_125, %c0_126] : memref<2x16x32xf32, #tpu.memory_space<vmem>>, vector<1x2x32xf32>
    %407 = vector.shape_cast %406 : vector<1x2x32xf32> to vector<2x32xf32>
    %408 = vector.shape_cast %376 : vector<2x32xf32> to vector<1x2x32xf32>
    tpu.vector_store %arg18[%c0_124, %c10_125, %c0_126], %408 {strides = array<i32>} : memref<2x16x32xf32, #tpu.memory_space<vmem>>, vector<1x2x32xf32>,
    %c1_127 = arith.constant 1 : index
    %c4_128 = arith.constant 4 : index
    %c0_129 = arith.constant 0 : index
    %409 = vector.load %arg18[%c1_127, %c4_128, %c0_129] : memref<2x16x32xf32, #tpu.memory_space<vmem>>, vector<1x2x32xf32>
    %410 = vector.shape_cast %409 : vector<1x2x32xf32> to vector<2x32xf32>
    %411 = vector.shape_cast %405 : vector<2x32xf32> to vector<1x2x32xf32>
    tpu.vector_store %arg18[%c1_127, %c4_128, %c0_129], %411 {strides = array<i32>} : memref<2x16x32xf32, #tpu.memory_space<vmem>>, vector<1x2x32xf32>,
    %c12_130 = arith.constant 12 : index
    %c0_131 = arith.constant 0 : index
    %412 = vector.load %arg17[%c12_130, %c0_131] : memref<16x256xf32, #tpu.memory_space<vmem>>, vector<2x128xf32>
    %413 = arith.truncf %376 : vector<2x32xf32> to vector<2x32xbf16>
    %cst_132 = arith.constant dense<0.000000e+00> : vector<2x128xf32>
    %414 = tpu.matmul %413, %18, %cst_132 {dimension_numbers = #tpu.dot_dimension_numbers<[1], [0], [0], [1], [0, 0, 1, 1], [], []>} : vector<2x32xbf16>, vector<32x128xbf16>, vector<2x128xf32> -> vector<2x128xf32>
    %415 = arith.addf %412, %414 : vector<2x128xf32>
    %416 = vector.extract_strided_slice %415 {offsets = [0, 0], sizes = [2, 32], strides = [1, 1]} : vector<2x128xf32> to vector<2x32xf32>
    %417 = arith.negf %416 : vector<2x32xf32>
    %418 = math.exp %417 : vector<2x32xf32>
    %cst_133 = arith.constant 1.000000e+00 : f32
    %419 = vector.broadcast %cst_133 : f32 to vector<2x32xf32>
    %420 = arith.addf %419, %418 : vector<2x32xf32>
    %421 = arith.divf %419, %420 : vector<2x32xf32>
    %422 = vector.extract_strided_slice %415 {offsets = [0, 32], sizes = [2, 32], strides = [1, 1]} : vector<2x128xf32> to vector<2x32xf32>
    %423 = arith.negf %422 : vector<2x32xf32>
    %424 = math.exp %423 : vector<2x32xf32>
    %cst_134 = arith.constant 1.000000e+00 : f32
    %425 = vector.broadcast %cst_134 : f32 to vector<2x32xf32>
    %426 = arith.addf %425, %424 : vector<2x32xf32>
    %427 = arith.divf %425, %426 : vector<2x32xf32>
    %428 = vector.extract_strided_slice %415 {offsets = [0, 64], sizes = [2, 32], strides = [1, 1]} : vector<2x128xf32> to vector<2x32xf32>
    %429 = math.tanh %428 : vector<2x32xf32>
    %430 = vector.extract_strided_slice %415 {offsets = [0, 96], sizes = [2, 32], strides = [1, 1]} : vector<2x128xf32> to vector<2x32xf32>
    %431 = arith.negf %430 : vector<2x32xf32>
    %432 = math.exp %431 : vector<2x32xf32>
    %cst_135 = arith.constant 1.000000e+00 : f32
    %433 = vector.broadcast %cst_135 : f32 to vector<2x32xf32>
    %434 = arith.addf %433, %432 : vector<2x32xf32>
    %435 = arith.divf %433, %434 : vector<2x32xf32>
    %436 = arith.mulf %427, %374 : vector<2x32xf32>
    %437 = arith.mulf %421, %429 : vector<2x32xf32>
    %438 = arith.addf %436, %437 : vector<2x32xf32>
    %439 = math.tanh %438 : vector<2x32xf32>
    %440 = arith.mulf %435, %439 : vector<2x32xf32>
    %c2_136 = arith.constant 2 : index
    %c128_137 = arith.constant 128 : index
    %441 = vector.load %arg17[%c2_136, %c128_137] : memref<16x256xf32, #tpu.memory_space<vmem>>, vector<2x128xf32>
    %442 = arith.truncf %405 : vector<2x32xf32> to vector<2x32xbf16>
    %cst_138 = arith.constant dense<0.000000e+00> : vector<2x128xf32>
    %443 = tpu.matmul %442, %19, %cst_138 {dimension_numbers = #tpu.dot_dimension_numbers<[1], [0], [0], [1], [0, 0, 1, 1], [], []>} : vector<2x32xbf16>, vector<32x128xbf16>, vector<2x128xf32> -> vector<2x128xf32>
    %444 = arith.addf %441, %443 : vector<2x128xf32>
    %445 = vector.extract_strided_slice %444 {offsets = [0, 0], sizes = [2, 32], strides = [1, 1]} : vector<2x128xf32> to vector<2x32xf32>
    %446 = arith.negf %445 : vector<2x32xf32>
    %447 = math.exp %446 : vector<2x32xf32>
    %cst_139 = arith.constant 1.000000e+00 : f32
    %448 = vector.broadcast %cst_139 : f32 to vector<2x32xf32>
    %449 = arith.addf %448, %447 : vector<2x32xf32>
    %450 = arith.divf %448, %449 : vector<2x32xf32>
    %451 = vector.extract_strided_slice %444 {offsets = [0, 32], sizes = [2, 32], strides = [1, 1]} : vector<2x128xf32> to vector<2x32xf32>
    %452 = arith.negf %451 : vector<2x32xf32>
    %453 = math.exp %452 : vector<2x32xf32>
    %cst_140 = arith.constant 1.000000e+00 : f32
    %454 = vector.broadcast %cst_140 : f32 to vector<2x32xf32>
    %455 = arith.addf %454, %453 : vector<2x32xf32>
    %456 = arith.divf %454, %455 : vector<2x32xf32>
    %457 = vector.extract_strided_slice %444 {offsets = [0, 64], sizes = [2, 32], strides = [1, 1]} : vector<2x128xf32> to vector<2x32xf32>
    %458 = math.tanh %457 : vector<2x32xf32>
    %459 = vector.extract_strided_slice %444 {offsets = [0, 96], sizes = [2, 32], strides = [1, 1]} : vector<2x128xf32> to vector<2x32xf32>
    %460 = arith.negf %459 : vector<2x32xf32>
    %461 = math.exp %460 : vector<2x32xf32>
    %cst_141 = arith.constant 1.000000e+00 : f32
    %462 = vector.broadcast %cst_141 : f32 to vector<2x32xf32>
    %463 = arith.addf %462, %461 : vector<2x32xf32>
    %464 = arith.divf %462, %463 : vector<2x32xf32>
    %465 = arith.mulf %456, %403 : vector<2x32xf32>
    %466 = arith.mulf %450, %458 : vector<2x32xf32>
    %467 = arith.addf %465, %466 : vector<2x32xf32>
    %468 = math.tanh %467 : vector<2x32xf32>
    %469 = arith.mulf %464, %468 : vector<2x32xf32>
    %c0_142 = arith.constant 0 : index
    %c12_143 = arith.constant 12 : index
    %c0_144 = arith.constant 0 : index
    %470 = vector.load %arg18[%c0_142, %c12_143, %c0_144] : memref<2x16x32xf32, #tpu.memory_space<vmem>>, vector<1x2x32xf32>
    %471 = vector.shape_cast %470 : vector<1x2x32xf32> to vector<2x32xf32>
    %472 = vector.shape_cast %440 : vector<2x32xf32> to vector<1x2x32xf32>
    tpu.vector_store %arg18[%c0_142, %c12_143, %c0_144], %472 {strides = array<i32>} : memref<2x16x32xf32, #tpu.memory_space<vmem>>, vector<1x2x32xf32>,
    %c1_145 = arith.constant 1 : index
    %c2_146 = arith.constant 2 : index
    %c0_147 = arith.constant 0 : index
    %473 = vector.load %arg18[%c1_145, %c2_146, %c0_147] : memref<2x16x32xf32, #tpu.memory_space<vmem>>, vector<1x2x32xf32>
    %474 = vector.shape_cast %473 : vector<1x2x32xf32> to vector<2x32xf32>
    %475 = vector.shape_cast %469 : vector<2x32xf32> to vector<1x2x32xf32>
    tpu.vector_store %arg18[%c1_145, %c2_146, %c0_147], %475 {strides = array<i32>} : memref<2x16x32xf32, #tpu.memory_space<vmem>>, vector<1x2x32xf32>,
    %c14_148 = arith.constant 14 : index
    %c0_149 = arith.constant 0 : index
    %476 = vector.load %arg17[%c14_148, %c0_149] : memref<16x256xf32, #tpu.memory_space<vmem>>, vector<2x128xf32>
    %477 = arith.truncf %440 : vector<2x32xf32> to vector<2x32xbf16>
    %cst_150 = arith.constant dense<0.000000e+00> : vector<2x128xf32>
    %478 = tpu.matmul %477, %18, %cst_150 {dimension_numbers = #tpu.dot_dimension_numbers<[1], [0], [0], [1], [0, 0, 1, 1], [], []>} : vector<2x32xbf16>, vector<32x128xbf16>, vector<2x128xf32> -> vector<2x128xf32>
    %479 = arith.addf %476, %478 : vector<2x128xf32>
    %480 = vector.extract_strided_slice %479 {offsets = [0, 0], sizes = [2, 32], strides = [1, 1]} : vector<2x128xf32> to vector<2x32xf32>
    %481 = arith.negf %480 : vector<2x32xf32>
    %482 = math.exp %481 : vector<2x32xf32>
    %cst_151 = arith.constant 1.000000e+00 : f32
    %483 = vector.broadcast %cst_151 : f32 to vector<2x32xf32>
    %484 = arith.addf %483, %482 : vector<2x32xf32>
    %485 = arith.divf %483, %484 : vector<2x32xf32>
    %486 = vector.extract_strided_slice %479 {offsets = [0, 32], sizes = [2, 32], strides = [1, 1]} : vector<2x128xf32> to vector<2x32xf32>
    %487 = arith.negf %486 : vector<2x32xf32>
    %488 = math.exp %487 : vector<2x32xf32>
    %cst_152 = arith.constant 1.000000e+00 : f32
    %489 = vector.broadcast %cst_152 : f32 to vector<2x32xf32>
    %490 = arith.addf %489, %488 : vector<2x32xf32>
    %491 = arith.divf %489, %490 : vector<2x32xf32>
    %492 = vector.extract_strided_slice %479 {offsets = [0, 64], sizes = [2, 32], strides = [1, 1]} : vector<2x128xf32> to vector<2x32xf32>
    %493 = math.tanh %492 : vector<2x32xf32>
    %494 = vector.extract_strided_slice %479 {offsets = [0, 96], sizes = [2, 32], strides = [1, 1]} : vector<2x128xf32> to vector<2x32xf32>
    %495 = arith.negf %494 : vector<2x32xf32>
    %496 = math.exp %495 : vector<2x32xf32>
    %cst_153 = arith.constant 1.000000e+00 : f32
    %497 = vector.broadcast %cst_153 : f32 to vector<2x32xf32>
    %498 = arith.addf %497, %496 : vector<2x32xf32>
    %499 = arith.divf %497, %498 : vector<2x32xf32>
    %500 = arith.mulf %491, %438 : vector<2x32xf32>
    %501 = arith.mulf %485, %493 : vector<2x32xf32>
    %502 = arith.addf %500, %501 : vector<2x32xf32>
    %503 = math.tanh %502 : vector<2x32xf32>
    %504 = arith.mulf %499, %503 : vector<2x32xf32>
    %c0_154 = arith.constant 0 : index
    %c128_155 = arith.constant 128 : index
    %505 = vector.load %arg17[%c0_154, %c128_155] : memref<16x256xf32, #tpu.memory_space<vmem>>, vector<2x128xf32>
    %506 = arith.truncf %469 : vector<2x32xf32> to vector<2x32xbf16>
    %cst_156 = arith.constant dense<0.000000e+00> : vector<2x128xf32>
    %507 = tpu.matmul %506, %19, %cst_156 {dimension_numbers = #tpu.dot_dimension_numbers<[1], [0], [0], [1], [0, 0, 1, 1], [], []>} : vector<2x32xbf16>, vector<32x128xbf16>, vector<2x128xf32> -> vector<2x128xf32>
    %508 = arith.addf %505, %507 : vector<2x128xf32>
    %509 = vector.extract_strided_slice %508 {offsets = [0, 0], sizes = [2, 32], strides = [1, 1]} : vector<2x128xf32> to vector<2x32xf32>
    %510 = arith.negf %509 : vector<2x32xf32>
    %511 = math.exp %510 : vector<2x32xf32>
    %cst_157 = arith.constant 1.000000e+00 : f32
    %512 = vector.broadcast %cst_157 : f32 to vector<2x32xf32>
    %513 = arith.addf %512, %511 : vector<2x32xf32>
    %514 = arith.divf %512, %513 : vector<2x32xf32>
    %515 = vector.extract_strided_slice %508 {offsets = [0, 32], sizes = [2, 32], strides = [1, 1]} : vector<2x128xf32> to vector<2x32xf32>
    %516 = arith.negf %515 : vector<2x32xf32>
    %517 = math.exp %516 : vector<2x32xf32>
    %cst_158 = arith.constant 1.000000e+00 : f32
    %518 = vector.broadcast %cst_158 : f32 to vector<2x32xf32>
    %519 = arith.addf %518, %517 : vector<2x32xf32>
    %520 = arith.divf %518, %519 : vector<2x32xf32>
    %521 = vector.extract_strided_slice %508 {offsets = [0, 64], sizes = [2, 32], strides = [1, 1]} : vector<2x128xf32> to vector<2x32xf32>
    %522 = math.tanh %521 : vector<2x32xf32>
    %523 = vector.extract_strided_slice %508 {offsets = [0, 96], sizes = [2, 32], strides = [1, 1]} : vector<2x128xf32> to vector<2x32xf32>
    %524 = arith.negf %523 : vector<2x32xf32>
    %525 = math.exp %524 : vector<2x32xf32>
    %cst_159 = arith.constant 1.000000e+00 : f32
    %526 = vector.broadcast %cst_159 : f32 to vector<2x32xf32>
    %527 = arith.addf %526, %525 : vector<2x32xf32>
    %528 = arith.divf %526, %527 : vector<2x32xf32>
    %529 = arith.mulf %520, %467 : vector<2x32xf32>
    %530 = arith.mulf %514, %522 : vector<2x32xf32>
    %531 = arith.addf %529, %530 : vector<2x32xf32>
    %532 = math.tanh %531 : vector<2x32xf32>
    %533 = arith.mulf %528, %532 : vector<2x32xf32>
    %c0_160 = arith.constant 0 : index
    %c14_161 = arith.constant 14 : index
    %c0_162 = arith.constant 0 : index
    %534 = vector.load %arg18[%c0_160, %c14_161, %c0_162] : memref<2x16x32xf32, #tpu.memory_space<vmem>>, vector<1x2x32xf32>
    %535 = vector.shape_cast %534 : vector<1x2x32xf32> to vector<2x32xf32>
    %536 = vector.shape_cast %504 : vector<2x32xf32> to vector<1x2x32xf32>
    tpu.vector_store %arg18[%c0_160, %c14_161, %c0_162], %536 {strides = array<i32>} : memref<2x16x32xf32, #tpu.memory_space<vmem>>, vector<1x2x32xf32>,
    %c1_163 = arith.constant 1 : index
    %c0_164 = arith.constant 0 : index
    %c0_165 = arith.constant 0 : index
    %537 = vector.load %arg18[%c1_163, %c0_164, %c0_165] : memref<2x16x32xf32, #tpu.memory_space<vmem>>, vector<1x2x32xf32>
    %538 = vector.shape_cast %537 : vector<1x2x32xf32> to vector<2x32xf32>
    %539 = vector.shape_cast %533 : vector<2x32xf32> to vector<1x2x32xf32>
    tpu.vector_store %arg18[%c1_163, %c0_164, %c0_165], %539 {strides = array<i32>} : memref<2x16x32xf32, #tpu.memory_space<vmem>>, vector<1x2x32xf32>,
    %c0_166 = arith.constant 0 : index
    %c0_167 = arith.constant 0 : index
    %c0_168 = arith.constant 0 : index
    %540 = vector.load %arg18[%c0_166, %c0_167, %c0_168] : memref<2x16x32xf32, #tpu.memory_space<vmem>>, vector<1x16x32xf32>
    %541 = vector.shape_cast %540 : vector<1x16x32xf32> to vector<16x32xf32>
    %542 = arith.truncf %541 : vector<16x32xf32> to vector<16x32xbf16>
    %c0_169 = arith.constant 0 : index
    %c0_170 = arith.constant 0 : index
    %543 = vector.load %arg7[%c0_169, %c0_170] : memref<64x256xbf16, #tpu.memory_space<vmem>>, vector<32x256xbf16>
    %cst_171 = arith.constant dense<0.000000e+00> : vector<16x256xf32>
    %544 = tpu.matmul %542, %543, %cst_171 {dimension_numbers = #tpu.dot_dimension_numbers<[1], [0], [0], [1], [0, 0, 1, 1], [], []>} : vector<16x32xbf16>, vector<32x256xbf16>, vector<16x256xf32> -> vector<16x256xf32>
    %c1_172 = arith.constant 1 : index
    %c0_173 = arith.constant 0 : index
    %c0_174 = arith.constant 0 : index
    %545 = vector.load %arg18[%c1_172, %c0_173, %c0_174] : memref<2x16x32xf32, #tpu.memory_space<vmem>>, vector<1x16x32xf32>
    %546 = vector.shape_cast %545 : vector<1x16x32xf32> to vector<16x32xf32>
    %547 = arith.truncf %546 : vector<16x32xf32> to vector<16x32xbf16>
    %c32 = arith.constant 32 : index
    %c0_175 = arith.constant 0 : index
    %548 = vector.load %arg7[%c32, %c0_175] : memref<64x256xbf16, #tpu.memory_space<vmem>>, vector<32x256xbf16>
    %cst_176 = arith.constant dense<0.000000e+00> : vector<16x256xf32>
    %549 = tpu.matmul %547, %548, %cst_176 {dimension_numbers = #tpu.dot_dimension_numbers<[1], [0], [0], [1], [0, 0, 1, 1], [], []>} : vector<16x32xbf16>, vector<32x256xbf16>, vector<16x256xf32> -> vector<16x256xf32>
    %550 = arith.addf %544, %549 : vector<16x256xf32>
    %c0_177 = arith.constant 0 : index
    %c0_178 = arith.constant 0 : index
    %551 = vector.load %arg9[%c0_177, %c0_178] : memref<1x256xf32, #tpu.memory_space<vmem>>, vector<1x256xf32>
    %552 = vector.broadcast %551 : vector<1x256xf32> to vector<16x256xf32>
    %553 = arith.addf %550, %552 : vector<16x256xf32>
    %c0_179 = arith.constant 0 : index
    %c0_180 = arith.constant 0 : index
    %554 = vector.load %arg17[%c0_179, %c0_180] : memref<16x256xf32, #tpu.memory_space<vmem>>, vector<16x256xf32>
    tpu.vector_store %arg17[%c0_179, %c0_180], %553 {strides = array<i32>} : memref<16x256xf32, #tpu.memory_space<vmem>>, vector<16x256xf32>,
    %c0_181 = arith.constant 0 : index
    %c0_182 = arith.constant 0 : index
    %555 = vector.load %arg8[%c0_181, %c0_182] : memref<32x256xbf16, #tpu.memory_space<vmem>>, vector<32x128xbf16>
    %c0_183 = arith.constant 0 : index
    %c128_184 = arith.constant 128 : index
    %556 = vector.load %arg8[%c0_183, %c128_184] : memref<32x256xbf16, #tpu.memory_space<vmem>>, vector<32x128xbf16>
    %c2_185 = arith.constant 2 : index
    %c0_186 = arith.constant 0 : index
    %c0_187 = arith.constant 0 : index
    %557 = vector.load %arg10[%c2_185, %c0_186, %c0_187] : memref<4x2x32xf32, #tpu.memory_space<vmem>>, vector<1x2x32xf32>
    %558 = vector.shape_cast %557 : vector<1x2x32xf32> to vector<2x32xf32>
    %c2_188 = arith.constant 2 : index
    %c0_189 = arith.constant 0 : index
    %c0_190 = arith.constant 0 : index
    %559 = vector.load %arg11[%c2_188, %c0_189, %c0_190] : memref<4x2x32xf32, #tpu.memory_space<vmem>>, vector<1x2x32xf32>
    %560 = vector.shape_cast %559 : vector<1x2x32xf32> to vector<2x32xf32>
    %c3 = arith.constant 3 : index
    %c0_191 = arith.constant 0 : index
    %c0_192 = arith.constant 0 : index
    %561 = vector.load %arg10[%c3, %c0_191, %c0_192] : memref<4x2x32xf32, #tpu.memory_space<vmem>>, vector<1x2x32xf32>
    %562 = vector.shape_cast %561 : vector<1x2x32xf32> to vector<2x32xf32>
    %c3_193 = arith.constant 3 : index
    %c0_194 = arith.constant 0 : index
    %c0_195 = arith.constant 0 : index
    %563 = vector.load %arg11[%c3_193, %c0_194, %c0_195] : memref<4x2x32xf32, #tpu.memory_space<vmem>>, vector<1x2x32xf32>
    %564 = vector.shape_cast %563 : vector<1x2x32xf32> to vector<2x32xf32>
    %c0_196 = arith.constant 0 : index
    %c0_197 = arith.constant 0 : index
    %565 = vector.load %arg17[%c0_196, %c0_197] : memref<16x256xf32, #tpu.memory_space<vmem>>, vector<2x128xf32>
    %566 = arith.truncf %558 : vector<2x32xf32> to vector<2x32xbf16>
    %cst_198 = arith.constant dense<0.000000e+00> : vector<2x128xf32>
    %567 = tpu.matmul %566, %555, %cst_198 {dimension_numbers = #tpu.dot_dimension_numbers<[1], [0], [0], [1], [0, 0, 1, 1], [], []>} : vector<2x32xbf16>, vector<32x128xbf16>, vector<2x128xf32> -> vector<2x128xf32>
    %568 = arith.addf %565, %567 : vector<2x128xf32>
    %569 = vector.extract_strided_slice %568 {offsets = [0, 0], sizes = [2, 32], strides = [1, 1]} : vector<2x128xf32> to vector<2x32xf32>
    %570 = arith.negf %569 : vector<2x32xf32>
    %571 = math.exp %570 : vector<2x32xf32>
    %cst_199 = arith.constant 1.000000e+00 : f32
    %572 = vector.broadcast %cst_199 : f32 to vector<2x32xf32>
    %573 = arith.addf %572, %571 : vector<2x32xf32>
    %574 = arith.divf %572, %573 : vector<2x32xf32>
    %575 = vector.extract_strided_slice %568 {offsets = [0, 32], sizes = [2, 32], strides = [1, 1]} : vector<2x128xf32> to vector<2x32xf32>
    %576 = arith.negf %575 : vector<2x32xf32>
    %577 = math.exp %576 : vector<2x32xf32>
    %cst_200 = arith.constant 1.000000e+00 : f32
    %578 = vector.broadcast %cst_200 : f32 to vector<2x32xf32>
    %579 = arith.addf %578, %577 : vector<2x32xf32>
    %580 = arith.divf %578, %579 : vector<2x32xf32>
    %581 = vector.extract_strided_slice %568 {offsets = [0, 64], sizes = [2, 32], strides = [1, 1]} : vector<2x128xf32> to vector<2x32xf32>
    %582 = math.tanh %581 : vector<2x32xf32>
    %583 = vector.extract_strided_slice %568 {offsets = [0, 96], sizes = [2, 32], strides = [1, 1]} : vector<2x128xf32> to vector<2x32xf32>
    %584 = arith.negf %583 : vector<2x32xf32>
    %585 = math.exp %584 : vector<2x32xf32>
    %cst_201 = arith.constant 1.000000e+00 : f32
    %586 = vector.broadcast %cst_201 : f32 to vector<2x32xf32>
    %587 = arith.addf %586, %585 : vector<2x32xf32>
    %588 = arith.divf %586, %587 : vector<2x32xf32>
    %589 = arith.mulf %580, %560 : vector<2x32xf32>
    %590 = arith.mulf %574, %582 : vector<2x32xf32>
    %591 = arith.addf %589, %590 : vector<2x32xf32>
    %592 = math.tanh %591 : vector<2x32xf32>
    %593 = arith.mulf %588, %592 : vector<2x32xf32>
    %c14_202 = arith.constant 14 : index
    %c128_203 = arith.constant 128 : index
    %594 = vector.load %arg17[%c14_202, %c128_203] : memref<16x256xf32, #tpu.memory_space<vmem>>, vector<2x128xf32>
    %595 = arith.truncf %562 : vector<2x32xf32> to vector<2x32xbf16>
    %cst_204 = arith.constant dense<0.000000e+00> : vector<2x128xf32>
    %596 = tpu.matmul %595, %556, %cst_204 {dimension_numbers = #tpu.dot_dimension_numbers<[1], [0], [0], [1], [0, 0, 1, 1], [], []>} : vector<2x32xbf16>, vector<32x128xbf16>, vector<2x128xf32> -> vector<2x128xf32>
    %597 = arith.addf %594, %596 : vector<2x128xf32>
    %598 = vector.extract_strided_slice %597 {offsets = [0, 0], sizes = [2, 32], strides = [1, 1]} : vector<2x128xf32> to vector<2x32xf32>
    %599 = arith.negf %598 : vector<2x32xf32>
    %600 = math.exp %599 : vector<2x32xf32>
    %cst_205 = arith.constant 1.000000e+00 : f32
    %601 = vector.broadcast %cst_205 : f32 to vector<2x32xf32>
    %602 = arith.addf %601, %600 : vector<2x32xf32>
    %603 = arith.divf %601, %602 : vector<2x32xf32>
    %604 = vector.extract_strided_slice %597 {offsets = [0, 32], sizes = [2, 32], strides = [1, 1]} : vector<2x128xf32> to vector<2x32xf32>
    %605 = arith.negf %604 : vector<2x32xf32>
    %606 = math.exp %605 : vector<2x32xf32>
    %cst_206 = arith.constant 1.000000e+00 : f32
    %607 = vector.broadcast %cst_206 : f32 to vector<2x32xf32>
    %608 = arith.addf %607, %606 : vector<2x32xf32>
    %609 = arith.divf %607, %608 : vector<2x32xf32>
    %610 = vector.extract_strided_slice %597 {offsets = [0, 64], sizes = [2, 32], strides = [1, 1]} : vector<2x128xf32> to vector<2x32xf32>
    %611 = math.tanh %610 : vector<2x32xf32>
    %612 = vector.extract_strided_slice %597 {offsets = [0, 96], sizes = [2, 32], strides = [1, 1]} : vector<2x128xf32> to vector<2x32xf32>
    %613 = arith.negf %612 : vector<2x32xf32>
    %614 = math.exp %613 : vector<2x32xf32>
    %cst_207 = arith.constant 1.000000e+00 : f32
    %615 = vector.broadcast %cst_207 : f32 to vector<2x32xf32>
    %616 = arith.addf %615, %614 : vector<2x32xf32>
    %617 = arith.divf %615, %616 : vector<2x32xf32>
    %618 = arith.mulf %609, %564 : vector<2x32xf32>
    %619 = arith.mulf %603, %611 : vector<2x32xf32>
    %620 = arith.addf %618, %619 : vector<2x32xf32>
    %621 = math.tanh %620 : vector<2x32xf32>
    %622 = arith.mulf %617, %621 : vector<2x32xf32>
    %623 = arith.addf %9, %593 : vector<2x32xf32>
    %624 = arith.addf %10, %622 : vector<2x32xf32>
    %c2_208 = arith.constant 2 : index
    %c0_209 = arith.constant 0 : index
    %625 = vector.load %arg17[%c2_208, %c0_209] : memref<16x256xf32, #tpu.memory_space<vmem>>, vector<2x128xf32>
    %626 = arith.truncf %593 : vector<2x32xf32> to vector<2x32xbf16>
    %cst_210 = arith.constant dense<0.000000e+00> : vector<2x128xf32>
    %627 = tpu.matmul %626, %555, %cst_210 {dimension_numbers = #tpu.dot_dimension_numbers<[1], [0], [0], [1], [0, 0, 1, 1], [], []>} : vector<2x32xbf16>, vector<32x128xbf16>, vector<2x128xf32> -> vector<2x128xf32>
    %628 = arith.addf %625, %627 : vector<2x128xf32>
    %629 = vector.extract_strided_slice %628 {offsets = [0, 0], sizes = [2, 32], strides = [1, 1]} : vector<2x128xf32> to vector<2x32xf32>
    %630 = arith.negf %629 : vector<2x32xf32>
    %631 = math.exp %630 : vector<2x32xf32>
    %cst_211 = arith.constant 1.000000e+00 : f32
    %632 = vector.broadcast %cst_211 : f32 to vector<2x32xf32>
    %633 = arith.addf %632, %631 : vector<2x32xf32>
    %634 = arith.divf %632, %633 : vector<2x32xf32>
    %635 = vector.extract_strided_slice %628 {offsets = [0, 32], sizes = [2, 32], strides = [1, 1]} : vector<2x128xf32> to vector<2x32xf32>
    %636 = arith.negf %635 : vector<2x32xf32>
    %637 = math.exp %636 : vector<2x32xf32>
    %cst_212 = arith.constant 1.000000e+00 : f32
    %638 = vector.broadcast %cst_212 : f32 to vector<2x32xf32>
    %639 = arith.addf %638, %637 : vector<2x32xf32>
    %640 = arith.divf %638, %639 : vector<2x32xf32>
    %641 = vector.extract_strided_slice %628 {offsets = [0, 64], sizes = [2, 32], strides = [1, 1]} : vector<2x128xf32> to vector<2x32xf32>
    %642 = math.tanh %641 : vector<2x32xf32>
    %643 = vector.extract_strided_slice %628 {offsets = [0, 96], sizes = [2, 32], strides = [1, 1]} : vector<2x128xf32> to vector<2x32xf32>
    %644 = arith.negf %643 : vector<2x32xf32>
    %645 = math.exp %644 : vector<2x32xf32>
    %cst_213 = arith.constant 1.000000e+00 : f32
    %646 = vector.broadcast %cst_213 : f32 to vector<2x32xf32>
    %647 = arith.addf %646, %645 : vector<2x32xf32>
    %648 = arith.divf %646, %647 : vector<2x32xf32>
    %649 = arith.mulf %640, %591 : vector<2x32xf32>
    %650 = arith.mulf %634, %642 : vector<2x32xf32>
    %651 = arith.addf %649, %650 : vector<2x32xf32>
    %652 = math.tanh %651 : vector<2x32xf32>
    %653 = arith.mulf %648, %652 : vector<2x32xf32>
    %c12_214 = arith.constant 12 : index
    %c128_215 = arith.constant 128 : index
    %654 = vector.load %arg17[%c12_214, %c128_215] : memref<16x256xf32, #tpu.memory_space<vmem>>, vector<2x128xf32>
    %655 = arith.truncf %622 : vector<2x32xf32> to vector<2x32xbf16>
    %cst_216 = arith.constant dense<0.000000e+00> : vector<2x128xf32>
    %656 = tpu.matmul %655, %556, %cst_216 {dimension_numbers = #tpu.dot_dimension_numbers<[1], [0], [0], [1], [0, 0, 1, 1], [], []>} : vector<2x32xbf16>, vector<32x128xbf16>, vector<2x128xf32> -> vector<2x128xf32>
    %657 = arith.addf %654, %656 : vector<2x128xf32>
    %658 = vector.extract_strided_slice %657 {offsets = [0, 0], sizes = [2, 32], strides = [1, 1]} : vector<2x128xf32> to vector<2x32xf32>
    %659 = arith.negf %658 : vector<2x32xf32>
    %660 = math.exp %659 : vector<2x32xf32>
    %cst_217 = arith.constant 1.000000e+00 : f32
    %661 = vector.broadcast %cst_217 : f32 to vector<2x32xf32>
    %662 = arith.addf %661, %660 : vector<2x32xf32>
    %663 = arith.divf %661, %662 : vector<2x32xf32>
    %664 = vector.extract_strided_slice %657 {offsets = [0, 32], sizes = [2, 32], strides = [1, 1]} : vector<2x128xf32> to vector<2x32xf32>
    %665 = arith.negf %664 : vector<2x32xf32>
    %666 = math.exp %665 : vector<2x32xf32>
    %cst_218 = arith.constant 1.000000e+00 : f32
    %667 = vector.broadcast %cst_218 : f32 to vector<2x32xf32>
    %668 = arith.addf %667, %666 : vector<2x32xf32>
    %669 = arith.divf %667, %668 : vector<2x32xf32>
    %670 = vector.extract_strided_slice %657 {offsets = [0, 64], sizes = [2, 32], strides = [1, 1]} : vector<2x128xf32> to vector<2x32xf32>
    %671 = math.tanh %670 : vector<2x32xf32>
    %672 = vector.extract_strided_slice %657 {offsets = [0, 96], sizes = [2, 32], strides = [1, 1]} : vector<2x128xf32> to vector<2x32xf32>
    %673 = arith.negf %672 : vector<2x32xf32>
    %674 = math.exp %673 : vector<2x32xf32>
    %cst_219 = arith.constant 1.000000e+00 : f32
    %675 = vector.broadcast %cst_219 : f32 to vector<2x32xf32>
    %676 = arith.addf %675, %674 : vector<2x32xf32>
    %677 = arith.divf %675, %676 : vector<2x32xf32>
    %678 = arith.mulf %669, %620 : vector<2x32xf32>
    %679 = arith.mulf %663, %671 : vector<2x32xf32>
    %680 = arith.addf %678, %679 : vector<2x32xf32>
    %681 = math.tanh %680 : vector<2x32xf32>
    %682 = arith.mulf %677, %681 : vector<2x32xf32>
    %683 = arith.addf %623, %653 : vector<2x32xf32>
    %684 = arith.addf %624, %682 : vector<2x32xf32>
    %c4_220 = arith.constant 4 : index
    %c0_221 = arith.constant 0 : index
    %685 = vector.load %arg17[%c4_220, %c0_221] : memref<16x256xf32, #tpu.memory_space<vmem>>, vector<2x128xf32>
    %686 = arith.truncf %653 : vector<2x32xf32> to vector<2x32xbf16>
    %cst_222 = arith.constant dense<0.000000e+00> : vector<2x128xf32>
    %687 = tpu.matmul %686, %555, %cst_222 {dimension_numbers = #tpu.dot_dimension_numbers<[1], [0], [0], [1], [0, 0, 1, 1], [], []>} : vector<2x32xbf16>, vector<32x128xbf16>, vector<2x128xf32> -> vector<2x128xf32>
    %688 = arith.addf %685, %687 : vector<2x128xf32>
    %689 = vector.extract_strided_slice %688 {offsets = [0, 0], sizes = [2, 32], strides = [1, 1]} : vector<2x128xf32> to vector<2x32xf32>
    %690 = arith.negf %689 : vector<2x32xf32>
    %691 = math.exp %690 : vector<2x32xf32>
    %cst_223 = arith.constant 1.000000e+00 : f32
    %692 = vector.broadcast %cst_223 : f32 to vector<2x32xf32>
    %693 = arith.addf %692, %691 : vector<2x32xf32>
    %694 = arith.divf %692, %693 : vector<2x32xf32>
    %695 = vector.extract_strided_slice %688 {offsets = [0, 32], sizes = [2, 32], strides = [1, 1]} : vector<2x128xf32> to vector<2x32xf32>
    %696 = arith.negf %695 : vector<2x32xf32>
    %697 = math.exp %696 : vector<2x32xf32>
    %cst_224 = arith.constant 1.000000e+00 : f32
    %698 = vector.broadcast %cst_224 : f32 to vector<2x32xf32>
    %699 = arith.addf %698, %697 : vector<2x32xf32>
    %700 = arith.divf %698, %699 : vector<2x32xf32>
    %701 = vector.extract_strided_slice %688 {offsets = [0, 64], sizes = [2, 32], strides = [1, 1]} : vector<2x128xf32> to vector<2x32xf32>
    %702 = math.tanh %701 : vector<2x32xf32>
    %703 = vector.extract_strided_slice %688 {offsets = [0, 96], sizes = [2, 32], strides = [1, 1]} : vector<2x128xf32> to vector<2x32xf32>
    %704 = arith.negf %703 : vector<2x32xf32>
    %705 = math.exp %704 : vector<2x32xf32>
    %cst_225 = arith.constant 1.000000e+00 : f32
    %706 = vector.broadcast %cst_225 : f32 to vector<2x32xf32>
    %707 = arith.addf %706, %705 : vector<2x32xf32>
    %708 = arith.divf %706, %707 : vector<2x32xf32>
    %709 = arith.mulf %700, %651 : vector<2x32xf32>
    %710 = arith.mulf %694, %702 : vector<2x32xf32>
    %711 = arith.addf %709, %710 : vector<2x32xf32>
    %712 = math.tanh %711 : vector<2x32xf32>
    %713 = arith.mulf %708, %712 : vector<2x32xf32>
    %c10_226 = arith.constant 10 : index
    %c128_227 = arith.constant 128 : index
    %714 = vector.load %arg17[%c10_226, %c128_227] : memref<16x256xf32, #tpu.memory_space<vmem>>, vector<2x128xf32>
    %715 = arith.truncf %682 : vector<2x32xf32> to vector<2x32xbf16>
    %cst_228 = arith.constant dense<0.000000e+00> : vector<2x128xf32>
    %716 = tpu.matmul %715, %556, %cst_228 {dimension_numbers = #tpu.dot_dimension_numbers<[1], [0], [0], [1], [0, 0, 1, 1], [], []>} : vector<2x32xbf16>, vector<32x128xbf16>, vector<2x128xf32> -> vector<2x128xf32>
    %717 = arith.addf %714, %716 : vector<2x128xf32>
    %718 = vector.extract_strided_slice %717 {offsets = [0, 0], sizes = [2, 32], strides = [1, 1]} : vector<2x128xf32> to vector<2x32xf32>
    %719 = arith.negf %718 : vector<2x32xf32>
    %720 = math.exp %719 : vector<2x32xf32>
    %cst_229 = arith.constant 1.000000e+00 : f32
    %721 = vector.broadcast %cst_229 : f32 to vector<2x32xf32>
    %722 = arith.addf %721, %720 : vector<2x32xf32>
    %723 = arith.divf %721, %722 : vector<2x32xf32>
    %724 = vector.extract_strided_slice %717 {offsets = [0, 32], sizes = [2, 32], strides = [1, 1]} : vector<2x128xf32> to vector<2x32xf32>
    %725 = arith.negf %724 : vector<2x32xf32>
    %726 = math.exp %725 : vector<2x32xf32>
    %cst_230 = arith.constant 1.000000e+00 : f32
    %727 = vector.broadcast %cst_230 : f32 to vector<2x32xf32>
    %728 = arith.addf %727, %726 : vector<2x32xf32>
    %729 = arith.divf %727, %728 : vector<2x32xf32>
    %730 = vector.extract_strided_slice %717 {offsets = [0, 64], sizes = [2, 32], strides = [1, 1]} : vector<2x128xf32> to vector<2x32xf32>
    %731 = math.tanh %730 : vector<2x32xf32>
    %732 = vector.extract_strided_slice %717 {offsets = [0, 96], sizes = [2, 32], strides = [1, 1]} : vector<2x128xf32> to vector<2x32xf32>
    %733 = arith.negf %732 : vector<2x32xf32>
    %734 = math.exp %733 : vector<2x32xf32>
    %cst_231 = arith.constant 1.000000e+00 : f32
    %735 = vector.broadcast %cst_231 : f32 to vector<2x32xf32>
    %736 = arith.addf %735, %734 : vector<2x32xf32>
    %737 = arith.divf %735, %736 : vector<2x32xf32>
    %738 = arith.mulf %729, %680 : vector<2x32xf32>
    %739 = arith.mulf %723, %731 : vector<2x32xf32>
    %740 = arith.addf %738, %739 : vector<2x32xf32>
    %741 = math.tanh %740 : vector<2x32xf32>
    %742 = arith.mulf %737, %741 : vector<2x32xf32>
    %743 = arith.addf %683, %713 : vector<2x32xf32>
    %744 = arith.addf %684, %742 : vector<2x32xf32>
    %c6_232 = arith.constant 6 : index
    %c0_233 = arith.constant 0 : index
    %745 = vector.load %arg17[%c6_232, %c0_233] : memref<16x256xf32, #tpu.memory_space<vmem>>, vector<2x128xf32>
    %746 = arith.truncf %713 : vector<2x32xf32> to vector<2x32xbf16>
    %cst_234 = arith.constant dense<0.000000e+00> : vector<2x128xf32>
    %747 = tpu.matmul %746, %555, %cst_234 {dimension_numbers = #tpu.dot_dimension_numbers<[1], [0], [0], [1], [0, 0, 1, 1], [], []>} : vector<2x32xbf16>, vector<32x128xbf16>, vector<2x128xf32> -> vector<2x128xf32>
    %748 = arith.addf %745, %747 : vector<2x128xf32>
    %749 = vector.extract_strided_slice %748 {offsets = [0, 0], sizes = [2, 32], strides = [1, 1]} : vector<2x128xf32> to vector<2x32xf32>
    %750 = arith.negf %749 : vector<2x32xf32>
    %751 = math.exp %750 : vector<2x32xf32>
    %cst_235 = arith.constant 1.000000e+00 : f32
    %752 = vector.broadcast %cst_235 : f32 to vector<2x32xf32>
    %753 = arith.addf %752, %751 : vector<2x32xf32>
    %754 = arith.divf %752, %753 : vector<2x32xf32>
    %755 = vector.extract_strided_slice %748 {offsets = [0, 32], sizes = [2, 32], strides = [1, 1]} : vector<2x128xf32> to vector<2x32xf32>
    %756 = arith.negf %755 : vector<2x32xf32>
    %757 = math.exp %756 : vector<2x32xf32>
    %cst_236 = arith.constant 1.000000e+00 : f32
    %758 = vector.broadcast %cst_236 : f32 to vector<2x32xf32>
    %759 = arith.addf %758, %757 : vector<2x32xf32>
    %760 = arith.divf %758, %759 : vector<2x32xf32>
    %761 = vector.extract_strided_slice %748 {offsets = [0, 64], sizes = [2, 32], strides = [1, 1]} : vector<2x128xf32> to vector<2x32xf32>
    %762 = math.tanh %761 : vector<2x32xf32>
    %763 = vector.extract_strided_slice %748 {offsets = [0, 96], sizes = [2, 32], strides = [1, 1]} : vector<2x128xf32> to vector<2x32xf32>
    %764 = arith.negf %763 : vector<2x32xf32>
    %765 = math.exp %764 : vector<2x32xf32>
    %cst_237 = arith.constant 1.000000e+00 : f32
    %766 = vector.broadcast %cst_237 : f32 to vector<2x32xf32>
    %767 = arith.addf %766, %765 : vector<2x32xf32>
    %768 = arith.divf %766, %767 : vector<2x32xf32>
    %769 = arith.mulf %760, %711 : vector<2x32xf32>
    %770 = arith.mulf %754, %762 : vector<2x32xf32>
    %771 = arith.addf %769, %770 : vector<2x32xf32>
    %772 = math.tanh %771 : vector<2x32xf32>
    %773 = arith.mulf %768, %772 : vector<2x32xf32>
    %c8_238 = arith.constant 8 : index
    %c128_239 = arith.constant 128 : index
    %774 = vector.load %arg17[%c8_238, %c128_239] : memref<16x256xf32, #tpu.memory_space<vmem>>, vector<2x128xf32>
    %775 = arith.truncf %742 : vector<2x32xf32> to vector<2x32xbf16>
    %cst_240 = arith.constant dense<0.000000e+00> : vector<2x128xf32>
    %776 = tpu.matmul %775, %556, %cst_240 {dimension_numbers = #tpu.dot_dimension_numbers<[1], [0], [0], [1], [0, 0, 1, 1], [], []>} : vector<2x32xbf16>, vector<32x128xbf16>, vector<2x128xf32> -> vector<2x128xf32>
    %777 = arith.addf %774, %776 : vector<2x128xf32>
    %778 = vector.extract_strided_slice %777 {offsets = [0, 0], sizes = [2, 32], strides = [1, 1]} : vector<2x128xf32> to vector<2x32xf32>
    %779 = arith.negf %778 : vector<2x32xf32>
    %780 = math.exp %779 : vector<2x32xf32>
    %cst_241 = arith.constant 1.000000e+00 : f32
    %781 = vector.broadcast %cst_241 : f32 to vector<2x32xf32>
    %782 = arith.addf %781, %780 : vector<2x32xf32>
    %783 = arith.divf %781, %782 : vector<2x32xf32>
    %784 = vector.extract_strided_slice %777 {offsets = [0, 32], sizes = [2, 32], strides = [1, 1]} : vector<2x128xf32> to vector<2x32xf32>
    %785 = arith.negf %784 : vector<2x32xf32>
    %786 = math.exp %785 : vector<2x32xf32>
    %cst_242 = arith.constant 1.000000e+00 : f32
    %787 = vector.broadcast %cst_242 : f32 to vector<2x32xf32>
    %788 = arith.addf %787, %786 : vector<2x32xf32>
    %789 = arith.divf %787, %788 : vector<2x32xf32>
    %790 = vector.extract_strided_slice %777 {offsets = [0, 64], sizes = [2, 32], strides = [1, 1]} : vector<2x128xf32> to vector<2x32xf32>
    %791 = math.tanh %790 : vector<2x32xf32>
    %792 = vector.extract_strided_slice %777 {offsets = [0, 96], sizes = [2, 32], strides = [1, 1]} : vector<2x128xf32> to vector<2x32xf32>
    %793 = arith.negf %792 : vector<2x32xf32>
    %794 = math.exp %793 : vector<2x32xf32>
    %cst_243 = arith.constant 1.000000e+00 : f32
    %795 = vector.broadcast %cst_243 : f32 to vector<2x32xf32>
    %796 = arith.addf %795, %794 : vector<2x32xf32>
    %797 = arith.divf %795, %796 : vector<2x32xf32>
    %798 = arith.mulf %789, %740 : vector<2x32xf32>
    %799 = arith.mulf %783, %791 : vector<2x32xf32>
    %800 = arith.addf %798, %799 : vector<2x32xf32>
    %801 = math.tanh %800 : vector<2x32xf32>
    %802 = arith.mulf %797, %801 : vector<2x32xf32>
    %803 = arith.addf %743, %773 : vector<2x32xf32>
    %804 = arith.addf %744, %802 : vector<2x32xf32>
    %c8_244 = arith.constant 8 : index
    %c0_245 = arith.constant 0 : index
    %805 = vector.load %arg17[%c8_244, %c0_245] : memref<16x256xf32, #tpu.memory_space<vmem>>, vector<2x128xf32>
    %806 = arith.truncf %773 : vector<2x32xf32> to vector<2x32xbf16>
    %cst_246 = arith.constant dense<0.000000e+00> : vector<2x128xf32>
    %807 = tpu.matmul %806, %555, %cst_246 {dimension_numbers = #tpu.dot_dimension_numbers<[1], [0], [0], [1], [0, 0, 1, 1], [], []>} : vector<2x32xbf16>, vector<32x128xbf16>, vector<2x128xf32> -> vector<2x128xf32>
    %808 = arith.addf %805, %807 : vector<2x128xf32>
    %809 = vector.extract_strided_slice %808 {offsets = [0, 0], sizes = [2, 32], strides = [1, 1]} : vector<2x128xf32> to vector<2x32xf32>
    %810 = arith.negf %809 : vector<2x32xf32>
    %811 = math.exp %810 : vector<2x32xf32>
    %cst_247 = arith.constant 1.000000e+00 : f32
    %812 = vector.broadcast %cst_247 : f32 to vector<2x32xf32>
    %813 = arith.addf %812, %811 : vector<2x32xf32>
    %814 = arith.divf %812, %813 : vector<2x32xf32>
    %815 = vector.extract_strided_slice %808 {offsets = [0, 32], sizes = [2, 32], strides = [1, 1]} : vector<2x128xf32> to vector<2x32xf32>
    %816 = arith.negf %815 : vector<2x32xf32>
    %817 = math.exp %816 : vector<2x32xf32>
    %cst_248 = arith.constant 1.000000e+00 : f32
    %818 = vector.broadcast %cst_248 : f32 to vector<2x32xf32>
    %819 = arith.addf %818, %817 : vector<2x32xf32>
    %820 = arith.divf %818, %819 : vector<2x32xf32>
    %821 = vector.extract_strided_slice %808 {offsets = [0, 64], sizes = [2, 32], strides = [1, 1]} : vector<2x128xf32> to vector<2x32xf32>
    %822 = math.tanh %821 : vector<2x32xf32>
    %823 = vector.extract_strided_slice %808 {offsets = [0, 96], sizes = [2, 32], strides = [1, 1]} : vector<2x128xf32> to vector<2x32xf32>
    %824 = arith.negf %823 : vector<2x32xf32>
    %825 = math.exp %824 : vector<2x32xf32>
    %cst_249 = arith.constant 1.000000e+00 : f32
    %826 = vector.broadcast %cst_249 : f32 to vector<2x32xf32>
    %827 = arith.addf %826, %825 : vector<2x32xf32>
    %828 = arith.divf %826, %827 : vector<2x32xf32>
    %829 = arith.mulf %820, %771 : vector<2x32xf32>
    %830 = arith.mulf %814, %822 : vector<2x32xf32>
    %831 = arith.addf %829, %830 : vector<2x32xf32>
    %832 = math.tanh %831 : vector<2x32xf32>
    %833 = arith.mulf %828, %832 : vector<2x32xf32>
    %c6_250 = arith.constant 6 : index
    %c128_251 = arith.constant 128 : index
    %834 = vector.load %arg17[%c6_250, %c128_251] : memref<16x256xf32, #tpu.memory_space<vmem>>, vector<2x128xf32>
    %835 = arith.truncf %802 : vector<2x32xf32> to vector<2x32xbf16>
    %cst_252 = arith.constant dense<0.000000e+00> : vector<2x128xf32>
    %836 = tpu.matmul %835, %556, %cst_252 {dimension_numbers = #tpu.dot_dimension_numbers<[1], [0], [0], [1], [0, 0, 1, 1], [], []>} : vector<2x32xbf16>, vector<32x128xbf16>, vector<2x128xf32> -> vector<2x128xf32>
    %837 = arith.addf %834, %836 : vector<2x128xf32>
    %838 = vector.extract_strided_slice %837 {offsets = [0, 0], sizes = [2, 32], strides = [1, 1]} : vector<2x128xf32> to vector<2x32xf32>
    %839 = arith.negf %838 : vector<2x32xf32>
    %840 = math.exp %839 : vector<2x32xf32>
    %cst_253 = arith.constant 1.000000e+00 : f32
    %841 = vector.broadcast %cst_253 : f32 to vector<2x32xf32>
    %842 = arith.addf %841, %840 : vector<2x32xf32>
    %843 = arith.divf %841, %842 : vector<2x32xf32>
    %844 = vector.extract_strided_slice %837 {offsets = [0, 32], sizes = [2, 32], strides = [1, 1]} : vector<2x128xf32> to vector<2x32xf32>
    %845 = arith.negf %844 : vector<2x32xf32>
    %846 = math.exp %845 : vector<2x32xf32>
    %cst_254 = arith.constant 1.000000e+00 : f32
    %847 = vector.broadcast %cst_254 : f32 to vector<2x32xf32>
    %848 = arith.addf %847, %846 : vector<2x32xf32>
    %849 = arith.divf %847, %848 : vector<2x32xf32>
    %850 = vector.extract_strided_slice %837 {offsets = [0, 64], sizes = [2, 32], strides = [1, 1]} : vector<2x128xf32> to vector<2x32xf32>
    %851 = math.tanh %850 : vector<2x32xf32>
    %852 = vector.extract_strided_slice %837 {offsets = [0, 96], sizes = [2, 32], strides = [1, 1]} : vector<2x128xf32> to vector<2x32xf32>
    %853 = arith.negf %852 : vector<2x32xf32>
    %854 = math.exp %853 : vector<2x32xf32>
    %cst_255 = arith.constant 1.000000e+00 : f32
    %855 = vector.broadcast %cst_255 : f32 to vector<2x32xf32>
    %856 = arith.addf %855, %854 : vector<2x32xf32>
    %857 = arith.divf %855, %856 : vector<2x32xf32>
    %858 = arith.mulf %849, %800 : vector<2x32xf32>
    %859 = arith.mulf %843, %851 : vector<2x32xf32>
    %860 = arith.addf %858, %859 : vector<2x32xf32>
    %861 = math.tanh %860 : vector<2x32xf32>
    %862 = arith.mulf %857, %861 : vector<2x32xf32>
    %863 = arith.addf %803, %833 : vector<2x32xf32>
    %864 = arith.addf %804, %862 : vector<2x32xf32>
    %c10_256 = arith.constant 10 : index
    %c0_257 = arith.constant 0 : index
    %865 = vector.load %arg17[%c10_256, %c0_257] : memref<16x256xf32, #tpu.memory_space<vmem>>, vector<2x128xf32>
    %866 = arith.truncf %833 : vector<2x32xf32> to vector<2x32xbf16>
    %cst_258 = arith.constant dense<0.000000e+00> : vector<2x128xf32>
    %867 = tpu.matmul %866, %555, %cst_258 {dimension_numbers = #tpu.dot_dimension_numbers<[1], [0], [0], [1], [0, 0, 1, 1], [], []>} : vector<2x32xbf16>, vector<32x128xbf16>, vector<2x128xf32> -> vector<2x128xf32>
    %868 = arith.addf %865, %867 : vector<2x128xf32>
    %869 = vector.extract_strided_slice %868 {offsets = [0, 0], sizes = [2, 32], strides = [1, 1]} : vector<2x128xf32> to vector<2x32xf32>
    %870 = arith.negf %869 : vector<2x32xf32>
    %871 = math.exp %870 : vector<2x32xf32>
    %cst_259 = arith.constant 1.000000e+00 : f32
    %872 = vector.broadcast %cst_259 : f32 to vector<2x32xf32>
    %873 = arith.addf %872, %871 : vector<2x32xf32>
    %874 = arith.divf %872, %873 : vector<2x32xf32>
    %875 = vector.extract_strided_slice %868 {offsets = [0, 32], sizes = [2, 32], strides = [1, 1]} : vector<2x128xf32> to vector<2x32xf32>
    %876 = arith.negf %875 : vector<2x32xf32>
    %877 = math.exp %876 : vector<2x32xf32>
    %cst_260 = arith.constant 1.000000e+00 : f32
    %878 = vector.broadcast %cst_260 : f32 to vector<2x32xf32>
    %879 = arith.addf %878, %877 : vector<2x32xf32>
    %880 = arith.divf %878, %879 : vector<2x32xf32>
    %881 = vector.extract_strided_slice %868 {offsets = [0, 64], sizes = [2, 32], strides = [1, 1]} : vector<2x128xf32> to vector<2x32xf32>
    %882 = math.tanh %881 : vector<2x32xf32>
    %883 = vector.extract_strided_slice %868 {offsets = [0, 96], sizes = [2, 32], strides = [1, 1]} : vector<2x128xf32> to vector<2x32xf32>
    %884 = arith.negf %883 : vector<2x32xf32>
    %885 = math.exp %884 : vector<2x32xf32>
    %cst_261 = arith.constant 1.000000e+00 : f32
    %886 = vector.broadcast %cst_261 : f32 to vector<2x32xf32>
    %887 = arith.addf %886, %885 : vector<2x32xf32>
    %888 = arith.divf %886, %887 : vector<2x32xf32>
    %889 = arith.mulf %880, %831 : vector<2x32xf32>
    %890 = arith.mulf %874, %882 : vector<2x32xf32>
    %891 = arith.addf %889, %890 : vector<2x32xf32>
    %892 = math.tanh %891 : vector<2x32xf32>
    %893 = arith.mulf %888, %892 : vector<2x32xf32>
    %c4_262 = arith.constant 4 : index
    %c128_263 = arith.constant 128 : index
    %894 = vector.load %arg17[%c4_262, %c128_263] : memref<16x256xf32, #tpu.memory_space<vmem>>, vector<2x128xf32>
    %895 = arith.truncf %862 : vector<2x32xf32> to vector<2x32xbf16>
    %cst_264 = arith.constant dense<0.000000e+00> : vector<2x128xf32>
    %896 = tpu.matmul %895, %556, %cst_264 {dimension_numbers = #tpu.dot_dimension_numbers<[1], [0], [0], [1], [0, 0, 1, 1], [], []>} : vector<2x32xbf16>, vector<32x128xbf16>, vector<2x128xf32> -> vector<2x128xf32>
    %897 = arith.addf %894, %896 : vector<2x128xf32>
    %898 = vector.extract_strided_slice %897 {offsets = [0, 0], sizes = [2, 32], strides = [1, 1]} : vector<2x128xf32> to vector<2x32xf32>
    %899 = arith.negf %898 : vector<2x32xf32>
    %900 = math.exp %899 : vector<2x32xf32>
    %cst_265 = arith.constant 1.000000e+00 : f32
    %901 = vector.broadcast %cst_265 : f32 to vector<2x32xf32>
    %902 = arith.addf %901, %900 : vector<2x32xf32>
    %903 = arith.divf %901, %902 : vector<2x32xf32>
    %904 = vector.extract_strided_slice %897 {offsets = [0, 32], sizes = [2, 32], strides = [1, 1]} : vector<2x128xf32> to vector<2x32xf32>
    %905 = arith.negf %904 : vector<2x32xf32>
    %906 = math.exp %905 : vector<2x32xf32>
    %cst_266 = arith.constant 1.000000e+00 : f32
    %907 = vector.broadcast %cst_266 : f32 to vector<2x32xf32>
    %908 = arith.addf %907, %906 : vector<2x32xf32>
    %909 = arith.divf %907, %908 : vector<2x32xf32>
    %910 = vector.extract_strided_slice %897 {offsets = [0, 64], sizes = [2, 32], strides = [1, 1]} : vector<2x128xf32> to vector<2x32xf32>
    %911 = math.tanh %910 : vector<2x32xf32>
    %912 = vector.extract_strided_slice %897 {offsets = [0, 96], sizes = [2, 32], strides = [1, 1]} : vector<2x128xf32> to vector<2x32xf32>
    %913 = arith.negf %912 : vector<2x32xf32>
    %914 = math.exp %913 : vector<2x32xf32>
    %cst_267 = arith.constant 1.000000e+00 : f32
    %915 = vector.broadcast %cst_267 : f32 to vector<2x32xf32>
    %916 = arith.addf %915, %914 : vector<2x32xf32>
    %917 = arith.divf %915, %916 : vector<2x32xf32>
    %918 = arith.mulf %909, %860 : vector<2x32xf32>
    %919 = arith.mulf %903, %911 : vector<2x32xf32>
    %920 = arith.addf %918, %919 : vector<2x32xf32>
    %921 = math.tanh %920 : vector<2x32xf32>
    %922 = arith.mulf %917, %921 : vector<2x32xf32>
    %923 = arith.addf %863, %893 : vector<2x32xf32>
    %924 = arith.addf %864, %922 : vector<2x32xf32>
    %c12_268 = arith.constant 12 : index
    %c0_269 = arith.constant 0 : index
    %925 = vector.load %arg17[%c12_268, %c0_269] : memref<16x256xf32, #tpu.memory_space<vmem>>, vector<2x128xf32>
    %926 = arith.truncf %893 : vector<2x32xf32> to vector<2x32xbf16>
    %cst_270 = arith.constant dense<0.000000e+00> : vector<2x128xf32>
    %927 = tpu.matmul %926, %555, %cst_270 {dimension_numbers = #tpu.dot_dimension_numbers<[1], [0], [0], [1], [0, 0, 1, 1], [], []>} : vector<2x32xbf16>, vector<32x128xbf16>, vector<2x128xf32> -> vector<2x128xf32>
    %928 = arith.addf %925, %927 : vector<2x128xf32>
    %929 = vector.extract_strided_slice %928 {offsets = [0, 0], sizes = [2, 32], strides = [1, 1]} : vector<2x128xf32> to vector<2x32xf32>
    %930 = arith.negf %929 : vector<2x32xf32>
    %931 = math.exp %930 : vector<2x32xf32>
    %cst_271 = arith.constant 1.000000e+00 : f32
    %932 = vector.broadcast %cst_271 : f32 to vector<2x32xf32>
    %933 = arith.addf %932, %931 : vector<2x32xf32>
    %934 = arith.divf %932, %933 : vector<2x32xf32>
    %935 = vector.extract_strided_slice %928 {offsets = [0, 32], sizes = [2, 32], strides = [1, 1]} : vector<2x128xf32> to vector<2x32xf32>
    %936 = arith.negf %935 : vector<2x32xf32>
    %937 = math.exp %936 : vector<2x32xf32>
    %cst_272 = arith.constant 1.000000e+00 : f32
    %938 = vector.broadcast %cst_272 : f32 to vector<2x32xf32>
    %939 = arith.addf %938, %937 : vector<2x32xf32>
    %940 = arith.divf %938, %939 : vector<2x32xf32>
    %941 = vector.extract_strided_slice %928 {offsets = [0, 64], sizes = [2, 32], strides = [1, 1]} : vector<2x128xf32> to vector<2x32xf32>
    %942 = math.tanh %941 : vector<2x32xf32>
    %943 = vector.extract_strided_slice %928 {offsets = [0, 96], sizes = [2, 32], strides = [1, 1]} : vector<2x128xf32> to vector<2x32xf32>
    %944 = arith.negf %943 : vector<2x32xf32>
    %945 = math.exp %944 : vector<2x32xf32>
    %cst_273 = arith.constant 1.000000e+00 : f32
    %946 = vector.broadcast %cst_273 : f32 to vector<2x32xf32>
    %947 = arith.addf %946, %945 : vector<2x32xf32>
    %948 = arith.divf %946, %947 : vector<2x32xf32>
    %949 = arith.mulf %940, %891 : vector<2x32xf32>
    %950 = arith.mulf %934, %942 : vector<2x32xf32>
    %951 = arith.addf %949, %950 : vector<2x32xf32>
    %952 = math.tanh %951 : vector<2x32xf32>
    %953 = arith.mulf %948, %952 : vector<2x32xf32>
    %c2_274 = arith.constant 2 : index
    %c128_275 = arith.constant 128 : index
    %954 = vector.load %arg17[%c2_274, %c128_275] : memref<16x256xf32, #tpu.memory_space<vmem>>, vector<2x128xf32>
    %955 = arith.truncf %922 : vector<2x32xf32> to vector<2x32xbf16>
    %cst_276 = arith.constant dense<0.000000e+00> : vector<2x128xf32>
    %956 = tpu.matmul %955, %556, %cst_276 {dimension_numbers = #tpu.dot_dimension_numbers<[1], [0], [0], [1], [0, 0, 1, 1], [], []>} : vector<2x32xbf16>, vector<32x128xbf16>, vector<2x128xf32> -> vector<2x128xf32>
    %957 = arith.addf %954, %956 : vector<2x128xf32>
    %958 = vector.extract_strided_slice %957 {offsets = [0, 0], sizes = [2, 32], strides = [1, 1]} : vector<2x128xf32> to vector<2x32xf32>
    %959 = arith.negf %958 : vector<2x32xf32>
    %960 = math.exp %959 : vector<2x32xf32>
    %cst_277 = arith.constant 1.000000e+00 : f32
    %961 = vector.broadcast %cst_277 : f32 to vector<2x32xf32>
    %962 = arith.addf %961, %960 : vector<2x32xf32>
    %963 = arith.divf %961, %962 : vector<2x32xf32>
    %964 = vector.extract_strided_slice %957 {offsets = [0, 32], sizes = [2, 32], strides = [1, 1]} : vector<2x128xf32> to vector<2x32xf32>
    %965 = arith.negf %964 : vector<2x32xf32>
    %966 = math.exp %965 : vector<2x32xf32>
    %cst_278 = arith.constant 1.000000e+00 : f32
    %967 = vector.broadcast %cst_278 : f32 to vector<2x32xf32>
    %968 = arith.addf %967, %966 : vector<2x32xf32>
    %969 = arith.divf %967, %968 : vector<2x32xf32>
    %970 = vector.extract_strided_slice %957 {offsets = [0, 64], sizes = [2, 32], strides = [1, 1]} : vector<2x128xf32> to vector<2x32xf32>
    %971 = math.tanh %970 : vector<2x32xf32>
    %972 = vector.extract_strided_slice %957 {offsets = [0, 96], sizes = [2, 32], strides = [1, 1]} : vector<2x128xf32> to vector<2x32xf32>
    %973 = arith.negf %972 : vector<2x32xf32>
    %974 = math.exp %973 : vector<2x32xf32>
    %cst_279 = arith.constant 1.000000e+00 : f32
    %975 = vector.broadcast %cst_279 : f32 to vector<2x32xf32>
    %976 = arith.addf %975, %974 : vector<2x32xf32>
    %977 = arith.divf %975, %976 : vector<2x32xf32>
    %978 = arith.mulf %969, %920 : vector<2x32xf32>
    %979 = arith.mulf %963, %971 : vector<2x32xf32>
    %980 = arith.addf %978, %979 : vector<2x32xf32>
    %981 = math.tanh %980 : vector<2x32xf32>
    %982 = arith.mulf %977, %981 : vector<2x32xf32>
    %983 = arith.addf %923, %953 : vector<2x32xf32>
    %984 = arith.addf %924, %982 : vector<2x32xf32>
    %c14_280 = arith.constant 14 : index
    %c0_281 = arith.constant 0 : index
    %985 = vector.load %arg17[%c14_280, %c0_281] : memref<16x256xf32, #tpu.memory_space<vmem>>, vector<2x128xf32>
    %986 = arith.truncf %953 : vector<2x32xf32> to vector<2x32xbf16>
    %cst_282 = arith.constant dense<0.000000e+00> : vector<2x128xf32>
    %987 = tpu.matmul %986, %555, %cst_282 {dimension_numbers = #tpu.dot_dimension_numbers<[1], [0], [0], [1], [0, 0, 1, 1], [], []>} : vector<2x32xbf16>, vector<32x128xbf16>, vector<2x128xf32> -> vector<2x128xf32>
    %988 = arith.addf %985, %987 : vector<2x128xf32>
    %989 = vector.extract_strided_slice %988 {offsets = [0, 0], sizes = [2, 32], strides = [1, 1]} : vector<2x128xf32> to vector<2x32xf32>
    %990 = arith.negf %989 : vector<2x32xf32>
    %991 = math.exp %990 : vector<2x32xf32>
    %cst_283 = arith.constant 1.000000e+00 : f32
    %992 = vector.broadcast %cst_283 : f32 to vector<2x32xf32>
    %993 = arith.addf %992, %991 : vector<2x32xf32>
    %994 = arith.divf %992, %993 : vector<2x32xf32>
    %995 = vector.extract_strided_slice %988 {offsets = [0, 32], sizes = [2, 32], strides = [1, 1]} : vector<2x128xf32> to vector<2x32xf32>
    %996 = arith.negf %995 : vector<2x32xf32>
    %997 = math.exp %996 : vector<2x32xf32>
    %cst_284 = arith.constant 1.000000e+00 : f32
    %998 = vector.broadcast %cst_284 : f32 to vector<2x32xf32>
    %999 = arith.addf %998, %997 : vector<2x32xf32>
    %1000 = arith.divf %998, %999 : vector<2x32xf32>
    %1001 = vector.extract_strided_slice %988 {offsets = [0, 64], sizes = [2, 32], strides = [1, 1]} : vector<2x128xf32> to vector<2x32xf32>
    %1002 = math.tanh %1001 : vector<2x32xf32>
    %1003 = vector.extract_strided_slice %988 {offsets = [0, 96], sizes = [2, 32], strides = [1, 1]} : vector<2x128xf32> to vector<2x32xf32>
    %1004 = arith.negf %1003 : vector<2x32xf32>
    %1005 = math.exp %1004 : vector<2x32xf32>
    %cst_285 = arith.constant 1.000000e+00 : f32
    %1006 = vector.broadcast %cst_285 : f32 to vector<2x32xf32>
    %1007 = arith.addf %1006, %1005 : vector<2x32xf32>
    %1008 = arith.divf %1006, %1007 : vector<2x32xf32>
    %1009 = arith.mulf %1000, %951 : vector<2x32xf32>
    %1010 = arith.mulf %994, %1002 : vector<2x32xf32>
    %1011 = arith.addf %1009, %1010 : vector<2x32xf32>
    %1012 = math.tanh %1011 : vector<2x32xf32>
    %1013 = arith.mulf %1008, %1012 : vector<2x32xf32>
    %c0_286 = arith.constant 0 : index
    %c128_287 = arith.constant 128 : index
    %1014 = vector.load %arg17[%c0_286, %c128_287] : memref<16x256xf32, #tpu.memory_space<vmem>>, vector<2x128xf32>
    %1015 = arith.truncf %982 : vector<2x32xf32> to vector<2x32xbf16>
    %cst_288 = arith.constant dense<0.000000e+00> : vector<2x128xf32>
    %1016 = tpu.matmul %1015, %556, %cst_288 {dimension_numbers = #tpu.dot_dimension_numbers<[1], [0], [0], [1], [0, 0, 1, 1], [], []>} : vector<2x32xbf16>, vector<32x128xbf16>, vector<2x128xf32> -> vector<2x128xf32>
    %1017 = arith.addf %1014, %1016 : vector<2x128xf32>
    %1018 = vector.extract_strided_slice %1017 {offsets = [0, 0], sizes = [2, 32], strides = [1, 1]} : vector<2x128xf32> to vector<2x32xf32>
    %1019 = arith.negf %1018 : vector<2x32xf32>
    %1020 = math.exp %1019 : vector<2x32xf32>
    %cst_289 = arith.constant 1.000000e+00 : f32
    %1021 = vector.broadcast %cst_289 : f32 to vector<2x32xf32>
    %1022 = arith.addf %1021, %1020 : vector<2x32xf32>
    %1023 = arith.divf %1021, %1022 : vector<2x32xf32>
    %1024 = vector.extract_strided_slice %1017 {offsets = [0, 32], sizes = [2, 32], strides = [1, 1]} : vector<2x128xf32> to vector<2x32xf32>
    %1025 = arith.negf %1024 : vector<2x32xf32>
    %1026 = math.exp %1025 : vector<2x32xf32>
    %cst_290 = arith.constant 1.000000e+00 : f32
    %1027 = vector.broadcast %cst_290 : f32 to vector<2x32xf32>
    %1028 = arith.addf %1027, %1026 : vector<2x32xf32>
    %1029 = arith.divf %1027, %1028 : vector<2x32xf32>
    %1030 = vector.extract_strided_slice %1017 {offsets = [0, 64], sizes = [2, 32], strides = [1, 1]} : vector<2x128xf32> to vector<2x32xf32>
    %1031 = math.tanh %1030 : vector<2x32xf32>
    %1032 = vector.extract_strided_slice %1017 {offsets = [0, 96], sizes = [2, 32], strides = [1, 1]} : vector<2x128xf32> to vector<2x32xf32>
    %1033 = arith.negf %1032 : vector<2x32xf32>
    %1034 = math.exp %1033 : vector<2x32xf32>
    %cst_291 = arith.constant 1.000000e+00 : f32
    %1035 = vector.broadcast %cst_291 : f32 to vector<2x32xf32>
    %1036 = arith.addf %1035, %1034 : vector<2x32xf32>
    %1037 = arith.divf %1035, %1036 : vector<2x32xf32>
    %1038 = arith.mulf %1029, %980 : vector<2x32xf32>
    %1039 = arith.mulf %1023, %1031 : vector<2x32xf32>
    %1040 = arith.addf %1038, %1039 : vector<2x32xf32>
    %1041 = math.tanh %1040 : vector<2x32xf32>
    %1042 = arith.mulf %1037, %1041 : vector<2x32xf32>
    %1043 = arith.addf %983, %1013 : vector<2x32xf32>
    %1044 = arith.addf %984, %1042 : vector<2x32xf32>
    %cst_292 = arith.constant 1.250000e-01 : f32
    %1045 = vector.broadcast %cst_292 : f32 to vector<2x32xf32>
    %1046 = arith.mulf %1043, %1045 : vector<2x32xf32>
    %cst_293 = arith.constant 1.250000e-01 : f32
    %1047 = vector.broadcast %cst_293 : f32 to vector<2x32xf32>
    %1048 = arith.mulf %1044, %1047 : vector<2x32xf32>
    %c0_294 = arith.constant 0 : index
    %c0_295 = arith.constant 0 : index
    %1049 = vector.load %arg12[%c0_294, %c0_295] : memref<64x128xf32, #tpu.memory_space<vmem>>, vector<32x128xf32>
    %cst_296 = arith.constant dense<0.000000e+00> : vector<2x128xf32>
    %1050 = tpu.matmul %1046, %1049, %cst_296 {dimension_numbers = #tpu.dot_dimension_numbers<[1], [0], [0], [1], [0, 0, 1, 1], [], []>} : vector<2x32xf32>, vector<32x128xf32>, vector<2x128xf32> -> vector<2x128xf32>
    %c32_297 = arith.constant 32 : index
    %c0_298 = arith.constant 0 : index
    %1051 = vector.load %arg12[%c32_297, %c0_298] : memref<64x128xf32, #tpu.memory_space<vmem>>, vector<32x128xf32>
    %cst_299 = arith.constant dense<0.000000e+00> : vector<2x128xf32>
    %1052 = tpu.matmul %1048, %1051, %cst_299 {dimension_numbers = #tpu.dot_dimension_numbers<[1], [0], [0], [1], [0, 0, 1, 1], [], []>} : vector<2x32xf32>, vector<32x128xf32>, vector<2x128xf32> -> vector<2x128xf32>
    %1053 = arith.addf %1050, %1052 : vector<2x128xf32>
    %c0_300 = arith.constant 0 : index
    %c0_301 = arith.constant 0 : index
    %1054 = vector.load %arg13[%c0_300, %c0_301] : memref<1x128xf32, #tpu.memory_space<vmem>>, vector<1x128xf32>
    %1055 = vector.broadcast %1054 : vector<1x128xf32> to vector<2x128xf32>
    %1056 = arith.addf %1053, %1055 : vector<2x128xf32>
    %c0_302 = arith.constant 0 : index
    %c0_303 = arith.constant 0 : index
    %1057 = vector.load %arg14[%c0_302, %c0_303] : memref<128x16xf32, #tpu.memory_space<vmem>>, vector<128x16xf32>
    %cst_304 = arith.constant dense<0.000000e+00> : vector<2x16xf32>
    %1058 = tpu.matmul %1056, %1057, %cst_304 {dimension_numbers = #tpu.dot_dimension_numbers<[1], [0], [0], [1], [0, 0, 1, 1], [], []>} : vector<2x128xf32>, vector<128x16xf32>, vector<2x16xf32> -> vector<2x16xf32>
    %c0_305 = arith.constant 0 : index
    %c0_306 = arith.constant 0 : index
    %1059 = vector.load %arg15[%c0_305, %c0_306] : memref<1x16xf32, #tpu.memory_space<vmem>>, vector<1x16xf32>
    %1060 = vector.broadcast %1059 : vector<1x16xf32> to vector<2x16xf32>
    %1061 = arith.addf %1058, %1060 : vector<2x16xf32>
    %c0_307 = arith.constant 0 : index
    %c0_308 = arith.constant 0 : index
    %1062 = vector.load %arg16[%c0_307, %c0_308] : memref<2x16xf32, #tpu.memory_space<vmem>>, vector<2x16xf32>
    tpu.vector_store %arg16[%c0_307, %c0_308], %1061 {strides = array<i32>} : memref<2x16xf32, #tpu.memory_space<vmem>>, vector<2x16xf32>,
    return
  }
  func.func @transform_0(%arg0: i32) -> (i32, i32) {
    %c0_i32 = arith.constant 0 : i32
    %c0_i32_0 = arith.constant 0 : i32
    %c0_i32_1 = arith.constant 0 : i32
    return %c0_i32, %c0_i32_0 : i32, i32
  }
  func.func @transform_1(%arg0: i32) -> (i32, i32) {
    %c0_i32 = arith.constant 0 : i32
    %c0_i32_0 = arith.constant 0 : i32
    %c0_i32_1 = arith.constant 0 : i32
    return %c0_i32, %c0_i32_0 : i32, i32
  }
  func.func @transform_2(%arg0: i32) -> (i32, i32) {
    %c0_i32 = arith.constant 0 : i32
    %c0_i32_0 = arith.constant 0 : i32
    %c0_i32_1 = arith.constant 0 : i32
    return %c0_i32, %c0_i32_0 : i32, i32
  }
  func.func @transform_3(%arg0: i32) -> (i32, i32) {
    %c0_i32 = arith.constant 0 : i32
    %c0_i32_0 = arith.constant 0 : i32
    %c0_i32_1 = arith.constant 0 : i32
    return %c0_i32, %c0_i32_0 : i32, i32
  }
  func.func @transform_4(%arg0: i32) -> (i32, i32) {
    %c0_i32 = arith.constant 0 : i32
    %c0_i32_0 = arith.constant 0 : i32
    %c0_i32_1 = arith.constant 0 : i32
    return %c0_i32, %c0_i32_0 : i32, i32
  }
  func.func @transform_5(%arg0: i32) -> (i32, i32) {
    %c0_i32 = arith.constant 0 : i32
    %c0_i32_0 = arith.constant 0 : i32
    %c0_i32_1 = arith.constant 0 : i32
    return %c0_i32, %c0_i32_0 : i32, i32
  }
  func.func @transform_6(%arg0: i32) -> (i32, i32) {
    %c0_i32 = arith.constant 0 : i32
    %c0_i32_0 = arith.constant 0 : i32
    %c0_i32_1 = arith.constant 0 : i32
    return %c0_i32, %c0_i32_0 : i32, i32
  }
  func.func @transform_7(%arg0: i32) -> (i32, i32) {
    %c0_i32 = arith.constant 0 : i32
    %c0_i32_0 = arith.constant 0 : i32
    %c0_i32_1 = arith.constant 0 : i32
    return %c0_i32, %c0_i32_0 : i32, i32
  }
  func.func @transform_8(%arg0: i32) -> (i32, i32) {
    %c0_i32 = arith.constant 0 : i32
    %c0_i32_0 = arith.constant 0 : i32
    %c0_i32_1 = arith.constant 0 : i32
    return %c0_i32, %c0_i32_0 : i32, i32
  }
  func.func @transform_9(%arg0: i32) -> (i32, i32, i32) {
    %c0_i32 = arith.constant 0 : i32
    %c0_i32_0 = arith.constant 0 : i32
    %c0_i32_1 = arith.constant 0 : i32
    %c0_i32_2 = arith.constant 0 : i32
    return %c0_i32, %c0_i32_0, %c0_i32_1 : i32, i32, i32
  }
  func.func @transform_10(%arg0: i32) -> (i32, i32, i32) {
    %c0_i32 = arith.constant 0 : i32
    %c0_i32_0 = arith.constant 0 : i32
    %c0_i32_1 = arith.constant 0 : i32
    %c0_i32_2 = arith.constant 0 : i32
    return %c0_i32, %c0_i32_0, %c0_i32_1 : i32, i32, i32
  }
  func.func @transform_11(%arg0: i32) -> (i32, i32) {
    %c0_i32 = arith.constant 0 : i32
    %c0_i32_0 = arith.constant 0 : i32
    %c0_i32_1 = arith.constant 0 : i32
    return %c0_i32, %c0_i32_0 : i32, i32
  }
  func.func @transform_12(%arg0: i32) -> (i32, i32) {
    %c0_i32 = arith.constant 0 : i32
    %c0_i32_0 = arith.constant 0 : i32
    %c0_i32_1 = arith.constant 0 : i32
    return %c0_i32, %c0_i32_0 : i32, i32
  }
  func.func @transform_13(%arg0: i32) -> (i32, i32) {
    %c0_i32 = arith.constant 0 : i32
    %c0_i32_0 = arith.constant 0 : i32
    %c0_i32_1 = arith.constant 0 : i32
    return %c0_i32, %c0_i32_0 : i32, i32
  }
  func.func @transform_14(%arg0: i32) -> (i32, i32) {
    %c0_i32 = arith.constant 0 : i32
    %c0_i32_0 = arith.constant 0 : i32
    %c0_i32_1 = arith.constant 0 : i32
    return %c0_i32, %c0_i32_0 : i32, i32
  }
  func.func @transform_15(%arg0: i32) -> (i32, i32) {
    %c0_i32 = arith.constant 0 : i32
    %c0_i32_0 = arith.constant 0 : i32
    %c0_i32_1 = arith.constant 0 : i32
    return %c0_i32, %c0_i32_0 : i32, i32
  }
}

</mosaic_0001>

<bundles_post_ra>
// kernel: vgg_face_sequence_forward.1
= control target key start
LH: loop header
LB: loop body
LE: loop exit
PB: predicated region body
PF: predicated region fallthrough
CT: control target
= control target key end

     0   :  { %20 = vsyncpa [#allocation5], 0  ;;  %s10238_s0 = inlined_call_operand.vmem [shape: f32[16,4096], index: 0, kind: input, shape index: {}]   ;;  %s10239_s1 = inlined_call_operand.vmem [shape: bf16[4096,128], index: 1, kind: input, shape index: {}]   ;;  %s10240_s2 = inlined_call_operand.vmem [shape: f32[1,128], index: 2, kind: input, shape index: {}]   ;;  %s10241_s3 = inlined_call_operand.vmem [shape: bf16[128,256], index: 3, kind: input, shape index: {}]   ;;  %s10242_s4 = inlined_call_operand.vmem [shape: bf16[32,256], index: 4, kind: input, shape index: {}]   ;;  %s10243_s5 = inlined_call_operand.vmem [shape: f32[1,256], index: 5, kind: input, shape index: {}]   ;;  %s10244_s6 = inlined_call_operand.hbm [shape: bf16[64,256], index: 6, kind: input, shape index: {}]   ;;  %s10245_s7 = inlined_call_operand.hbm [shape: bf16[32,256], index: 7, kind: input, shape index: {}]   ;;  %s10246_s8 = inlined_call_operand.hbm [shape: f32[1,256], index: 8, kind: input, shape index: {}]   ;;  %s10247_s9 = inlined_call_operand.vmem [shape: f32[4,2,32], index: 9, kind: input, shape index: {}]   ;;  %s10248_s10 = inlined_call_operand.hbm [shape: f32[4,2,32], index: 10, kind: input, shape index: {}]   ;;  %s10249_s11 = inlined_call_operand.hbm [shape: f32[64,128], index: 11, kind: input, shape index: {}]   ;;  %s10250_s12 = inlined_call_operand.hbm [shape: f32[1,128], index: 12, kind: input, shape index: {}]   ;;  %s10251_s13 = inlined_call_operand.vmem [shape: f32[128,16], index: 13, kind: input, shape index: {}]   ;;  %s10252_s14 = inlined_call_operand.hbm [shape: f32[1,16], index: 14, kind: input, shape index: {}]   ;;  %s10253_s15 = inlined_call_operand.hbm [shape: f32[2,16], index: 15, kind: output, shape index: {}]  }
   0x1   :  { %21 = vsyncpa [#allocation8], 0 }
   0x2   :  { %22 = vsyncpa [#allocation11], 0 }
   0x3   :  { %23 = vsyncpa [#allocation14], 0 }
   0x4   :  { %24 = vsyncpa [#allocation6], 0  ;;  %s8247_s18 = smov [#allocation7]   ;;  %s8248_s20 = smov [#allocation10]  }
   0x5   :  { %s54_s19 = sshll.u32 %s8247_s18, 4  ;;  %s78_s21 = sshll.u32 %s8248_s20, 4  ;;  %s55_s19 = int_to_ptr.vmem [resolvable:$true] %s54_s19  ;;  %s8344_s21 = int_to_ptr.vmem [resolvable:$true] %s78_s21 }
   0x6   :  { %s8061_s24 = scalar_lea.hbm %s10245_s7, 512 }
   0x7   :  { %p8062_p0 = scmp.ne.s32.totalorder %s10245_s7, %s8061_s24  ;;  %p8065_p1 = scmp.lt.u32.totalorder %s8061_s24, %s10245_s7 }
   0x9   :  { %p8067_p2 = pnand %p8065_p1, %p8062_p0 }
   0xb   :  { %8070 = shalt.err (!%p8067_p2)
}
   0xc   :  { %s8071_s29 = scalar_lea.vmem %s55_s19, 512  ;;  %p8076_p4 = scmp.lt.s32.totalorder %s55_s19, %s55_s19 }
   0xd   :  { %p8072_p3 = scmp.ne.s32.totalorder %s55_s19, %s8071_s29  ;;  %p8077_p5 = scmp.lt.s32.totalorder %s8071_s29, %s8071_s29 }
   0xf   :  { %p8078_p6 = por %p8077_p5, %p8076_p4 }
  0x11   :  { %p8079_p7 = pnand %p8078_p6, %p8072_p3 }
  0x13   :  { %8082 = shalt.err (!%p8079_p7)
}
  0x14   :  { %s10254_s30 = smov 128   ;;  %s10256_s16 = smov 8  }
  0x15   :  { %60 = dma.hbm_to_vmem [thread:$0]  %s10245_s7, 512, %s55_s19, [#allocation8], %s10254_s30, %s10254_s30, %s10256_s16  }
  0x16   :  { %s8083_s23 = scalar_lea.hbm %s10248_s10, 128 }
  0x17   :  { %p8084_p8 = scmp.ne.s32.totalorder %s10248_s10, %s8083_s23  ;;  %p8087_p9 = scmp.lt.u32.totalorder %s8083_s23, %s10248_s10 }
  0x19   :  { %p8089_p10 = pnand %p8087_p9, %p8084_p8 }
  0x1b   :  { %8092 = shalt.err (!%p8089_p10)
}
  0x1c   :  { %s8093_s28 = scalar_lea.vmem %s8344_s21, 128  ;;  %p8098_p12 = scmp.lt.s32.totalorder %s8344_s21, %s8344_s21 }
  0x1d   :  { %p8094_p11 = scmp.ne.s32.totalorder %s8344_s21, %s8093_s28  ;;  %p8099_p13 = scmp.lt.s32.totalorder %s8093_s28, %s8093_s28 }
  0x1f   :  { %p8100_p0 = por %p8099_p13, %p8098_p12 }
  0x21   :  { %p8101_p1 = pnand %p8100_p0, %p8094_p11 }
  0x23   :  { %8104 = shalt.err (!%p8101_p1)
}
  0x24   :  { %s8251_s7 = smov 32   ;;  %s8252_s19 = smov 2  }
  0x25   :  { %84 = dma.hbm_to_vmem [thread:$0]  %s10248_s10, 128, %s8344_s21, [#allocation11], %s8251_s7, %s8251_s7, %s8252_s19  }
  0x26   :  { %s8253_s18 = smov [#allocation13]   ;;  %s8254_s22 = smov [#allocation4]  }
  0x27   :  { %s103_s20 = sshll.u32 %s8253_s18, 4  ;;  %s42_s23 = sshll.u32 %s8254_s22, 4  ;;  %s104_s20 = int_to_ptr.vmem [resolvable:$true] %s103_s20  ;;  %s8380_s23 = int_to_ptr.vmem [resolvable:$true] %s42_s23 }
  0x28   :  { %s8105_s26 = scalar_lea.hbm %s10250_s12, 16 }
  0x29   :  { %p8106_p2 = scmp.ne.s32.totalorder %s10250_s12, %s8105_s26  ;;  %p8109_p3 = scmp.lt.u32.totalorder %s8105_s26, %s10250_s12 }
  0x2b   :  { %p8111_p4 = pnand %p8109_p3, %p8106_p2 }
  0x2d   :  { %8114 = shalt.err (!%p8111_p4)
}
  0x2e   :  { %s8115_s10 = scalar_lea.vmem %s104_s20, 16  ;;  %s8119_s21 = scalar_lea.vmem %s104_s20, 32 }
  0x2f   :  { %p8116_p5 = scmp.ne.s32.totalorder %s104_s20, %s8115_s10  ;;  %p8120_p6 = scmp.lt.s32.totalorder %s104_s20, %s104_s20 }
  0x30   :  { %p8121_p7 = scmp.lt.s32.totalorder %s8119_s21, %s8115_s10 }
  0x32   :  { %p8122_p8 = por %p8121_p7, %p8120_p6 }
  0x34   :  { %p8123_p9 = pnand %p8122_p8, %p8116_p5 }
  0x36   :  { %8126 = shalt.err (!%p8123_p9)
}
  0x37   :  { %106 = dma.hbm_to_vmem [thread:$0]  %s10250_s12, 16, %s104_s20, [#allocation14]  }
  0x38   :  { %s8127_s22 = scalar_lea.hbm %s10244_s6, 1024 }
  0x39   :  { %p8128_p10 = scmp.ne.s32.totalorder %s10244_s6, %s8127_s22  ;;  %p8131_p11 = scmp.lt.u32.totalorder %s8127_s22, %s10244_s6 }
  0x3b   :  { %p8133_p12 = pnand %p8131_p11, %p8128_p10 }
  0x3d   :  { %8136 = shalt.err (!%p8133_p12)
}
  0x3e   :  { %s8137_s26 = scalar_lea.vmem %s8380_s23, 1024  ;;  %p8142_p0 = scmp.lt.s32.totalorder %s8380_s23, %s8380_s23 }
  0x3f   :  { %p8138_p13 = scmp.ne.s32.totalorder %s8380_s23, %s8137_s26  ;;  %p8143_p1 = scmp.lt.s32.totalorder %s8137_s26, %s8137_s26 }
  0x41   :  { %p8144_p2 = por %p8143_p1, %p8142_p0 }
  0x43   :  { %p8145_p3 = pnand %p8144_p2, %p8138_p13 }
  0x45   :  { %8148 = shalt.err (!%p8145_p3)
}
  0x46   :  { %s10258_s12 = smov 8   ;;  %s10259_s20 = smov 128  }
  0x47   :  { %48 = dma.hbm_to_vmem [thread:$0]  %s10244_s6, 1024, %s8380_s23, [#allocation5], %s10259_s20, %s10259_s20, %s10258_s12  }
  0x48   :  { %s8255_s10 = smov [#allocation9]   ;;  %s8256_s19 = smov [#allocation12]  }
  0x49   :  { %s67_s21 = sshll.u32 %s8255_s10, 4  ;;  %s90_s29 = sshll.u32 %s8256_s19, 4  ;;  %s68_s21 = int_to_ptr.vmem [resolvable:$true] %s67_s21  ;;  %s8414_s29 = int_to_ptr.vmem [resolvable:$true] %s90_s29 }
  0x4a   :  { %s8149_s22 = scalar_lea.hbm %s10246_s8, 32 }
  0x4b   :  { %p8150_p4 = scmp.ne.s32.totalorder %s10246_s8, %s8149_s22  ;;  %p8153_p5 = scmp.lt.u32.totalorder %s8149_s22, %s10246_s8 }
  0x4d   :  { %p8155_p6 = pnand %p8153_p5, %p8150_p4 }
  0x4f   :  { %8158 = shalt.err (!%p8155_p6)
}
  0x50   :  { %s8159_s6 = scalar_lea.vmem %s68_s21, 32  ;;  %p8164_p8 = scmp.lt.s32.totalorder %s68_s21, %s68_s21 }
  0x51   :  { %p8160_p7 = scmp.ne.s32.totalorder %s68_s21, %s8159_s6  ;;  %p8165_p9 = scmp.lt.s32.totalorder %s8159_s6, %s8159_s6 }
  0x53   :  { %p8166_p10 = por %p8165_p9, %p8164_p8 }
  0x55   :  { %p8167_p11 = pnand %p8166_p10, %p8160_p7 }
  0x57   :  { %8170 = shalt.err (!%p8167_p11)
}
  0x58   :  { %70 = dma.hbm_to_vmem [thread:$0]  %s10246_s8, 32, %s68_s21, [#allocation8]  }
  0x59   :  { %s8171_s10 = scalar_lea.hbm %s10249_s11, 1024 }
  0x5a   :  { %p8172_p12 = scmp.ne.s32.totalorder %s10249_s11, %s8171_s10  ;;  %p8175_p13 = scmp.lt.u32.totalorder %s8171_s10, %s10249_s11 }
  0x5c   :  { %p8177_p0 = pnand %p8175_p13, %p8172_p12 }
  0x5e   :  { %8180 = shalt.err (!%p8177_p0)
}
  0x5f   :  { %s8181_s30 = scalar_lea.vmem %s8414_s29, 1024  ;;  %p8186_p2 = scmp.lt.s32.totalorder %s8414_s29, %s8414_s29 }
  0x60   :  { %p8182_p1 = scmp.ne.s32.totalorder %s8414_s29, %s8181_s30  ;;  %p8187_p3 = scmp.lt.s32.totalorder %s8181_s30, %s8181_s30 }
  0x62   :  { %p8188_p4 = por %p8187_p3, %p8186_p2 }
  0x64   :  { %p8189_p5 = pnand %p8188_p4, %p8182_p1 }
  0x66   :  { %8192 = shalt.err (!%p8189_p5)
}
  0x67   :  { %96 = dma.hbm_to_vmem [thread:$0]  %s10249_s11, 1024, %s8414_s29, [#allocation11], %s10259_s20, %s10259_s20, %s10258_s12  }
  0x68   :  { %s8257_s16 = smov [#allocation15]   ;;  %s8193_s23 = scalar_lea.hbm %s10252_s14, 16 }
  0x69   :  { %s115_s24 = sshll.u32 %s8257_s16, 4  ;;  %p8194_p6 = scmp.ne.s32.totalorder %s10252_s14, %s8193_s23  ;;  %s116_s24 = int_to_ptr.vmem [resolvable:$true] %s115_s24 }
  0x6a   :  { %p8197_p7 = scmp.lt.u32.totalorder %s8193_s23, %s10252_s14 }
  0x6c   :  { %p8199_p8 = pnand %p8197_p7, %p8194_p6 }
  0x6e   :  { %8202 = shalt.err (!%p8199_p8)
}
  0x6f   :  { %s8203_s19 = scalar_lea.vmem %s116_s24, 16  ;;  %s8207_s11 = scalar_lea.vmem %s116_s24, 32 }
  0x70   :  { %p8204_p9 = scmp.ne.s32.totalorder %s116_s24, %s8203_s19  ;;  %p8208_p10 = scmp.lt.s32.totalorder %s116_s24, %s116_s24 }
  0x71   :  { %p8209_p11 = scmp.lt.s32.totalorder %s8207_s11, %s8203_s19 }
  0x73   :  { %p8210_p12 = por %p8209_p11, %p8208_p10 }
  0x75   :  { %p8211_p13 = pnand %p8210_p12, %p8204_p9 }
  0x77   :  { %8214 = shalt.err (!%p8211_p13)
}
  0x78   :  { %118 = dma.hbm_to_vmem [thread:$0]  %s10252_s14, 16, %s116_s24, [#allocation14]  }
  0x79   :  { %8237 = dma.done.wait [#allocation5], 1024  }
  0x7a   :  { %8238 = vsyncadd [#allocation5], 4294966272 }
  0x7b   :  { %8239 = dma.done.wait [#allocation8], 544  }
  0x7c   :  { %8240 = vsyncadd [#allocation8], 4294966752 }
  0x7d   :  { %8241 = dma.done.wait [#allocation11], 1152  }
  0x7e   :  { %8242 = vsyncadd [#allocation11], 4294966144 }
  0x7f   :  { %8243 = dma.done.wait [#allocation14], 32  }
  0x80   :  { %8244 = vsyncadd [#allocation14], 4294967264  ;;  %v7497_v0 = vld [vmem:[%s10239_s1 + $0x40] sm:$0xff]   ;;  %v7501_v4 = vld [vmem:[%s10239_s1 + $0x48] sm:$0xff]   ;;  %vm8260_vm0 = vmmov 0   ;;  %vm3134_vm1 = vcmask 261120  }
  0x81   :  { %v7498_v1 = vld [vmem:[%s10239_s1 + $0xc0] sm:$0xff]   ;;  %6652 = vmatprep.subr.bf16.mxu0 %v7497_v0  ;;  %v7502_v5 = vld [vmem:[%s10239_s1 + $0xc8] sm:$0xff]   ;;  %v7505_v8 = vld [vmem:[%s10239_s1 + $0x50] sm:$0xff]   ;;  %vm3479_vm2 = vcmask 259076   ;;  %vm3301_vm3 = vcmask 254976   ;;  %vm3308_vm4 = vcmask 261126  }
  0x82   :  { %v7499_v2 = vld [vmem:[%s10239_s1] sm:$0xff]   ;;  %6674 = vmatprep.subr.bf16.mxu1 %v7498_v1  ;;  %v7503_v6 = vld [vmem:[%s10239_s1 + $0x8] sm:$0xff]   ;;  %v7506_v9 = vld [vmem:[%s10239_s1 + $0xd0] sm:$0xff]   ;;  %vm3473_vm5 = vcmask 257026   ;;  %s8263_s11 = smov [#allocation16]   ;;  %vm6270_vm6 = vcmask 123904  }
  0x83   :  { %v7500_v3 = vld [vmem:[%s10239_s1 + $0x80] sm:$0xff]   ;;  %6653 = vmatpush3.bf16.msra.mxu0 %v7499_v2  ;;  %v7504_v7 = vld [vmem:[%s10239_s1 + $0x88] sm:$0xff]   ;;  %v7507_v10 = vld [vmem:[%s10239_s1 + $0x10] sm:$0xff]   ;;  %s6278_s12 = sshll.u32 %s8263_s11, 4  ;;  %s6279_s12 = int_to_ptr.vmem [resolvable:$true] %s6278_s12 }
  0x84   :  { %6675 = vmatpush3.bf16.msra.mxu1 %v7500_v3  ;;  %6654 = vmatprep.subr.bf16.mxu0 %v7501_v4  ;;  %v7508_v11 = vld [vmem:[%s10239_s1 + $0x90] sm:$0xff]   ;;  %v7509_v12 = vld [vmem:[%s10239_s1 + $0x58] sm:$0xff]   ;;  %v7513_v16 = vld [vmem:[%s10239_s1 + $0x60] sm:$0xff]   ;;  %p8220_p1 = scmp.lt.s32.totalorder %s6279_s12, %s6279_s12 }
  0x85   :  { %6676 = vmatprep.subr.bf16.mxu1 %v7502_v5  ;;  %v7510_v13 = vld [vmem:[%s10239_s1 + $0xd8] sm:$0xff]   ;;  %v7514_v17 = vld [vmem:[%s10239_s1 + $0xe0] sm:$0xff]   ;;  %v7517_v20 = vld [vmem:[%s10239_s1 + $0x68] sm:$0xff]  }
  0x86   :  { %v7511_v14 = vld [vmem:[%s10239_s1 + $0x18] sm:$0xff]   ;;  %v7515_v18 = vld [vmem:[%s10239_s1 + $0x20] sm:$0xff]   ;;  %v7518_v21 = vld [vmem:[%s10239_s1 + $0xe8] sm:$0xff]  }
  0x87   :  { %6655 = vmatpush3.bf16.msra.mxu0 %v7503_v6  ;;  %v7512_v15 = vld [vmem:[%s10239_s1 + $0x98] sm:$0xff]   ;;  %v7516_v19 = vld [vmem:[%s10239_s1 + $0xa0] sm:$0xff]   ;;  %v7519_v22 = vld [vmem:[%s10239_s1 + $0x28] sm:$0xff]  }
  0x88   :  { %6677 = vmatpush3.bf16.msra.mxu1 %v7504_v7  ;;  %6656 = vmatprep.subr.bf16.mxu0 %v7505_v8  ;;  %v7520_v23 = vld [vmem:[%s10239_s1 + $0xa8] sm:$0xff]   ;;  %v7521_v24 = vld [vmem:[%s10239_s1 + $0x70] sm:$0xff]   ;;  %v7525_v28 = vld [vmem:[%s10239_s1 + $0x78] sm:$0xff]  }
  0x89   :  { %6678 = vmatprep.subr.bf16.mxu1 %v7506_v9  ;;  %v7522_v25 = vld [vmem:[%s10239_s1 + $0xf0] sm:$0xff]   ;;  %v7526_v29 = vld [vmem:[%s10239_s1 + $0xf8] sm:$0xff]   ;;  %v142_v32 = vld [vmem:[%s10238_s0 + $0x8] sm:$0xff] }
  0x8a   :  { %v7523_v26 = vld [vmem:[%s10239_s1 + $0x30] sm:$0xff]   ;;  %v7527_v30 = vld [vmem:[%s10239_s1 + $0x38] sm:$0xff]   ;;  %v174_v33 = vld [vmem:[%s10238_s0 + $0x108] sm:$0xff] }
  0x8b   :  { %6657 = vmatpush3.bf16.msra.mxu0 %v7507_v10  ;;  %v7524_v27 = vld [vmem:[%s10239_s1 + $0xb0] sm:$0xff]   ;;  %v7528_v31 = vld [vmem:[%s10239_s1 + $0xb8] sm:$0xff]   ;;  %v206_v35 = vpack.c.bf16 %v174_v33, %v142_v32  ;;  %v141_v37 = vld [vmem:[%s10238_s0] sm:$0xff] }
  0x8c   :  { %6679 = vmatpush3.bf16.msra.mxu1 %v7508_v11  ;;  %6658 = vmatprep.subr.bf16.mxu0 %v7509_v12  ;;  %v144_v34 = vld [vmem:[%s10238_s0 + $0x18] sm:$0xff]  ;;  %v173_v38 = vld [vmem:[%s10238_s0 + $0x100] sm:$0xff]  ;;  %v143_v41 = vld [vmem:[%s10238_s0 + $0x10] sm:$0xff] }
  0x8d   :  { %6680 = vmatprep.subr.bf16.mxu1 %v7510_v13  ;;  %v176_v36 = vld [vmem:[%s10238_s0 + $0x118] sm:$0xff]  ;;  %v205_v40 = vpack.c.bf16 %v173_v38, %v141_v37  ;;  %v175_v42 = vld [vmem:[%s10238_s0 + $0x110] sm:$0xff]  ;;  %2324 = vmatprep.mubr.bf16.mxu0 %v206_v35  ;;  %v7529_v44 = vld [vmem:[%s10239_s1 + $0x140] sm:$0xff]  }
  0x8e   :  { %v208_v39 = vpack.c.bf16 %v176_v36, %v144_v34  ;;  %v207_v43 = vpack.c.bf16 %v175_v42, %v143_v41  ;;  %v7530_v45 = vld [vmem:[%s10239_s1 + $0x1c0] sm:$0xff]   ;;  %v7533_v48 = vld [vmem:[%s10239_s1 + $0x148] sm:$0xff]   ;;  %v7537_v52 = vld [vmem:[%s10239_s1 + $0x150] sm:$0xff]  }
  0x8f   :  { %6659 = vmatpush3.bf16.msra.mxu0 %v7511_v14  ;;  %v7531_v46 = vld [vmem:[%s10239_s1 + $0x100] sm:$0xff]   ;;  %v7534_v49 = vld [vmem:[%s10239_s1 + $0x1c8] sm:$0xff]   ;;  %v7538_v53 = vld [vmem:[%s10239_s1 + $0x1d0] sm:$0xff]  }
  0x90   :  { %6681 = vmatpush3.bf16.msra.mxu1 %v7512_v15  ;;  %6660 = vmatprep.subr.bf16.mxu0 %v7513_v16  ;;  %v7532_v47 = vld [vmem:[%s10239_s1 + $0x180] sm:$0xff]   ;;  %v7535_v50 = vld [vmem:[%s10239_s1 + $0x108] sm:$0xff]   ;;  %v7539_v54 = vld [vmem:[%s10239_s1 + $0x110] sm:$0xff]  }
  0x91   :  { %6682 = vmatprep.subr.bf16.mxu1 %v7514_v17  ;;  %2365 = vmatprep.mubr.bf16.mxu1 %v208_v39  ;;  %v7536_v51 = vld [vmem:[%s10239_s1 + $0x188] sm:$0xff]   ;;  %v7540_v55 = vld [vmem:[%s10239_s1 + $0x190] sm:$0xff]   ;;  %v7541_v56 = vld [vmem:[%s10239_s1 + $0x158] sm:$0xff]  }
  0x92   :  { %v7542_v57 = vld [vmem:[%s10239_s1 + $0x1d8] sm:$0xff]   ;;  %v7545_v60 = vld [vmem:[%s10239_s1 + $0x160] sm:$0xff]   ;;  %v7549_v0 = vld [vmem:[%s10239_s1 + $0x168] sm:$0xff]  }
  0x93   :  { %6661 = vmatpush3.bf16.msra.mxu0 %v7515_v18  ;;  %v7543_v58 = vld [vmem:[%s10239_s1 + $0x118] sm:$0xff]   ;;  %v7546_v61 = vld [vmem:[%s10239_s1 + $0x1e0] sm:$0xff]   ;;  %v7550_v1 = vld [vmem:[%s10239_s1 + $0x1e8] sm:$0xff]  }
  0x94   :  { %6683 = vmatpush3.bf16.msra.mxu1 %v7516_v19  ;;  %6662 = vmatprep.subr.bf16.mxu0 %v7517_v20  ;;  %v7544_v59 = vld [vmem:[%s10239_s1 + $0x198] sm:$0xff]   ;;  %v7547_v62 = vld [vmem:[%s10239_s1 + $0x120] sm:$0xff]   ;;  %v7551_v2 = vld [vmem:[%s10239_s1 + $0x128] sm:$0xff]  }
  0x95   :  { %6684 = vmatprep.subr.bf16.mxu1 %v7518_v21  ;;  %v7548_v63 = vld [vmem:[%s10239_s1 + $0x1a0] sm:$0xff]   ;;  %v7552_v3 = vld [vmem:[%s10239_s1 + $0x1a8] sm:$0xff]   ;;  %v7553_v4 = vld [vmem:[%s10239_s1 + $0x170] sm:$0xff]  }
  0x96   :  { %v7554_v5 = vld [vmem:[%s10239_s1 + $0x1f0] sm:$0xff]   ;;  %v7557_v8 = vld [vmem:[%s10239_s1 + $0x178] sm:$0xff]   ;;  %v146_v12 = vld [vmem:[%s10238_s0 + $0x28] sm:$0xff] }
  0x97   :  { %6663 = vmatpush3.bf16.msra.mxu0 %v7519_v22  ;;  %v7555_v6 = vld [vmem:[%s10239_s1 + $0x130] sm:$0xff]   ;;  %v7558_v9 = vld [vmem:[%s10239_s1 + $0x1f8] sm:$0xff]   ;;  %v178_v13 = vld [vmem:[%s10238_s0 + $0x128] sm:$0xff] }
  0x98   :  { %6685 = vmatpush3.bf16.msra.mxu1 %v7520_v23  ;;  %6664 = vmatprep.subr.bf16.mxu0 %v7521_v24  ;;  %v7556_v7 = vld [vmem:[%s10239_s1 + $0x1b0] sm:$0xff]   ;;  %v7559_v10 = vld [vmem:[%s10239_s1 + $0x138] sm:$0xff]   ;;  %v210_v16 = vpack.c.bf16 %v178_v13, %v146_v12  ;;  %v145_v18 = vld [vmem:[%s10238_s0 + $0x20] sm:$0xff] }
  0x99   :  { %6686 = vmatprep.subr.bf16.mxu1 %v7522_v25  ;;  %v7560_v11 = vld [vmem:[%s10239_s1 + $0x1b8] sm:$0xff]   ;;  %v177_v19 = vld [vmem:[%s10238_s0 + $0x120] sm:$0xff]  ;;  %v147_v20 = vld [vmem:[%s10238_s0 + $0x30] sm:$0xff] }
  0x9a   :  { %v148_v14 = vld [vmem:[%s10238_s0 + $0x38] sm:$0xff]  ;;  %v209_v21 = vpack.c.bf16 %v177_v19, %v145_v18  ;;  %v179_v22 = vld [vmem:[%s10238_s0 + $0x130] sm:$0xff]  ;;  %v7561_v24 = vld [vmem:[%s10239_s1 + $0x240] sm:$0xff]  }
  0x9b   :  { %6665 = vmatpush3.bf16.msra.mxu0 %v7523_v26  ;;  %v180_v15 = vld [vmem:[%s10238_s0 + $0x138] sm:$0xff]  ;;  %v211_v23 = vpack.c.bf16 %v179_v22, %v147_v20  ;;  %v7562_v25 = vld [vmem:[%s10239_s1 + $0x2c0] sm:$0xff]   ;;  %v7569_v32 = vld [vmem:[%s10239_s1 + $0x250] sm:$0xff]  }
  0x9c   :  { %6687 = vmatpush3.bf16.msra.mxu1 %v7524_v27  ;;  %6666 = vmatprep.subr.bf16.mxu0 %v7525_v28  ;;  %v212_v17 = vpack.c.bf16 %v180_v15, %v148_v14  ;;  %v7563_v26 = vld [vmem:[%s10239_s1 + $0x200] sm:$0xff]   ;;  %v7565_v28 = vld [vmem:[%s10239_s1 + $0x248] sm:$0xff]   ;;  %v7570_v33 = vld [vmem:[%s10239_s1 + $0x2d0] sm:$0xff]  }
  0x9d   :  { %6688 = vmatprep.subr.bf16.mxu1 %v7526_v29  ;;  %v7564_v27 = vld [vmem:[%s10239_s1 + $0x280] sm:$0xff]   ;;  %v7566_v29 = vld [vmem:[%s10239_s1 + $0x2c8] sm:$0xff]   ;;  %v7571_v34 = vld [vmem:[%s10239_s1 + $0x210] sm:$0xff]  }
  0x9e   :  { %v7572_v35 = vld [vmem:[%s10239_s1 + $0x290] sm:$0xff]   ;;  %v7573_v36 = vld [vmem:[%s10239_s1 + $0x258] sm:$0xff]   ;;  %v7578_v41 = vld [vmem:[%s10239_s1 + $0x2e0] sm:$0xff]  }
  0x9f   :  { %6667 = vmatpush3.bf16.msra.mxu0 %v7527_v30  ;;  %v7567_v30 = vld [vmem:[%s10239_s1 + $0x208] sm:$0xff]   ;;  %v7574_v37 = vld [vmem:[%s10239_s1 + $0x2d8] sm:$0xff]   ;;  %v7579_v42 = vld [vmem:[%s10239_s1 + $0x220] sm:$0xff]  }
  0xa0   :  { %6689 = vmatpush3.bf16.msra.mxu1 %v7528_v31  ;;  %6696 = vmatprep.subr.bf16.mxu0 %v7529_v44  ;;  %v7568_v31 = vld [vmem:[%s10239_s1 + $0x288] sm:$0xff]   ;;  %v7575_v38 = vld [vmem:[%s10239_s1 + $0x218] sm:$0xff]   ;;  %v7601_v12 = vld [vmem:[%s10239_s1 + $0x350] sm:$0xff]  }
  0xa1   :  { %6718 = vmatprep.subr.bf16.mxu1 %v7530_v45  ;;  %v7576_v39 = vld [vmem:[%s10239_s1 + $0x298] sm:$0xff]   ;;  %v7581_v44 = vld [vmem:[%s10239_s1 + $0x268] sm:$0xff]   ;;  %v7602_v13 = vld [vmem:[%s10239_s1 + $0x3d0] sm:$0xff]  }
  0xa2   :  { %2325 = vmatmul.mubr.bf16.vlgmr.msra.gmra.mrb[0].mxu0 %v205_v40  ;;  %v7577_v40 = vld [vmem:[%s10239_s1 + $0x260] sm:$0xff]   ;;  %v7582_v45 = vld [vmem:[%s10239_s1 + $0x2e8] sm:$0xff]   ;;  %v7603_v14 = vld [vmem:[%s10239_s1 + $0x310] sm:$0xff]  }
  0xa3   :  { %2366 = vmatmul.mubr.bf16.vlgmr.msra.gmra.mrb[0].mxu1 %v207_v43  ;;  %6697 = vmatpush3.bf16.msra.mxu0 %v7531_v46  ;;  %v7580_v43 = vld [vmem:[%s10239_s1 + $0x2a0] sm:$0xff]   ;;  %v7583_v46 = vld [vmem:[%s10239_s1 + $0x228] sm:$0xff]   ;;  %v7604_v15 = vld [vmem:[%s10239_s1 + $0x390] sm:$0xff]  }
  0xa4   :  { %6719 = vmatpush3.bf16.msra.mxu1 %v7532_v47  ;;  %6698 = vmatprep.subr.bf16.mxu0 %v7533_v48  ;;  %v7584_v47 = vld [vmem:[%s10239_s1 + $0x2a8] sm:$0xff]   ;;  %v7585_v48 = vld [vmem:[%s10239_s1 + $0x270] sm:$0xff]   ;;  %v7607_v18 = vld [vmem:[%s10239_s1 + $0x318] sm:$0xff]  }
  0xa5   :  { %6720 = vmatprep.subr.bf16.mxu1 %v7534_v49  ;;  %2406 = vmatprep.mubr.bf16.mxu0 %v210_v16  ;;  %v7586_v49 = vld [vmem:[%s10239_s1 + $0x2f0] sm:$0xff]   ;;  %v7605_v16 = vld [vmem:[%s10239_s1 + $0x358] sm:$0xff]   ;;  %v7609_v20 = vld [vmem:[%s10239_s1 + $0x360] sm:$0xff]  }
  0xa6   :  { %2447 = vmatprep.mubr.bf16.mxu1 %v212_v17  ;;  %v7606_v17 = vld [vmem:[%s10239_s1 + $0x3d8] sm:$0xff]   ;;  %v7611_v22 = vld [vmem:[%s10239_s1 + $0x320] sm:$0xff]  }
  0xa7   :  { %6699 = vmatpush3.bf16.msra.mxu0 %v7535_v50  ;;  %v7587_v50 = vld [vmem:[%s10239_s1 + $0x230] sm:$0xff]   ;;  %v7608_v19 = vld [vmem:[%s10239_s1 + $0x398] sm:$0xff]  }
  0xa8   :  { %6721 = vmatpush3.bf16.msra.mxu1 %v7536_v51  ;;  %6700 = vmatprep.subr.bf16.mxu0 %v7537_v52  ;;  %v7588_v51 = vld [vmem:[%s10239_s1 + $0x2b0] sm:$0xff]   ;;  %v7589_v52 = vld [vmem:[%s10239_s1 + $0x278] sm:$0xff]  }
  0xa9   :  { %6722 = vmatprep.subr.bf16.mxu1 %v7538_v53  ;;  %v7590_v53 = vld [vmem:[%s10239_s1 + $0x2f8] sm:$0xff]  }
  0xab   :  { %6701 = vmatpush3.bf16.msra.mxu0 %v7539_v54  ;;  %v7591_v54 = vld [vmem:[%s10239_s1 + $0x238] sm:$0xff]  }
  0xac   :  { %6723 = vmatpush3.bf16.msra.mxu1 %v7540_v55  ;;  %6702 = vmatprep.subr.bf16.mxu0 %v7541_v56  ;;  %v7592_v55 = vld [vmem:[%s10239_s1 + $0x2b8] sm:$0xff]   ;;  %v150_v56 = vld [vmem:[%s10238_s0 + $0x48] sm:$0xff] }
  0xad   :  { %6724 = vmatprep.subr.bf16.mxu1 %v7542_v57  ;;  %v182_v57 = vld [vmem:[%s10238_s0 + $0x148] sm:$0xff] }
  0xaf   :  { %6703 = vmatpush3.bf16.msra.mxu0 %v7543_v58  ;;  %v214_v58 = vpack.c.bf16 %v182_v57, %v150_v56  ;;  %v7633_v56 = vld [vmem:[%s10239_s1 + $0x450] sm:$0xff]  }
  0xb0   :  { %6725 = vmatpush3.bf16.msra.mxu1 %v7544_v59  ;;  %6704 = vmatprep.subr.bf16.mxu0 %v7545_v60  ;;  %v152_v59 = vld [vmem:[%s10238_s0 + $0x58] sm:$0xff]  ;;  %v7634_v57 = vld [vmem:[%s10239_s1 + $0x4d0] sm:$0xff]  }
  0xb1   :  { %6726 = vmatprep.subr.bf16.mxu1 %v7546_v61  ;;  %v184_v60 = vld [vmem:[%s10238_s0 + $0x158] sm:$0xff]  ;;  %v149_v61 = vld [vmem:[%s10238_s0 + $0x40] sm:$0xff] }
  0xb3   :  { %6705 = vmatpush3.bf16.msra.mxu0 %v7547_v62  ;;  %v216_v62 = vpack.c.bf16 %v184_v60, %v152_v59  ;;  %v7636_v59 = vld [vmem:[%s10239_s1 + $0x490] sm:$0xff]   ;;  %v7637_v60 = vld [vmem:[%s10239_s1 + $0x458] sm:$0xff]  }
  0xb4   :  { %6727 = vmatpush3.bf16.msra.mxu1 %v7548_v63  ;;  %6706 = vmatprep.subr.bf16.mxu0 %v7549_v0  ;;  %v181_v63 = vld [vmem:[%s10238_s0 + $0x140] sm:$0xff]  ;;  %v151_v0 = vld [vmem:[%s10238_s0 + $0x50] sm:$0xff] }
  0xb5   :  { %6728 = vmatprep.subr.bf16.mxu1 %v7550_v1  ;;  %v183_v1 = vld [vmem:[%s10238_s0 + $0x150] sm:$0xff] }
  0xb7   :  { %6707 = vmatpush3.bf16.msra.mxu0 %v7551_v2  ;;  %v213_v2 = vpack.c.bf16 %v181_v63, %v149_v61  ;;  %v7638_v61 = vld [vmem:[%s10239_s1 + $0x4d8] sm:$0xff]  }
  0xb8   :  { %6729 = vmatpush3.bf16.msra.mxu1 %v7552_v3  ;;  %6708 = vmatprep.subr.bf16.mxu0 %v7553_v4  ;;  %v215_v3 = vpack.c.bf16 %v183_v1, %v151_v0  ;;  %v7593_v4 = vld [vmem:[%s10239_s1 + $0x340] sm:$0xff]   ;;  %v7640_v63 = vld [vmem:[%s10239_s1 + $0x498] sm:$0xff]  }
  0xb9   :  { %6730 = vmatprep.subr.bf16.mxu1 %v7554_v5  ;;  %v7594_v5 = vld [vmem:[%s10239_s1 + $0x3c0] sm:$0xff]  }
  0xba   :  { %v7641_v0 = vld [vmem:[%s10239_s1 + $0x460] sm:$0xff]  }
  0xbb   :  { %6709 = vmatpush3.bf16.msra.mxu0 %v7555_v6  ;;  %v7595_v6 = vld [vmem:[%s10239_s1 + $0x300] sm:$0xff]  }
  0xbc   :  { %6731 = vmatpush3.bf16.msra.mxu1 %v7556_v7  ;;  %6710 = vmatprep.subr.bf16.mxu0 %v7557_v8  ;;  %v7596_v7 = vld [vmem:[%s10239_s1 + $0x380] sm:$0xff]   ;;  %v7597_v8 = vld [vmem:[%s10239_s1 + $0x348] sm:$0xff]  }
  0xbd   :  { %6732 = vmatprep.subr.bf16.mxu1 %v7558_v9  ;;  %v7598_v9 = vld [vmem:[%s10239_s1 + $0x3c8] sm:$0xff]   ;;  %v7642_v1 = vld [vmem:[%s10239_s1 + $0x4e0] sm:$0xff]  }
  0xbf   :  { %6711 = vmatpush3.bf16.msra.mxu0 %v7559_v10  ;;  %v7599_v10 = vld [vmem:[%s10239_s1 + $0x308] sm:$0xff]  }
  0xc0   :  { %6733 = vmatpush3.bf16.msra.mxu1 %v7560_v11  ;;  %6740 = vmatprep.subr.bf16.mxu0 %v7561_v24  ;;  %v7600_v11 = vld [vmem:[%s10239_s1 + $0x388] sm:$0xff]  }
  0xc1   :  { %6762 = vmatprep.subr.bf16.mxu1 %v7562_v25  ;;  %v7613_v24 = vld [vmem:[%s10239_s1 + $0x368] sm:$0xff]  }
  0xc2   :  { %2407 = vmatmul.mubr.bf16.vlgmr.msra.gmra.mrb[4].mxu0 %v209_v21  ;;  %v7610_v21 = vld [vmem:[%s10239_s1 + $0x3e0] sm:$0xff]   ;;  %v7614_v25 = vld [vmem:[%s10239_s1 + $0x3e8] sm:$0xff]  }
  0xc3   :  { %2448 = vmatmul.mubr.bf16.vlgmr.msra.gmra.mrb[4].mxu1 %v211_v23  ;;  %6741 = vmatpush3.bf16.msra.mxu0 %v7563_v26  ;;  %v7612_v23 = vld [vmem:[%s10239_s1 + $0x3a0] sm:$0xff]   ;;  %v7615_v26 = vld [vmem:[%s10239_s1 + $0x328] sm:$0xff]  }
  0xc4   :  { %6763 = vmatpush3.bf16.msra.mxu1 %v7564_v27  ;;  %6742 = vmatprep.subr.bf16.mxu0 %v7565_v28  ;;  %v7616_v27 = vld [vmem:[%s10239_s1 + $0x3a8] sm:$0xff]   ;;  %v7617_v28 = vld [vmem:[%s10239_s1 + $0x370] sm:$0xff]  }
  0xc5   :  { %6764 = vmatprep.subr.bf16.mxu1 %v7566_v29  ;;  %2488 = vmatprep.mubr.bf16.mxu0 %v214_v58  ;;  %v7618_v29 = vld [vmem:[%s10239_s1 + $0x3f0] sm:$0xff]  }
  0xc6   :  { %2529 = vmatprep.mubr.bf16.mxu1 %v216_v62  ;;  %v7635_v58 = vld [vmem:[%s10239_s1 + $0x410] sm:$0xff]   ;;  %v7639_v62 = vld [vmem:[%s10239_s1 + $0x418] sm:$0xff]  }
  0xc7   :  { %6743 = vmatpush3.bf16.msra.mxu0 %v7567_v30  ;;  %v7619_v30 = vld [vmem:[%s10239_s1 + $0x330] sm:$0xff]  }
  0xc8   :  { %6765 = vmatpush3.bf16.msra.mxu1 %v7568_v31  ;;  %6744 = vmatprep.subr.bf16.mxu0 %v7569_v32  ;;  %v7620_v31 = vld [vmem:[%s10239_s1 + $0x3b0] sm:$0xff]   ;;  %v7621_v32 = vld [vmem:[%s10239_s1 + $0x378] sm:$0xff]  }
  0xc9   :  { %6766 = vmatprep.subr.bf16.mxu1 %v7570_v33  ;;  %v7622_v33 = vld [vmem:[%s10239_s1 + $0x3f8] sm:$0xff]  }
  0xcb   :  { %6745 = vmatpush3.bf16.msra.mxu0 %v7571_v34  ;;  %v7623_v34 = vld [vmem:[%s10239_s1 + $0x338] sm:$0xff]  }
  0xcc   :  { %6767 = vmatpush3.bf16.msra.mxu1 %v7572_v35  ;;  %6746 = vmatprep.subr.bf16.mxu0 %v7573_v36  ;;  %v7624_v35 = vld [vmem:[%s10239_s1 + $0x3b8] sm:$0xff]   ;;  %v154_v36 = vld [vmem:[%s10238_s0 + $0x68] sm:$0xff] }
  0xcd   :  { %6768 = vmatprep.subr.bf16.mxu1 %v7574_v37  ;;  %v186_v37 = vld [vmem:[%s10238_s0 + $0x168] sm:$0xff] }
  0xcf   :  { %6747 = vmatpush3.bf16.msra.mxu0 %v7575_v38  ;;  %v156_v38 = vld [vmem:[%s10238_s0 + $0x78] sm:$0xff] }
  0xd0   :  { %6769 = vmatpush3.bf16.msra.mxu1 %v7576_v39  ;;  %6748 = vmatprep.subr.bf16.mxu0 %v7577_v40  ;;  %v218_v39 = vpack.c.bf16 %v186_v37, %v154_v36  ;;  %v188_v40 = vld [vmem:[%s10238_s0 + $0x178] sm:$0xff]  ;;  %v7665_v36 = vld [vmem:[%s10239_s1 + $0x550] sm:$0xff]  }
  0xd1   :  { %6770 = vmatprep.subr.bf16.mxu1 %v7578_v41  ;;  %v153_v41 = vld [vmem:[%s10238_s0 + $0x60] sm:$0xff]  ;;  %v7666_v37 = vld [vmem:[%s10239_s1 + $0x5d0] sm:$0xff]  }
  0xd3   :  { %6749 = vmatpush3.bf16.msra.mxu0 %v7579_v42  ;;  %v185_v42 = vld [vmem:[%s10238_s0 + $0x160] sm:$0xff] }
  0xd4   :  { %6771 = vmatpush3.bf16.msra.mxu1 %v7580_v43  ;;  %6750 = vmatprep.subr.bf16.mxu0 %v7581_v44  ;;  %v220_v43 = vpack.c.bf16 %v188_v40, %v156_v38  ;;  %v217_v44 = vpack.c.bf16 %v185_v42, %v153_v41  ;;  %v7667_v38 = vld [vmem:[%s10239_s1 + $0x510] sm:$0xff]   ;;  %v7669_v40 = vld [vmem:[%s10239_s1 + $0x558] sm:$0xff]  }
  0xd5   :  { %6772 = vmatprep.subr.bf16.mxu1 %v7582_v45  ;;  %v155_v45 = vld [vmem:[%s10238_s0 + $0x70] sm:$0xff]  ;;  %v7670_v41 = vld [vmem:[%s10239_s1 + $0x5d8] sm:$0xff]  }
  0xd6   :  { %v7671_v42 = vld [vmem:[%s10239_s1 + $0x518] sm:$0xff]  }
  0xd7   :  { %6751 = vmatpush3.bf16.msra.mxu0 %v7583_v46  ;;  %v187_v46 = vld [vmem:[%s10238_s0 + $0x170] sm:$0xff] }
  0xd8   :  { %6773 = vmatpush3.bf16.msra.mxu1 %v7584_v47  ;;  %6752 = vmatprep.subr.bf16.mxu0 %v7585_v48  ;;  %v219_v47 = vpack.c.bf16 %v187_v46, %v155_v45  ;;  %v7625_v48 = vld [vmem:[%s10239_s1 + $0x440] sm:$0xff]  }
  0xd9   :  { %6774 = vmatprep.subr.bf16.mxu1 %v7586_v49  ;;  %v7626_v49 = vld [vmem:[%s10239_s1 + $0x4c0] sm:$0xff]  }
  0xda   :  { %v7674_v45 = vld [vmem:[%s10239_s1 + $0x5e0] sm:$0xff]  }
  0xdb   :  { %6753 = vmatpush3.bf16.msra.mxu0 %v7587_v50  ;;  %v7627_v50 = vld [vmem:[%s10239_s1 + $0x400] sm:$0xff]  }
  0xdc   :  { %6775 = vmatpush3.bf16.msra.mxu1 %v7588_v51  ;;  %6754 = vmatprep.subr.bf16.mxu0 %v7589_v52  ;;  %v7628_v51 = vld [vmem:[%s10239_s1 + $0x480] sm:$0xff]   ;;  %v7629_v52 = vld [vmem:[%s10239_s1 + $0x448] sm:$0xff]  }
  0xdd   :  { %6776 = vmatprep.subr.bf16.mxu1 %v7590_v53  ;;  %v7630_v53 = vld [vmem:[%s10239_s1 + $0x4c8] sm:$0xff]   ;;  %v7675_v46 = vld [vmem:[%s10239_s1 + $0x520] sm:$0xff]  }
  0xdf   :  { %6755 = vmatpush3.bf16.msra.mxu0 %v7591_v54  ;;  %v7631_v54 = vld [vmem:[%s10239_s1 + $0x408] sm:$0xff]  }
  0xe0   :  { %6777 = vmatpush3.bf16.msra.mxu1 %v7592_v55  ;;  %6784 = vmatprep.subr.bf16.mxu0 %v7593_v4  ;;  %v7632_v55 = vld [vmem:[%s10239_s1 + $0x488] sm:$0xff]  }
  0xe1   :  { %6806 = vmatprep.subr.bf16.mxu1 %v7594_v5  ;;  %v7645_v4 = vld [vmem:[%s10239_s1 + $0x468] sm:$0xff]  }
  0xe2   :  { %2489 = vmatmul.mubr.bf16.vlgmr.msra.gmra.mrb[8].mxu0 %v213_v2  ;;  %v7643_v2 = vld [vmem:[%s10239_s1 + $0x420] sm:$0xff]   ;;  %v7646_v5 = vld [vmem:[%s10239_s1 + $0x4e8] sm:$0xff]  }
  0xe3   :  { %2530 = vmatmul.mubr.bf16.vlgmr.msra.gmra.mrb[8].mxu1 %v215_v3  ;;  %6785 = vmatpush3.bf16.msra.mxu0 %v7595_v6  ;;  %v7644_v3 = vld [vmem:[%s10239_s1 + $0x4a0] sm:$0xff]   ;;  %v7647_v6 = vld [vmem:[%s10239_s1 + $0x428] sm:$0xff]  }
  0xe4   :  { %6807 = vmatpush3.bf16.msra.mxu1 %v7596_v7  ;;  %6786 = vmatprep.subr.bf16.mxu0 %v7597_v8  ;;  %v7648_v7 = vld [vmem:[%s10239_s1 + $0x4a8] sm:$0xff]   ;;  %v7649_v8 = vld [vmem:[%s10239_s1 + $0x470] sm:$0xff]  }
  0xe5   :  { %6808 = vmatprep.subr.bf16.mxu1 %v7598_v9  ;;  %2570 = vmatprep.mubr.bf16.mxu0 %v218_v39  ;;  %v7650_v9 = vld [vmem:[%s10239_s1 + $0x4f0] sm:$0xff]  }
  0xe6   :  { %2611 = vmatprep.mubr.bf16.mxu1 %v220_v43  ;;  %v7668_v39 = vld [vmem:[%s10239_s1 + $0x590] sm:$0xff]   ;;  %v7672_v43 = vld [vmem:[%s10239_s1 + $0x598] sm:$0xff]  }
  0xe7   :  { %6787 = vmatpush3.bf16.msra.mxu0 %v7599_v10  ;;  %v7651_v10 = vld [vmem:[%s10239_s1 + $0x430] sm:$0xff]  }
  0xe8   :  { %6809 = vmatpush3.bf16.msra.mxu1 %v7600_v11  ;;  %6788 = vmatprep.subr.bf16.mxu0 %v7601_v12  ;;  %v7652_v11 = vld [vmem:[%s10239_s1 + $0x4b0] sm:$0xff]   ;;  %v7653_v12 = vld [vmem:[%s10239_s1 + $0x478] sm:$0xff]  }
  0xe9   :  { %6810 = vmatprep.subr.bf16.mxu1 %v7602_v13  ;;  %v7654_v13 = vld [vmem:[%s10239_s1 + $0x4f8] sm:$0xff]  }
  0xeb   :  { %6789 = vmatpush3.bf16.msra.mxu0 %v7603_v14  ;;  %v7655_v14 = vld [vmem:[%s10239_s1 + $0x438] sm:$0xff]  }
  0xec   :  { %6811 = vmatpush3.bf16.msra.mxu1 %v7604_v15  ;;  %6790 = vmatprep.subr.bf16.mxu0 %v7605_v16  ;;  %v7656_v15 = vld [vmem:[%s10239_s1 + $0x4b8] sm:$0xff]   ;;  %v158_v16 = vld [vmem:[%s10238_s0 + $0x88] sm:$0xff] }
  0xed   :  { %6812 = vmatprep.subr.bf16.mxu1 %v7606_v17  ;;  %v190_v17 = vld [vmem:[%s10238_s0 + $0x188] sm:$0xff] }
  0xef   :  { %6791 = vmatpush3.bf16.msra.mxu0 %v7607_v18  ;;  %v160_v18 = vld [vmem:[%s10238_s0 + $0x98] sm:$0xff] }
  0xf0   :  { %6813 = vmatpush3.bf16.msra.mxu1 %v7608_v19  ;;  %6792 = vmatprep.subr.bf16.mxu0 %v7609_v20  ;;  %v192_v19 = vld [vmem:[%s10238_s0 + $0x198] sm:$0xff]  ;;  %v222_v20 = vpack.c.bf16 %v190_v17, %v158_v16  ;;  %v7697_v16 = vld [vmem:[%s10239_s1 + $0x650] sm:$0xff]  }
  0xf1   :  { %6814 = vmatprep.subr.bf16.mxu1 %v7610_v21  ;;  %v224_v21 = vpack.c.bf16 %v192_v19, %v160_v18  ;;  %v7698_v17 = vld [vmem:[%s10239_s1 + $0x6d0] sm:$0xff]  }
  0xf2   :  { %v7699_v18 = vld [vmem:[%s10239_s1 + $0x610] sm:$0xff]  }
  0xf3   :  { %6793 = vmatpush3.bf16.msra.mxu0 %v7611_v22  ;;  %v157_v22 = vld [vmem:[%s10238_s0 + $0x80] sm:$0xff]  ;;  %v7700_v19 = vld [vmem:[%s10239_s1 + $0x690] sm:$0xff]  }
  0xf4   :  { %6815 = vmatpush3.bf16.msra.mxu1 %v7612_v23  ;;  %6794 = vmatprep.subr.bf16.mxu0 %v7613_v24  ;;  %v189_v23 = vld [vmem:[%s10238_s0 + $0x180] sm:$0xff]  ;;  %v159_v24 = vld [vmem:[%s10238_s0 + $0x90] sm:$0xff] }
  0xf5   :  { %6816 = vmatprep.subr.bf16.mxu1 %v7614_v25  ;;  %v221_v25 = vpack.c.bf16 %v189_v23, %v157_v22  ;;  %v7703_v22 = vld [vmem:[%s10239_s1 + $0x618] sm:$0xff]  }
  0xf6   :  { %v7704_v23 = vld [vmem:[%s10239_s1 + $0x698] sm:$0xff]  }
  0xf7   :  { %6795 = vmatpush3.bf16.msra.mxu0 %v7615_v26  ;;  %v191_v26 = vld [vmem:[%s10238_s0 + $0x190] sm:$0xff] }
  0xf8   :  { %6817 = vmatpush3.bf16.msra.mxu1 %v7616_v27  ;;  %6796 = vmatprep.subr.bf16.mxu0 %v7617_v28  ;;  %v223_v27 = vpack.c.bf16 %v191_v26, %v159_v24  ;;  %v7657_v28 = vld [vmem:[%s10239_s1 + $0x540] sm:$0xff]  }
  0xf9   :  { %6818 = vmatprep.subr.bf16.mxu1 %v7618_v29  ;;  %v7658_v29 = vld [vmem:[%s10239_s1 + $0x5c0] sm:$0xff]  }
  0xfa   :  { %v7705_v24 = vld [vmem:[%s10239_s1 + $0x660] sm:$0xff]  }
  0xfb   :  { %6797 = vmatpush3.bf16.msra.mxu0 %v7619_v30  ;;  %v7659_v30 = vld [vmem:[%s10239_s1 + $0x500] sm:$0xff]  }
  0xfc   :  { %6819 = vmatpush3.bf16.msra.mxu1 %v7620_v31  ;;  %6798 = vmatprep.subr.bf16.mxu0 %v7621_v32  ;;  %v7660_v31 = vld [vmem:[%s10239_s1 + $0x580] sm:$0xff]   ;;  %v7661_v32 = vld [vmem:[%s10239_s1 + $0x548] sm:$0xff]  }
  0xfd   :  { %6820 = vmatprep.subr.bf16.mxu1 %v7622_v33  ;;  %v7662_v33 = vld [vmem:[%s10239_s1 + $0x5c8] sm:$0xff]   ;;  %v7707_v26 = vld [vmem:[%s10239_s1 + $0x620] sm:$0xff]  }
  0xff   :  { %6799 = vmatpush3.bf16.msra.mxu0 %v7623_v34  ;;  %v7663_v34 = vld [vmem:[%s10239_s1 + $0x508] sm:$0xff]  }
 0x100   :  { %6821 = vmatpush3.bf16.msra.mxu1 %v7624_v35  ;;  %6828 = vmatprep.subr.bf16.mxu0 %v7625_v48  ;;  %v7664_v35 = vld [vmem:[%s10239_s1 + $0x588] sm:$0xff]  }
 0x101   :  { %6850 = vmatprep.subr.bf16.mxu1 %v7626_v49  ;;  %v7677_v48 = vld [vmem:[%s10239_s1 + $0x568] sm:$0xff]  }
 0x102   :  { %2571 = vmatmul.mubr.bf16.vlgmr.msra.gmra.mrb[12].mxu0 %v217_v44  ;;  %v7673_v44 = vld [vmem:[%s10239_s1 + $0x560] sm:$0xff]   ;;  %v7678_v49 = vld [vmem:[%s10239_s1 + $0x5e8] sm:$0xff]  }
 0x103   :  { %2612 = vmatmul.mubr.bf16.vlgmr.msra.gmra.mrb[12].mxu1 %v219_v47  ;;  %6829 = vmatpush3.bf16.msra.mxu0 %v7627_v50  ;;  %v7676_v47 = vld [vmem:[%s10239_s1 + $0x5a0] sm:$0xff]   ;;  %v7679_v50 = vld [vmem:[%s10239_s1 + $0x528] sm:$0xff]  }
 0x104   :  { %6851 = vmatpush3.bf16.msra.mxu1 %v7628_v51  ;;  %6830 = vmatprep.subr.bf16.mxu0 %v7629_v52  ;;  %v7680_v51 = vld [vmem:[%s10239_s1 + $0x5a8] sm:$0xff]   ;;  %v7681_v52 = vld [vmem:[%s10239_s1 + $0x570] sm:$0xff]  }
 0x105   :  { %6852 = vmatprep.subr.bf16.mxu1 %v7630_v53  ;;  %2652 = vmatprep.mubr.bf16.mxu0 %v222_v20  ;;  %v7682_v53 = vld [vmem:[%s10239_s1 + $0x5f0] sm:$0xff]   ;;  %v7701_v20 = vld [vmem:[%s10239_s1 + $0x658] sm:$0xff]  }
 0x106   :  { %2693 = vmatprep.mubr.bf16.mxu1 %v224_v21  ;;  %v7702_v21 = vld [vmem:[%s10239_s1 + $0x6d8] sm:$0xff]  }
 0x107   :  { %6831 = vmatpush3.bf16.msra.mxu0 %v7631_v54  ;;  %v7683_v54 = vld [vmem:[%s10239_s1 + $0x530] sm:$0xff]  }
 0x108   :  { %6853 = vmatpush3.bf16.msra.mxu1 %v7632_v55  ;;  %6832 = vmatprep.subr.bf16.mxu0 %v7633_v56  ;;  %v7684_v55 = vld [vmem:[%s10239_s1 + $0x5b0] sm:$0xff]   ;;  %v7685_v56 = vld [vmem:[%s10239_s1 + $0x578] sm:$0xff]  }
 0x109   :  { %6854 = vmatprep.subr.bf16.mxu1 %v7634_v57  ;;  %v7686_v57 = vld [vmem:[%s10239_s1 + $0x5f8] sm:$0xff]  }
 0x10b   :  { %6833 = vmatpush3.bf16.msra.mxu0 %v7635_v58  ;;  %v7687_v58 = vld [vmem:[%s10239_s1 + $0x538] sm:$0xff]  }
 0x10c   :  { %6855 = vmatpush3.bf16.msra.mxu1 %v7636_v59  ;;  %6834 = vmatprep.subr.bf16.mxu0 %v7637_v60  ;;  %v7688_v59 = vld [vmem:[%s10239_s1 + $0x5b8] sm:$0xff]   ;;  %v162_v60 = vld [vmem:[%s10238_s0 + $0xa8] sm:$0xff] }
 0x10d   :  { %6856 = vmatprep.subr.bf16.mxu1 %v7638_v61  ;;  %v194_v61 = vld [vmem:[%s10238_s0 + $0x1a8] sm:$0xff] }
 0x10f   :  { %6835 = vmatpush3.bf16.msra.mxu0 %v7639_v62  ;;  %v226_v62 = vpack.c.bf16 %v194_v61, %v162_v60  ;;  %v7727_v60 = vld [vmem:[%s10239_s1 + $0x708] sm:$0xff]  }
 0x110   :  { %6857 = vmatpush3.bf16.msra.mxu1 %v7640_v63  ;;  %6836 = vmatprep.subr.bf16.mxu0 %v7641_v0  ;;  %v164_v63 = vld [vmem:[%s10238_s0 + $0xb8] sm:$0xff] }
 0x111   :  { %6858 = vmatprep.subr.bf16.mxu1 %v7642_v1  ;;  %v196_v0 = vld [vmem:[%s10238_s0 + $0x1b8] sm:$0xff]  ;;  %v161_v1 = vld [vmem:[%s10238_s0 + $0xa0] sm:$0xff] }
 0x113   :  { %6837 = vmatpush3.bf16.msra.mxu0 %v7643_v2  ;;  %v228_v2 = vpack.c.bf16 %v196_v0, %v164_v63 }
 0x114   :  { %6859 = vmatpush3.bf16.msra.mxu1 %v7644_v3  ;;  %6838 = vmatprep.subr.bf16.mxu0 %v7645_v4  ;;  %v193_v3 = vld [vmem:[%s10238_s0 + $0x1a0] sm:$0xff]  ;;  %v163_v4 = vld [vmem:[%s10238_s0 + $0xb0] sm:$0xff] }
 0x115   :  { %6860 = vmatprep.subr.bf16.mxu1 %v7646_v5  ;;  %v195_v5 = vld [vmem:[%s10238_s0 + $0x1b0] sm:$0xff] }
 0x117   :  { %6839 = vmatpush3.bf16.msra.mxu0 %v7647_v6  ;;  %v225_v6 = vpack.c.bf16 %v193_v3, %v161_v1  ;;  %v7729_v1 = vld [vmem:[%s10239_s1 + $0x750] sm:$0xff]  }
 0x118   :  { %6861 = vmatpush3.bf16.msra.mxu1 %v7648_v7  ;;  %6840 = vmatprep.subr.bf16.mxu0 %v7649_v8  ;;  %v227_v7 = vpack.c.bf16 %v195_v5, %v163_v4  ;;  %v7689_v8 = vld [vmem:[%s10239_s1 + $0x640] sm:$0xff]   ;;  %v7730_v4 = vld [vmem:[%s10239_s1 + $0x7d0] sm:$0xff]  }
 0x119   :  { %6862 = vmatprep.subr.bf16.mxu1 %v7650_v9  ;;  %v7690_v9 = vld [vmem:[%s10239_s1 + $0x6c0] sm:$0xff]  }
 0x11b   :  { %6841 = vmatpush3.bf16.msra.mxu0 %v7651_v10  ;;  %v7691_v10 = vld [vmem:[%s10239_s1 + $0x600] sm:$0xff]  }
 0x11c   :  { %6863 = vmatpush3.bf16.msra.mxu1 %v7652_v11  ;;  %6842 = vmatprep.subr.bf16.mxu0 %v7653_v12  ;;  %v7692_v11 = vld [vmem:[%s10239_s1 + $0x680] sm:$0xff]   ;;  %v7693_v12 = vld [vmem:[%s10239_s1 + $0x648] sm:$0xff]  }
 0x11d   :  { %6864 = vmatprep.subr.bf16.mxu1 %v7654_v13  ;;  %v7694_v13 = vld [vmem:[%s10239_s1 + $0x6c8] sm:$0xff]  }
 0x11f   :  { %6843 = vmatpush3.bf16.msra.mxu0 %v7655_v14  ;;  %v7695_v14 = vld [vmem:[%s10239_s1 + $0x608] sm:$0xff]  }
 0x120   :  { %6865 = vmatpush3.bf16.msra.mxu1 %v7656_v15  ;;  %6872 = vmatprep.subr.bf16.mxu0 %v7657_v28  ;;  %v7696_v15 = vld [vmem:[%s10239_s1 + $0x688] sm:$0xff]  }
 0x121   :  { %6894 = vmatprep.subr.bf16.mxu1 %v7658_v29  ;;  %v7709_v28 = vld [vmem:[%s10239_s1 + $0x668] sm:$0xff]  }
 0x122   :  { %2653 = vmatmul.mubr.bf16.vlgmr.msra.gmra.mrb[16].mxu0 %v221_v25  ;;  %v7706_v25 = vld [vmem:[%s10239_s1 + $0x6e0] sm:$0xff]   ;;  %v7710_v29 = vld [vmem:[%s10239_s1 + $0x6e8] sm:$0xff]  }
 0x123   :  { %2694 = vmatmul.mubr.bf16.vlgmr.msra.gmra.mrb[16].mxu1 %v223_v27  ;;  %6873 = vmatpush3.bf16.msra.mxu0 %v7659_v30  ;;  %v7708_v27 = vld [vmem:[%s10239_s1 + $0x6a0] sm:$0xff]   ;;  %v7711_v30 = vld [vmem:[%s10239_s1 + $0x628] sm:$0xff]  }
 0x124   :  { %6895 = vmatpush3.bf16.msra.mxu1 %v7660_v31  ;;  %6874 = vmatprep.subr.bf16.mxu0 %v7661_v32  ;;  %v7712_v31 = vld [vmem:[%s10239_s1 + $0x6a8] sm:$0xff]   ;;  %v7713_v32 = vld [vmem:[%s10239_s1 + $0x670] sm:$0xff]  }
 0x125   :  { %6896 = vmatprep.subr.bf16.mxu1 %v7662_v33  ;;  %2734 = vmatprep.mubr.bf16.mxu0 %v226_v62  ;;  %v7714_v33 = vld [vmem:[%s10239_s1 + $0x6f0] sm:$0xff]   ;;  %v7728_v62 = vld [vmem:[%s10239_s1 + $0x788] sm:$0xff]  }
 0x126   :  { %2775 = vmatprep.mubr.bf16.mxu1 %v228_v2 }
 0x127   :  { %6875 = vmatpush3.bf16.msra.mxu0 %v7663_v34  ;;  %v7715_v34 = vld [vmem:[%s10239_s1 + $0x630] sm:$0xff]  }
 0x128   :  { %6897 = vmatpush3.bf16.msra.mxu1 %v7664_v35  ;;  %6876 = vmatprep.subr.bf16.mxu0 %v7665_v36  ;;  %v7716_v35 = vld [vmem:[%s10239_s1 + $0x6b0] sm:$0xff]   ;;  %v7717_v36 = vld [vmem:[%s10239_s1 + $0x678] sm:$0xff]  }
 0x129   :  { %6898 = vmatprep.subr.bf16.mxu1 %v7666_v37  ;;  %v7718_v37 = vld [vmem:[%s10239_s1 + $0x6f8] sm:$0xff]  }
 0x12b   :  { %6877 = vmatpush3.bf16.msra.mxu0 %v7667_v38  ;;  %v7719_v38 = vld [vmem:[%s10239_s1 + $0x638] sm:$0xff]  }
 0x12c   :  { %6899 = vmatpush3.bf16.msra.mxu1 %v7668_v39  ;;  %6878 = vmatprep.subr.bf16.mxu0 %v7669_v40  ;;  %v7720_v39 = vld [vmem:[%s10239_s1 + $0x6b8] sm:$0xff]   ;;  %v166_v40 = vld [vmem:[%s10238_s0 + $0xc8] sm:$0xff] }
 0x12d   :  { %6900 = vmatprep.subr.bf16.mxu1 %v7670_v41  ;;  %v198_v41 = vld [vmem:[%s10238_s0 + $0x1c8] sm:$0xff] }
 0x12f   :  { %6879 = vmatpush3.bf16.msra.mxu0 %v7671_v42  ;;  %v168_v42 = vld [vmem:[%s10238_s0 + $0xd8] sm:$0xff] }
 0x130   :  { %6901 = vmatpush3.bf16.msra.mxu1 %v7672_v43  ;;  %6880 = vmatprep.subr.bf16.mxu0 %v7673_v44  ;;  %v230_v43 = vpack.c.bf16 %v198_v41, %v166_v40  ;;  %v200_v44 = vld [vmem:[%s10238_s0 + $0x1d8] sm:$0xff] }
 0x131   :  { %6902 = vmatprep.subr.bf16.mxu1 %v7674_v45  ;;  %v165_v45 = vld [vmem:[%s10238_s0 + $0xc0] sm:$0xff]  ;;  %v204_v41 = vld [vmem:[%s10238_s0 + $0x1f8] sm:$0xff] }
 0x133   :  { %6881 = vmatpush3.bf16.msra.mxu0 %v7675_v46  ;;  %v197_v46 = vld [vmem:[%s10238_s0 + $0x1c0] sm:$0xff] }
 0x134   :  { %6903 = vmatpush3.bf16.msra.mxu1 %v7676_v47  ;;  %6882 = vmatprep.subr.bf16.mxu0 %v7677_v48  ;;  %v232_v47 = vpack.c.bf16 %v200_v44, %v168_v42  ;;  %v229_v48 = vpack.c.bf16 %v197_v46, %v165_v45  ;;  %v169_v42 = vld [vmem:[%s10238_s0 + $0xe0] sm:$0xff]  ;;  %v171_v46 = vld [vmem:[%s10238_s0 + $0xf0] sm:$0xff] }
 0x135   :  { %6904 = vmatprep.subr.bf16.mxu1 %v7678_v49  ;;  %v167_v49 = vld [vmem:[%s10238_s0 + $0xd0] sm:$0xff] }
 0x137   :  { %6883 = vmatpush3.bf16.msra.mxu0 %v7679_v50  ;;  %v199_v50 = vld [vmem:[%s10238_s0 + $0x1d0] sm:$0xff] }
 0x138   :  { %6905 = vmatpush3.bf16.msra.mxu1 %v7680_v51  ;;  %6884 = vmatprep.subr.bf16.mxu0 %v7681_v52  ;;  %v231_v51 = vpack.c.bf16 %v199_v50, %v167_v49  ;;  %v7721_v52 = vld [vmem:[%s10239_s1 + $0x740] sm:$0xff]  }
 0x139   :  { %6906 = vmatprep.subr.bf16.mxu1 %v7682_v53  ;;  %v7722_v53 = vld [vmem:[%s10239_s1 + $0x7c0] sm:$0xff]  }
 0x13b   :  { %6885 = vmatpush3.bf16.msra.mxu0 %v7683_v54  ;;  %v7723_v54 = vld [vmem:[%s10239_s1 + $0x700] sm:$0xff]  }
 0x13c   :  { %6907 = vmatpush3.bf16.msra.mxu1 %v7684_v55  ;;  %6886 = vmatprep.subr.bf16.mxu0 %v7685_v56  ;;  %v7724_v55 = vld [vmem:[%s10239_s1 + $0x780] sm:$0xff]   ;;  %v7725_v56 = vld [vmem:[%s10239_s1 + $0x748] sm:$0xff]  }
 0x13d   :  { %6908 = vmatprep.subr.bf16.mxu1 %v7686_v57 }
 0x13f   :  { %6887 = vmatpush3.bf16.msra.mxu0 %v7687_v58  ;;  %v7726_v58 = vld [vmem:[%s10239_s1 + $0x7c8] sm:$0xff]  }
 0x140   :  { %6909 = vmatpush3.bf16.msra.mxu1 %v7688_v59  ;;  %6916 = vmatprep.subr.bf16.mxu0 %v7689_v8  ;;  %v7732_v8 = vld [vmem:[%s10239_s1 + $0x790] sm:$0xff]  }
 0x141   :  { %6938 = vmatprep.subr.bf16.mxu1 %v7690_v9 }
 0x142   :  { %2735 = vmatmul.mubr.bf16.vlgmr.msra.gmra.mrb[20].mxu0 %v225_v6  ;;  %v7731_v6 = vld [vmem:[%s10239_s1 + $0x710] sm:$0xff]  }
 0x143   :  { %2776 = vmatmul.mubr.bf16.vlgmr.msra.gmra.mrb[20].mxu1 %v227_v7  ;;  %6917 = vmatpush3.bf16.msra.mxu0 %v7691_v10 }
 0x144   :  { %6939 = vmatpush3.bf16.msra.mxu1 %v7692_v11  ;;  %6918 = vmatprep.subr.bf16.mxu0 %v7693_v12  ;;  %v7733_v11 = vld [vmem:[%s10239_s1 + $0x758] sm:$0xff]  }
 0x145   :  { %6940 = vmatprep.subr.bf16.mxu1 %v7694_v13  ;;  %2816 = vmatprep.mubr.bf16.mxu0 %v230_v43  ;;  %v7734_v13 = vld [vmem:[%s10239_s1 + $0x7d8] sm:$0xff]   ;;  %v201_v43 = vld [vmem:[%s10238_s0 + $0x1e0] sm:$0xff] }
 0x146   :  { %2857 = vmatprep.mubr.bf16.mxu1 %v232_v47  ;;  %v233_v45 = vpack.c.bf16 %v201_v43, %v169_v42  ;;  %v203_v47 = vld [vmem:[%s10238_s0 + $0x1f0] sm:$0xff] }
 0x147   :  { %6919 = vmatpush3.bf16.msra.mxu0 %v7695_v14  ;;  %v7735_v14 = vld [vmem:[%s10239_s1 + $0x718] sm:$0xff]  }
 0x148   :  { %6941 = vmatpush3.bf16.msra.mxu1 %v7696_v15  ;;  %6920 = vmatprep.subr.bf16.mxu0 %v7697_v16  ;;  %v7736_v15 = vld [vmem:[%s10239_s1 + $0x798] sm:$0xff]   ;;  %v7737_v16 = vld [vmem:[%s10239_s1 + $0x760] sm:$0xff]  }
 0x149   :  { %6942 = vmatprep.subr.bf16.mxu1 %v7698_v17  ;;  %v7738_v17 = vld [vmem:[%s10239_s1 + $0x7e0] sm:$0xff]   ;;  %v7770_v43 = vld [vmem:[%s10241_s3 + $0x54] ss:$8 sps:$4 sm:$0xff]  }
 0x14b   :  { %6921 = vmatpush3.bf16.msra.mxu0 %v7699_v18  ;;  %v7739_v18 = vld [vmem:[%s10239_s1 + $0x720] sm:$0xff]  }
 0x14c   :  { %6943 = vmatpush3.bf16.msra.mxu1 %v7700_v19  ;;  %6922 = vmatprep.subr.bf16.mxu0 %v7701_v20  ;;  %v7740_v19 = vld [vmem:[%s10239_s1 + $0x7a0] sm:$0xff]  }
 0x14d   :  { %6944 = vmatprep.subr.bf16.mxu1 %v7702_v21  ;;  %v6290_v20 = vld [vmem:[%s10240_s2] ss:$0 sm:$0xff] }
 0x14f   :  { %6923 = vmatpush3.bf16.msra.mxu0 %v7703_v22  ;;  %v7741_v22 = vld [vmem:[%s10239_s1 + $0x768] sm:$0xff]  }
 0x150   :  { %6945 = vmatpush3.bf16.msra.mxu1 %v7704_v23  ;;  %6924 = vmatprep.subr.bf16.mxu0 %v7705_v24  ;;  %v7742_v24 = vld [vmem:[%s10239_s1 + $0x7e8] sm:$0xff]  }
 0x151   :  { %6946 = vmatprep.subr.bf16.mxu1 %v7706_v25 }
 0x153   :  { %6925 = vmatpush3.bf16.msra.mxu0 %v7707_v26  ;;  %v7743_v26 = vld [vmem:[%s10239_s1 + $0x728] sm:$0xff]  }
 0x154   :  { %6947 = vmatpush3.bf16.msra.mxu1 %v7708_v27  ;;  %6926 = vmatprep.subr.bf16.mxu0 %v7709_v28  ;;  %v7744_v28 = vld [vmem:[%s10239_s1 + $0x7a8] sm:$0xff]  }
 0x155   :  { %6948 = vmatprep.subr.bf16.mxu1 %v7710_v29  ;;  %v7745_v29 = vld [vmem:[%s10239_s1 + $0x770] sm:$0xff]  }
 0x157   :  { %6927 = vmatpush3.bf16.msra.mxu0 %v7711_v30  ;;  %v7746_v30 = vld [vmem:[%s10239_s1 + $0x7f0] sm:$0xff]  }
 0x158   :  { %6949 = vmatpush3.bf16.msra.mxu1 %v7712_v31  ;;  %6928 = vmatprep.subr.bf16.mxu0 %v7713_v32  ;;  %v7747_v31 = vld [vmem:[%s10239_s1 + $0x730] sm:$0xff]  }
 0x159   :  { %6950 = vmatprep.subr.bf16.mxu1 %v7714_v33  ;;  %v7748_v32 = vld [vmem:[%s10239_s1 + $0x7b0] sm:$0xff]   ;;  %v7749_v33 = vld [vmem:[%s10239_s1 + $0x778] sm:$0xff]  }
 0x15b   :  { %6929 = vmatpush3.bf16.msra.mxu0 %v7715_v34  ;;  %v7750_v34 = vld [vmem:[%s10239_s1 + $0x7f8] sm:$0xff]  }
 0x15c   :  { %6951 = vmatpush3.bf16.msra.mxu1 %v7716_v35  ;;  %6930 = vmatprep.subr.bf16.mxu0 %v7717_v36  ;;  %v7751_v35 = vld [vmem:[%s10239_s1 + $0x738] sm:$0xff]  }
 0x15d   :  { %6952 = vmatprep.subr.bf16.mxu1 %v7718_v37  ;;  %v7752_v36 = vld [vmem:[%s10239_s1 + $0x7b8] sm:$0xff]   ;;  %v170_v37 = vld [vmem:[%s10238_s0 + $0xe8] sm:$0xff] }
 0x15f   :  { %6931 = vmatpush3.bf16.msra.mxu0 %v7719_v38  ;;  %v202_v38 = vld [vmem:[%s10238_s0 + $0x1e8] sm:$0xff] }
 0x160   :  { %6953 = vmatpush3.bf16.msra.mxu1 %v7720_v39  ;;  %6960 = vmatprep.subr.bf16.mxu0 %v7721_v52  ;;  %v172_v39 = vld [vmem:[%s10238_s0 + $0xf8] sm:$0xff]  ;;  %v234_v40 = vpack.c.bf16 %v202_v38, %v170_v37 }
 0x161   :  { %6982 = vmatprep.subr.bf16.mxu1 %v7722_v53  ;;  %v236_v44 = vpack.c.bf16 %v204_v41, %v172_v39 }
 0x162   :  { %2817 = vmatmul.mubr.bf16.vlgmr.msra.gmra.mrb[24].mxu0 %v229_v48  ;;  %v235_v48 = vpack.c.bf16 %v203_v47, %v171_v46  ;;  %v7771_v46 = vld [vmem:[%s10241_s3 + $0x60] ss:$8 sps:$4 sm:$0xff]   ;;  %v7776_v47 = vld [vmem:[%s10241_s3 + $0x74] ss:$8 sps:$4 sm:$0xff]  }
 0x163   :  { %2858 = vmatmul.mubr.bf16.vlgmr.msra.gmra.mrb[24].mxu1 %v231_v51  ;;  %6961 = vmatpush3.bf16.msra.mxu0 %v7723_v54 }
 0x164   :  { %6983 = vmatpush3.bf16.msra.mxu1 %v7724_v55  ;;  %6962 = vmatprep.subr.bf16.mxu0 %v7725_v56 }
 0x165   :  { %6984 = vmatprep.subr.bf16.mxu1 %v7726_v58  ;;  %2898 = vmatprep.mubr.bf16.mxu0 %v234_v40 }
 0x166   :  { %2939 = vmatprep.mubr.bf16.mxu1 %v236_v44  ;;  %v7768_v44 = vld [vmem:[%s10241_s3 + $0x50] ss:$8 sps:$4 sm:$0xff]  }
 0x167   :  { %6963 = vmatpush3.bf16.msra.mxu0 %v7727_v60 }
 0x168   :  { %6985 = vmatpush3.bf16.msra.mxu1 %v7728_v62  ;;  %6964 = vmatprep.subr.bf16.mxu0 %v7729_v1 }
 0x169   :  { %6986 = vmatprep.subr.bf16.mxu1 %v7730_v4 }
 0x16b   :  { %6965 = vmatpush3.bf16.msra.mxu0 %v7731_v6 }
 0x16c   :  { %6987 = vmatpush3.bf16.msra.mxu1 %v7732_v8  ;;  %6966 = vmatprep.subr.bf16.mxu0 %v7733_v11 }
 0x16d   :  { %6988 = vmatprep.subr.bf16.mxu1 %v7734_v13 }
 0x16f   :  { %6967 = vmatpush3.bf16.msra.mxu0 %v7735_v14 }
 0x170   :  { %6989 = vmatpush3.bf16.msra.mxu1 %v7736_v15  ;;  %6968 = vmatprep.subr.bf16.mxu0 %v7737_v16 }
 0x171   :  { %6990 = vmatprep.subr.bf16.mxu1 %v7738_v17  ;;  %v7753_v17 = vld [vmem:[%s10241_s3] ss:$8 sps:$4 sm:$0xff]  }
 0x173   :  { %6969 = vmatpush3.bf16.msra.mxu0 %v7739_v18  ;;  %v7755_v18 = vld [vmem:[%s10241_s3 + $0x4] ss:$8 sps:$4 sm:$0xff]  }
 0x174   :  { %6991 = vmatpush3.bf16.msra.mxu1 %v7740_v19  ;;  %6970 = vmatprep.subr.bf16.mxu0 %v7741_v22  ;;  %v7758_v19 = vld [vmem:[%s10241_s3 + $0x14] ss:$8 sps:$4 sm:$0xff]   ;;  %v7759_v22 = vld [vmem:[%s10241_s3 + $0x20] ss:$8 sps:$4 sm:$0xff]  }
 0x175   :  { %v6668_v57 = vpop.f32.mrb[0].mxu0  ;;  %6992 = vmatprep.subr.bf16.mxu1 %v7742_v24  ;;  %v7762_v24 = vld [vmem:[%s10241_s3 + $0x30] ss:$8 sps:$4 sm:$0xff]  }
 0x176   :  { %v6690_v59 = vpop.f32.mrb[0].mxu1  ;;  %v6669_v61 = vpop.f32.mrb[1].mxu0 }
 0x177   :  { %v6670_v63 = vadd.f32 %v6669_v61, %v6668_v57  ;;  %v6691_v0 = vpop.f32.mrb[1].mxu1  ;;  %v6671_v3 = vpop.f32.mrb[2].mxu0  ;;  %6971 = vmatpush3.bf16.msra.mxu0 %v7743_v26  ;;  %v7765_v26 = vld [vmem:[%s10241_s3 + $0x40] ss:$8 sps:$4 sm:$0xff]  }
 0x178   :  { %v6692_v2 = vadd.f32 %v6691_v0, %v6690_v59  ;;  %v6693_v5 = vpop.f32.mrb[2].mxu1  ;;  %v6672_v7 = vpop.f32.mrb[3].mxu0  ;;  %6993 = vmatpush3.bf16.msra.mxu1 %v7744_v28  ;;  %6972 = vmatprep.subr.bf16.mxu0 %v7745_v29 }
 0x179   :  { %v6673_v9 = vadd.f32 %v6672_v7, %v6671_v3  ;;  %v6694_v10 = vpop.f32.mrb[3].mxu1  ;;  %v2327_v21 = vadd.f32 %v6670_v63, %v6290_v20  ;;  %6994 = vmatprep.subr.bf16.mxu1 %v7746_v30 }
 0x17a   :  { %v6695_v12 = vadd.f32 %v6694_v10, %v6693_v5 }
 0x17b   :  { %v2330_v23 = vadd.f32 %v6673_v9, %v6290_v20  ;;  %v2368_v25 = vadd.f32 %v6692_v2, %v2327_v21  ;;  %6973 = vmatpush3.bf16.msra.mxu0 %v7747_v31  ;;  %v7756_v20 = vld [vmem:[%s10241_s3 + $0x10] ss:$8 sps:$4 sm:$0xff]   ;;  %v7761_v21 = vld [vmem:[%s10241_s3 + $0x24] ss:$8 sps:$4 sm:$0xff]  }
 0x17c   :  { %6995 = vmatpush3.bf16.msra.mxu1 %v7748_v32  ;;  %6974 = vmatprep.subr.bf16.mxu0 %v7749_v33 }
 0x17d   :  { %v2371_v27 = vadd.f32 %v6695_v12, %v2330_v23  ;;  %6996 = vmatprep.subr.bf16.mxu1 %v7750_v34  ;;  %v7764_v23 = vld [vmem:[%s10241_s3 + $0x34] ss:$8 sps:$4 sm:$0xff]  }
 0x17f   :  { %6975 = vmatpush3.bf16.msra.mxu0 %v7751_v35 }
 0x180   :  { %6997 = vmatpush3.bf16.msra.mxu1 %v7752_v36  ;;  %3059 = vmatprep.subr.bf16.mxu0 %v7755_v18 }
 0x182   :  { %2899 = vmatmul.mubr.bf16.vlgmr.msra.gmra.mrb[28].mxu0 %v233_v45  ;;  %v7773_v45 = vld [vmem:[%s10241_s3 + $0x64] ss:$8 sps:$4 sm:$0xff]  }
 0x183   :  { %2940 = vmatmul.mubr.bf16.vlgmr.msra.gmra.mrb[28].mxu1 %v235_v48  ;;  %3060 = vmatpush1.bf16.msra.mxu0 %v7753_v17  ;;  %v9471_v48 = vld [vmem:[%s10242_s4] ss:$8 sps:$4 sm:$0xff]  }
 0x184   :  { %3061 = vmatprep.subr.bf16.mxu0 %v7758_v19 }
 0x187   :  { %3062 = vmatpush1.bf16.msra.mxu0 %v7756_v20 }
 0x188   :  { %3063 = vmatprep.subr.bf16.mxu0 %v7761_v21 }
 0x18b   :  { %3064 = vmatpush1.bf16.msra.mxu0 %v7759_v22 }
 0x18c   :  { %3065 = vmatprep.subr.bf16.mxu0 %v7764_v23 }
 0x18f   :  { %3066 = vmatpush1.bf16.msra.mxu0 %v7762_v24 }
 0x195   :  { %v6712_v49 = vpop.f32.mrb[4].mxu0 }
 0x196   :  { %v6734_v50 = vpop.f32.mrb[4].mxu1  ;;  %v6713_v51 = vpop.f32.mrb[5].mxu0 }
 0x197   :  { %v6714_v52 = vadd.f32 %v6713_v51, %v6712_v49  ;;  %v6735_v53 = vpop.f32.mrb[5].mxu1  ;;  %v6715_v54 = vpop.f32.mrb[6].mxu0  ;;  %v8258_v49 = vmov 0.0   ;;  %v8259_v51 = vmov 0  }
 0x198   :  { %v6736_v55 = vadd.f32 %v6735_v53, %v6734_v50  ;;  %v6737_v56 = vpop.f32.mrb[6].mxu1  ;;  %v6716_v57 = vpop.f32.mrb[7].mxu0  ;;  %7127 = vmatprep.subr.bf16.mxu1 %v8258_v49  ;;  %v7774_v50 = vld [vmem:[%s10241_s3 + $0x70] ss:$8 sps:$4 sm:$0xff]   ;;  %3091 = vmatprep.mubr.bf16.mxu0 %v8259_v51  ;;  %v3114_v53 = vld [vmem:[%s10247_s9] sm:$0x3] }
 0x199   :  { %v2409_v58 = vadd.f32 %v6714_v52, %v2368_v25  ;;  %v6717_v59 = vadd.f32 %v6716_v57, %v6715_v54  ;;  %v6738_v60 = vpop.f32.mrb[7].mxu1  ;;  %v7767_v25 = vld [vmem:[%s10241_s3 + $0x44] ss:$8 sps:$4 sm:$0xff]   ;;  %7128 = vmatpush3.bf16.msra.mxu1 %v9471_v48  ;;  %v9483_v52 = vld [vmem:[%s10242_s4 + $0x10] ss:$8 sps:$4 sm:$0xff]   ;;  %7131 = vmatprep.mubr.msk.bf16.mxu1 %vm8260_vm0, %v8258_v49  ;;  %v3121_v54 = vpack.c.bf16 %v3114_v53, %v3114_v53 }
 0x19a   :  { %v6739_v61 = vadd.f32 %v6738_v60, %v6737_v56  ;;  %3067 = vmatprep.subr.bf16.mxu0 %v7767_v25  ;;  %7129 = vmatprep.subr.bf16.mxu1 %v8258_v49  ;;  %v3115_v56 = vld [vmem:[#allocation10] sm:$0x3]  ;;  %v9504_v57 = vld [vmem:[%s10242_s4 + $0x14] ss:$8 sps:$4 sm:$0xff]  }
 0x19b   :  { %v2450_v62 = vadd.f32 %v6736_v55, %v2409_v58  ;;  %v2412_v63 = vadd.f32 %v6717_v59, %v2371_v27  ;;  %3068 = vmatpush1.bf16.msra.mxu0 %v7765_v26  ;;  %v9495_v55 = vld [vmem:[%s10242_s4 + $0x4] ss:$8 sps:$4 sm:$0xff]   ;;  %3187 = vrot.lane.b32.xlu1 %v3115_v56, %s8251_s7  ;;  %v6563_v58 = vld [vmem:[%s10247_s9 + $0x2] sm:$0x3] }
 0x19c   :  { %3069 = vmatprep.subr.bf16.mxu0 %v7770_v43  ;;  %v3208_v59 = vpack.c.bf16 %v6563_v58, %v6563_v58 }
 0x19d   :  { %v2453_v0 = vadd.f32 %v6739_v61, %v2412_v63  ;;  %7130 = vmatpush3.bf16.msra.mxu1 %v9483_v52 }
 0x19e   :  { %7135 = vmatprep.subr.bf16.mxu1 %v8258_v49 }
 0x19f   :  { %3070 = vmatpush1.bf16.msra.mxu0 %v7768_v44 }
 0x1a0   :  { %3071 = vmatprep.subr.bf16.mxu0 %v7773_v45  ;;  %7132 = vmatmul.mubr.msk.bf16.vlgmr.msra.gmra.mrb[32].mxu1 %vm3134_vm1, %v3121_v54 }
 0x1a1   :  { %7136 = vmatpush3.bf16.msra.mxu1 %v9495_v55  ;;  %7139 = vmatprep.mubr.msk.bf16.mxu1 %vm8260_vm0, %v8258_v49 }
 0x1a2   :  { %7137 = vmatprep.subr.bf16.mxu1 %v8258_v49 }
 0x1a3   :  { %3072 = vmatpush1.bf16.msra.mxu0 %v7771_v46 }
 0x1a4   :  { %3073 = vmatprep.subr.bf16.mxu0 %v7776_v47 }
 0x1a5   :  { %7138 = vmatpush3.bf16.msra.mxu1 %v9504_v57 }
 0x1a6   :  { %7143 = vmatprep.subr.bf16.mxu1 %v8258_v49 }
 0x1a7   :  { %3074 = vmatpush1.bf16.msra.mxu0 %v7774_v50 }
 0x1a8   :  { %7191 = vmatprep.subr.bf16.mxu0 %v8258_v49  ;;  %7140 = vmatmul.mubr.msk.bf16.vlgmr.msra.gmra.mrb[36].mxu1 %vm3134_vm1, %v3208_v59 }
 0x1a9   :  { %7144 = vmatpush3.bf16.msra.mxu1 %v9471_v48  ;;  %7147 = vmatprep.mubr.msk.bf16.mxu1 %vm8260_vm0, %v8258_v49 }
 0x1aa   :  { %7145 = vmatprep.subr.bf16.mxu1 %v8258_v49 }
 0x1ad   :  { %7146 = vmatpush3.bf16.msra.mxu1 %v9483_v52 }
 0x1ae   :  { %7151 = vmatprep.subr.bf16.mxu1 %v8258_v49 }
 0x1b5   :  { %v6756_v1 = vpop.f32.mrb[8].mxu0 }
 0x1b6   :  { %v6778_v2 = vpop.f32.mrb[8].mxu1  ;;  %v6757_v3 = vpop.f32.mrb[9].mxu0 }
 0x1b7   :  { %v6779_v4 = vpop.f32.mrb[9].mxu1  ;;  %v6758_v5 = vadd.f32 %v6757_v3, %v6756_v1  ;;  %v6759_v7 = vpop.f32.mrb[10].mxu0 }
 0x1b8   :  { %v6780_v6 = vadd.f32 %v6779_v4, %v6778_v2  ;;  %v6781_v8 = vpop.f32.mrb[10].mxu1  ;;  %v6760_v9 = vpop.f32.mrb[11].mxu0 }
 0x1b9   :  { %v6782_v10 = vpop.f32.mrb[11].mxu1  ;;  %v2491_v11 = vadd.f32 %v6758_v5, %v2450_v62  ;;  %v6761_v12 = vadd.f32 %v6760_v9, %v6759_v7 }
 0x1ba   :  { %v6783_v13 = vadd.f32 %v6782_v10, %v6781_v8 }
 0x1bb   :  { %v2532_v14 = vadd.f32 %v6780_v6, %v2491_v11  ;;  %v2494_v15 = vadd.f32 %v6761_v12, %v2453_v0 }
 0x1bd   :  { %v2535_v16 = vadd.f32 %v6783_v13, %v2494_v15 }
 0x1d5   :  { %v6800_v27 = vpop.f32.mrb[12].mxu0 }
 0x1d6   :  { %v6822_v28 = vpop.f32.mrb[12].mxu1  ;;  %v6801_v29 = vpop.f32.mrb[13].mxu0 }
 0x1d7   :  { %v6802_v30 = vadd.f32 %v6801_v29, %v6800_v27  ;;  %v6823_v31 = vpop.f32.mrb[13].mxu1  ;;  %v6803_v32 = vpop.f32.mrb[14].mxu0 }
 0x1d8   :  { %v6824_v33 = vadd.f32 %v6823_v31, %v6822_v28  ;;  %v6825_v34 = vpop.f32.mrb[14].mxu1  ;;  %v6804_v35 = vpop.f32.mrb[15].mxu0 }
 0x1d9   :  { %v2573_v36 = vadd.f32 %v6802_v30, %v2532_v14  ;;  %v6805_v37 = vadd.f32 %v6804_v35, %v6803_v32  ;;  %v6826_v38 = vpop.f32.mrb[15].mxu1 }
 0x1da   :  { %v6827_v39 = vadd.f32 %v6826_v38, %v6825_v34 }
 0x1db   :  { %v2614_v40 = vadd.f32 %v6824_v33, %v2573_v36  ;;  %v2576_v41 = vadd.f32 %v6805_v37, %v2535_v16 }
 0x1dd   :  { %v2617_v42 = vadd.f32 %v6827_v39, %v2576_v41 }
 0x1f5   :  { %v6844_v60 = vpop.f32.mrb[16].mxu0 }
 0x1f6   :  { %v6866_v61 = vpop.f32.mrb[16].mxu1  ;;  %v6845_v62 = vpop.f32.mrb[17].mxu0 }
 0x1f7   :  { %v6846_v63 = vadd.f32 %v6845_v62, %v6844_v60  ;;  %v6867_v0 = vpop.f32.mrb[17].mxu1  ;;  %v6847_v1 = vpop.f32.mrb[18].mxu0 }
 0x1f8   :  { %v6868_v2 = vadd.f32 %v6867_v0, %v6866_v61  ;;  %v6869_v3 = vpop.f32.mrb[18].mxu1  ;;  %v6848_v4 = vpop.f32.mrb[19].mxu0 }
 0x1f9   :  { %v2655_v5 = vadd.f32 %v6846_v63, %v2614_v40  ;;  %v6849_v6 = vadd.f32 %v6848_v4, %v6847_v1  ;;  %v6870_v7 = vpop.f32.mrb[19].mxu1 }
 0x1fa   :  { %v6871_v8 = vadd.f32 %v6870_v7, %v6869_v3 }
 0x1fb   :  { %v2696_v9 = vadd.f32 %v6868_v2, %v2655_v5  ;;  %v2658_v10 = vadd.f32 %v6849_v6, %v2617_v42 }
 0x1fd   :  { %v2699_v11 = vadd.f32 %v6871_v8, %v2658_v10 }
 0x215   :  { %v6888_v12 = vpop.f32.mrb[20].mxu0 }
 0x216   :  { %v6910_v13 = vpop.f32.mrb[20].mxu1  ;;  %v6889_v14 = vpop.f32.mrb[21].mxu0 }
 0x217   :  { %v6911_v15 = vpop.f32.mrb[21].mxu1  ;;  %v6890_v16 = vadd.f32 %v6889_v14, %v6888_v12  ;;  %v6891_v18 = vpop.f32.mrb[22].mxu0 }
 0x218   :  { %v6912_v17 = vadd.f32 %v6911_v15, %v6910_v13  ;;  %v6913_v19 = vpop.f32.mrb[22].mxu1  ;;  %v6892_v20 = vpop.f32.mrb[23].mxu0  ;;  %v2969_v13 = vlaneseq }
 0x219   :  { %v6914_v21 = vpop.f32.mrb[23].mxu1  ;;  %v2737_v22 = vadd.f32 %v6890_v16, %v2696_v9  ;;  %v6893_v23 = vadd.f32 %v6892_v20, %v6891_v18  ;;  %v2967_v16 = vld [vmem:[%s10243_s5] sm:$0x3]  ;;  %s8261_s5 = smov 64  }
 0x21a   :  { %v6915_v24 = vadd.f32 %v6914_v21, %v6913_v19  ;;  %v9527_v14 = vshrl.u32 %v2969_v13, 7 }
 0x21b   :  { %v2778_v25 = vadd.f32 %v6912_v17, %v2737_v22  ;;  %v2740_v26 = vadd.f32 %v6893_v23, %v2699_v11 }
 0x21c   :  { %v2971_v15 = vsub.s32 0, %v9527_v14  ;;  %v2975_v17 = vsub.s32 1, %v9527_v14 }
 0x21d   :  { %v2781_v27 = vadd.f32 %v6915_v24, %v2740_v26 }
 0x21e   :  { %v2972_v18 = vrot.slane %v2967_v16, %v2971_v15  ;;  %v2976_v19 = vrot.slane %v2967_v16, %v2975_v17 }
 0x235   :  { %v6932_v28 = vpop.f32.mrb[24].mxu0 }
 0x236   :  { %v6954_v29 = vpop.f32.mrb[24].mxu1  ;;  %v6933_v30 = vpop.f32.mrb[25].mxu0 }
 0x237   :  { %v6934_v31 = vadd.f32 %v6933_v30, %v6932_v28  ;;  %v6955_v32 = vpop.f32.mrb[25].mxu1  ;;  %v6935_v33 = vpop.f32.mrb[26].mxu0 }
 0x238   :  { %v6956_v34 = vadd.f32 %v6955_v32, %v6954_v29  ;;  %v6957_v35 = vpop.f32.mrb[26].mxu1  ;;  %v6936_v36 = vpop.f32.mrb[27].mxu0 }
 0x239   :  { %v2819_v37 = vadd.f32 %v6934_v31, %v2778_v25  ;;  %v6937_v38 = vadd.f32 %v6936_v36, %v6935_v33  ;;  %v6958_v39 = vpop.f32.mrb[27].mxu1 }
 0x23a   :  { %v6959_v40 = vadd.f32 %v6958_v39, %v6957_v35 }
 0x23b   :  { %v2860_v41 = vadd.f32 %v6956_v34, %v2819_v37  ;;  %v2822_v42 = vadd.f32 %v6937_v38, %v2781_v27  ;;  %v3119_v34 = vld [vmem:[#allocation10 + $0x2] sm:$0x3] }
 0x23c   :  { %v3276_v36 = vrot.slane %v3119_v34, 2 }
 0x23d   :  { %v2863_v43 = vadd.f32 %v6959_v40, %v2822_v42 }
 0x255   :  { %v6976_v44 = vpop.f32.mrb[28].mxu0 }
 0x256   :  { %v6998_v45 = vpop.f32.mrb[28].mxu1  ;;  %v6977_v46 = vpop.f32.mrb[29].mxu0 }
 0x257   :  { %v6978_v47 = vadd.f32 %v6977_v46, %v6976_v44  ;;  %v6999_v50 = vpop.f32.mrb[29].mxu1  ;;  %v6979_v53 = vpop.f32.mrb[30].mxu0 }
 0x258   :  { %v7000_v54 = vadd.f32 %v6999_v50, %v6998_v45  ;;  %v7001_v56 = vpop.f32.mrb[30].mxu1  ;;  %v6980_v58 = vpop.f32.mrb[31].mxu0 }
 0x259   :  { %v2901_v59 = vadd.f32 %v6978_v47, %v2860_v41  ;;  %v6981_v60 = vadd.f32 %v6980_v58, %v6979_v53  ;;  %v7002_v61 = vpop.f32.mrb[31].mxu1  ;;  %v3188_v53 = vpop.permute.xlu1 %3187 }
 0x25a   :  { %v7003_v62 = vadd.f32 %v7002_v61, %v7001_v56 }
 0x25b   :  { %v2942_v63 = vadd.f32 %v7000_v54, %v2901_v59  ;;  %v2904_v0 = vadd.f32 %v6981_v60, %v2863_v43 }
 0x25d   :  { %v2945_v1 = vadd.f32 %v7003_v62, %v2904_v0  ;;  %v2948_v2 = vmax.f32 %v2942_v63, 0.0 }
 0x25f   :  { %v2949_v3 = vmax.f32 %v2945_v1, 0.0 }
 0x261   :  { %v2950_v4 = vpack.c.bf16 %v2949_v3, %v2948_v2 }
 0x263   :  { %3092 = vmatmul.mubr.bf16.vlgmr.msra.gmra.mrb[32].mxu0 %v2950_v4 }
 0x264   :  { %7192 = vmatpush3.bf16.msra.mxu0 %v9471_v48  ;;  %7195 = vmatprep.mubr.msk.bf16.mxu0 %vm8260_vm0, %v8258_v49 }
 0x265   :  { %7193 = vmatprep.subr.bf16.mxu0 %v8258_v49 }
 0x268   :  { %7194 = vmatpush3.bf16.msra.mxu0 %v9483_v52 }
 0x269   :  { %7207 = vmatprep.subr.bf16.mxu0 %v8258_v49 }
 0x273   :  { %v3172_v5 = vpop.f32.mrb[32].mxu1 }
 0x274   :  { %v7133_v6 = vpop.f32.mrb[33].mxu1 }
 0x275   :  { %v3175_v7 = vpop.f32.mrb[34].mxu1 }
 0x276   :  { %v7134_v8 = vpop.f32.mrb[35].mxu1 }
 0x27b   :  { %v3258_v9 = vpop.f32.mrb[36].mxu1 }
 0x27c   :  { %v7141_v10 = vpop.f32.mrb[37].mxu1  ;;  %v3265_v29 = vrot.slane %v3258_v9, 2 }
 0x27d   :  { %v3261_v11 = vpop.f32.mrb[38].mxu1 }
 0x27e   :  { %v7142_v12 = vpop.f32.mrb[39].mxu1 }
 0x336   :  { %v3093_v20 = vpop.f32.mrb[32].mxu0 }
 0x337   :  { %v3094_v21 = vadd.f32 %v3093_v20, %v2972_v18  ;;  %v3095_v22 = vpop.f32.mrb[33].mxu0 }
 0x338   :  { %v3096_v23 = vadd.f32 %v3095_v22, %v2976_v19  ;;  %v3097_v24 = vpop.f32.mrb[34].mxu0 }
 0x339   :  { %3102 = vst [vmem:[#allocation2] sm:$0xff] %v3094_v21  ;;  %v3098_v25 = vadd.f32 %v3097_v24, %v2972_v18  ;;  %v3099_v26 = vpop.f32.mrb[35].mxu0 }
 0x33a   :  { %3103 = vst [vmem:[#allocation2 + $0x8] sm:$0xff] %v3096_v23  ;;  %v3100_v27 = vadd.f32 %v3099_v26, %v2976_v19 }
 0x33b   :  { %3104 = vst [vmem:[#allocation2 + $0x10] sm:$0xff] %v3098_v25 }
 0x33c   :  { %3105 = vst [vmem:[#allocation2 + $0x18] sm:$0xff] %v3100_v27 }
 0x340   :  { %v3120_v28 = vld [vmem:[#allocation2] sm:$0x3]  ;;  %v3310_v13 = vld [vmem:[#allocation2] sm:$0xc] }
 0x341   :  { %v3178_v30 = vadd.f32 %v3172_v5, %v3120_v28 }
 0x343   :  { %7797 = vtanh.f32 %v3178_v30  ;;  %v3207_v31 = vld [vmem:[#allocation2 + $0x18] sm:$0xc0]  ;;  %v6567_v37 = vmul.f32 -1.442695, %v3178_v30  ;;  %v3389_v23 = vld [vmem:[#allocation2 + $0x18] sm:$0x30] }
 0x344   :  { %v3267_v32 = vadd.f32 %v3265_v29, %v3207_v31 }
 0x346   :  { %7799 = vtanh.f32 %v3267_v32  ;;  %v6571_v38 = vmul.f32 -1.442695, %v3267_v32 }
 0x347   :  { %7801 = vpow2.f32 %v6567_v37 }
 0x348   :  { %7803 = vpow2.f32 %v6571_v38 }
 0x34d   :  { %v7798_v33 = vpop.eup %7797 }
 0x34e   :  { %3192 = vrot.lane.b32.xlu0 %v7798_v33, %s8261_s5 }
 0x350   :  { %v7800_v35 = vpop.eup %7799 }
 0x351   :  { %v7802_v39 = vpop.eup %7801 }
 0x352   :  { %3282 = vrot.lane.b32.xlu0 %v7800_v35, %s8261_s5  ;;  %v3182_v40 = vadd.f32 1.0, %v7802_v39  ;;  %v7804_v41 = vpop.eup %7803 }
 0x353   :  { %v3271_v42 = vadd.f32 1.0, %v7804_v41 }
 0x354   :  { %7805 = vrcp.f32 %v3182_v40 }
 0x355   :  { %7807 = vrcp.f32 %v3271_v42 }
 0x356   :  { %3277 = vrot.lane.b32.xlu0 %v3276_v36, %s8251_s7 }
 0x35e   :  { %v7806_v43 = vpop.eup %7805 }
 0x35f   :  { %v7808_v46 = vpop.eup %7807  ;;  %v3190_v54 = vmul.f32 %v7806_v43, %v3188_v53 }
 0x3c0   :  { %v3193_v44 = vpop.permute.xlu0 %3192 }
 0x3c1   :  { %v3195_v45 = vmul.f32 %v7806_v43, %v3193_v44 }
 0x3c3   :  { %3197 = vrot.lane.b32.xlu1 %v3195_v45, %s8251_s7 }
 0x3c4   :  { %v3283_v47 = vpop.permute.xlu0 %3282 }
 0x3c5   :  { %v3285_v50 = vmul.f32 %v7808_v46, %v3283_v47 }
 0x3c7   :  { %3287 = vrot.lane.b32.xlu1 %v3285_v50, %s8251_s7 }
 0x3c8   :  { %v3278_v56 = vpop.permute.xlu0 %3277 }
 0x3c9   :  { %v3280_v60 = vmul.f32 %v7808_v46, %v3278_v56 }
 0x435   :  { %v3198_v58 = vpop.permute.xlu1 %3197 }
 0x436   :  { %v9543_v59 = vadd.f32 %v3198_v58, %v3190_v54 }
 0x438   :  { %7809 = vtanh.f32 %v9543_v59  ;;  %v3370_v41 = vrot.slane %v9543_v59, 6 }
 0x439   :  { %v3288_v61 = vpop.permute.xlu1 %3287 }
 0x43a   :  { %v9546_v62 = vadd.f32 %v3288_v61, %v3280_v60 }
 0x43c   :  { %7811 = vtanh.f32 %v9546_v62  ;;  %v3450_v45 = vrot.slane %v9546_v62, 2 }
 0x442   :  { %v7810_v63 = vpop.eup %7809 }
 0x443   :  { %3203 = vrot.lane.b32.xlu0 %v7810_v63, %s8261_s5 }
 0x446   :  { %v7812_v0 = vpop.eup %7811 }
 0x447   :  { %3293 = vrot.lane.b32.xlu1 %v7812_v0, %s8261_s5 }
 0x4b5   :  { %v3204_v1 = vpop.permute.xlu0 %3203 }
 0x4b6   :  { %v9551_v2 = vmul.f32 %v7806_v43, %v3204_v1 }
 0x4b8   :  { %v3311_v3 = vpack.c.bf16 %v9551_v2, %v9551_v2 }
 0x4b9   :  { %v3294_v4 = vpop.permute.xlu1 %3293 }
 0x4ba   :  { %v9555_v5 = vmul.f32 %v7808_v46, %v3294_v4  ;;  %3313 = vrot.lane.b32.xlu0 %v3311_v3, %s8251_s7 }
 0x4bc   :  { %v3390_v6 = vpack.c.bf16 %v9555_v5, %v9555_v5 }
 0x4be   :  { %v3392_v7 = vrot.slane %v3390_v6, 3 }
 0x4c0   :  { %3393 = vrot.lane.b32.xlu1 %v3392_v7, %s8251_s7 }
 0x52c   :  { %v3314_v8 = vpop.permute.xlu0 %3313 }
 0x52d   :  { %7148 = vmatmul.mubr.msk.bf16.vlgmr.msra.gmra.mrb[40].mxu1 %vm3134_vm1, %v3314_v8  ;;  %v3481_v8 = vld [vmem:[#allocation2] sm:$0x30] }
 0x52e   :  { %7152 = vmatpush3.bf16.msra.mxu1 %v9495_v55  ;;  %7155 = vmatprep.mubr.msk.bf16.mxu1 %vm8260_vm0, %v8258_v49 }
 0x52f   :  { %7153 = vmatprep.subr.bf16.mxu1 %v8258_v49 }
 0x532   :  { %7154 = vmatpush3.bf16.msra.mxu1 %v9504_v57  ;;  %v3394_v9 = vpop.permute.xlu1 %3393 }
 0x533   :  { %7159 = vmatprep.subr.bf16.mxu1 %v8258_v49 }
 0x535   :  { %7156 = vmatmul.mubr.msk.bf16.vlgmr.msra.gmra.mrb[44].mxu1 %vm3134_vm1, %v3394_v9 }
 0x536   :  { %7160 = vmatpush3.bf16.msra.mxu1 %v9471_v48  ;;  %7163 = vmatprep.mubr.msk.bf16.mxu1 %vm8260_vm0, %v8258_v49 }
 0x537   :  { %7161 = vmatprep.subr.bf16.mxu1 %v8258_v49 }
 0x53a   :  { %7162 = vmatpush3.bf16.msra.mxu1 %v9483_v52 }
 0x53b   :  { %7167 = vmatprep.subr.bf16.mxu1 %v8258_v49 }
 0x600   :  { %v3352_v10 = vpop.f32.mrb[40].mxu1 }
 0x601   :  { %v3359_v11 = vrot.slane %v3352_v10, 6  ;;  %v7149_v12 = vpop.f32.mrb[41].mxu1 }
 0x602   :  { %v3355_v16 = vpop.f32.mrb[42].mxu1 }
 0x603   :  { %v3361_v18 = vadd.f32 %v3359_v11, %v3310_v13  ;;  %v7150_v19 = vpop.f32.mrb[43].mxu1 }
 0x605   :  { %7813 = vtanh.f32 %v3361_v18  ;;  %v6573_v29 = vmul.f32 -1.442695, %v3361_v18  ;;  %v3561_v18 = vld [vmem:[#allocation2 + $0x18] sm:$0xc] }
 0x608   :  { %v3432_v20 = vpop.f32.mrb[44].mxu1 }
 0x609   :  { %v3439_v21 = vrot.slane %v3432_v20, 4  ;;  %v7157_v22 = vpop.f32.mrb[45].mxu1 }
 0x60a   :  { %v3435_v24 = vpop.f32.mrb[46].mxu1 }
 0x60b   :  { %v3441_v25 = vadd.f32 %v3439_v21, %v3389_v23  ;;  %v7158_v26 = vpop.f32.mrb[47].mxu1 }
 0x60d   :  { %7815 = vtanh.f32 %v3441_v25  ;;  %v6575_v30 = vmul.f32 -1.442695, %v3441_v25 }
 0x60e   :  { %7817 = vpow2.f32 %v6573_v29 }
 0x60f   :  { %v7814_v27 = vpop.eup %7813  ;;  %7819 = vpow2.f32 %v6575_v30 }
 0x610   :  { %3374 = vrot.lane.b32.xlu0 %v7814_v27, %s8261_s5 }
 0x617   :  { %v7816_v28 = vpop.eup %7815 }
 0x618   :  { %3454 = vrot.lane.b32.xlu1 %v7816_v28, %s8261_s5  ;;  %v7818_v31 = vpop.eup %7817 }
 0x619   :  { %v3365_v32 = vadd.f32 1.0, %v7818_v31  ;;  %v7820_v33 = vpop.eup %7819 }
 0x61a   :  { %v3445_v34 = vadd.f32 1.0, %v7820_v33 }
 0x61b   :  { %7821 = vrcp.f32 %v3365_v32 }
 0x61c   :  { %7823 = vrcp.f32 %v3445_v34 }
 0x625   :  { %v7822_v35 = vpop.eup %7821 }
 0x626   :  { %v7824_v38 = vpop.eup %7823  ;;  %v3372_v42 = vmul.f32 %v7822_v35, %v3370_v41 }
 0x627   :  { %v3452_v46 = vmul.f32 %v7824_v38, %v3450_v45 }
 0x682   :  { %v3375_v36 = vpop.permute.xlu0 %3374 }
 0x683   :  { %v3377_v37 = vmul.f32 %v7822_v35, %v3375_v36 }
 0x685   :  { %3379 = vrot.lane.b32.xlu0 %v3377_v37, %s8251_s7 }
 0x68a   :  { %v3455_v39 = vpop.permute.xlu1 %3454 }
 0x68b   :  { %v3457_v40 = vmul.f32 %v7824_v38, %v3455_v39 }
 0x68d   :  { %3459 = vrot.lane.b32.xlu1 %v3457_v40, %s8251_s7 }
 0x6f7   :  { %v3380_v43 = vpop.permute.xlu0 %3379 }
 0x6f8   :  { %v9580_v44 = vadd.f32 %v3380_v43, %v3372_v42 }
 0x6fa   :  { %7825 = vtanh.f32 %v9580_v44  ;;  %v3542_v36 = vrot.slane %v9580_v44, 6 }
 0x6ff   :  { %v3460_v47 = vpop.permute.xlu1 %3459 }
 0x700   :  { %v9584_v50 = vadd.f32 %v3460_v47, %v3452_v46 }
 0x702   :  { %7827 = vtanh.f32 %v9584_v50  ;;  %v3622_v40 = vrot.slane %v9584_v50, 2 }
 0x704   :  { %v7826_v53 = vpop.eup %7825 }
 0x705   :  { %3385 = vrot.lane.b32.xlu0 %v7826_v53, %s8261_s5 }
 0x70c   :  { %v7828_v54 = vpop.eup %7827 }
 0x70d   :  { %3465 = vrot.lane.b32.xlu1 %v7828_v54, %s8261_s5 }
 0x777   :  { %v3386_v56 = vpop.permute.xlu0 %3385 }
 0x778   :  { %v9589_v58 = vmul.f32 %v7822_v35, %v3386_v56 }
 0x77a   :  { %v3482_v59 = vpack.c.bf16 %v9589_v58, %v9589_v58 }
 0x77c   :  { %v3484_v60 = vrot.slane %v3482_v59, 1 }
 0x77e   :  { %3485 = vrot.lane.b32.xlu0 %v3484_v60, %s8251_s7 }
 0x77f   :  { %v3466_v61 = vpop.permute.xlu1 %3465 }
 0x780   :  { %v9594_v62 = vmul.f32 %v7824_v38, %v3466_v61 }
 0x782   :  { %v3562_v63 = vpack.c.bf16 %v9594_v62, %v9594_v62 }
 0x784   :  { %v3564_v0 = vrot.slane %v3562_v63, 2 }
 0x786   :  { %3565 = vrot.lane.b32.xlu1 %v3564_v0, %s8251_s7 }
 0x7f0   :  { %v3486_v1 = vpop.permute.xlu0 %3485 }
 0x7f1   :  { %7164 = vmatmul.mubr.msk.bf16.vlgmr.msra.gmra.mrb[48].mxu1 %vm3134_vm1, %v3486_v1 }
 0x7f2   :  { %7168 = vmatpush3.bf16.msra.mxu1 %v9495_v55  ;;  %7171 = vmatprep.mubr.msk.bf16.mxu1 %vm8260_vm0, %v8258_v49 }
 0x7f3   :  { %7169 = vmatprep.subr.bf16.mxu1 %v8258_v49 }
 0x7f6   :  { %7170 = vmatpush3.bf16.msra.mxu1 %v9504_v57 }
 0x7f7   :  { %7175 = vmatprep.subr.bf16.mxu1 %v8258_v49 }
 0x7f8   :  { %v3566_v3 = vpop.permute.xlu1 %3565 }
 0x7f9   :  { %7172 = vmatmul.mubr.msk.bf16.vlgmr.msra.gmra.mrb[52].mxu1 %vm3134_vm1, %v3566_v3 }
 0x7fa   :  { %7176 = vmatpush3.bf16.msra.mxu1 %v9471_v48  ;;  %7179 = vmatprep.mubr.msk.bf16.mxu1 %vm8260_vm0, %v8258_v49 }
 0x7fb   :  { %7177 = vmatprep.subr.bf16.mxu1 %v8258_v49 }
 0x7fe   :  { %7178 = vmatpush3.bf16.msra.mxu1 %v9483_v52 }
 0x7ff   :  { %7183 = vmatprep.subr.bf16.mxu1 %v8258_v49 }
 0x8c4   :  { %v3524_v4 = vpop.f32.mrb[48].mxu1 }
 0x8c5   :  { %v3531_v6 = vrot.slane %v3524_v4, 4  ;;  %v7165_v7 = vpop.f32.mrb[49].mxu1  ;;  %v3651_v4 = vld [vmem:[#allocation2] sm:$0xc0] }
 0x8c6   :  { %v3527_v9 = vpop.f32.mrb[50].mxu1 }
 0x8c7   :  { %v3533_v10 = vadd.f32 %v3531_v6, %v3481_v8  ;;  %v7166_v11 = vpop.f32.mrb[51].mxu1  ;;  %v3731_v9 = vld [vmem:[#allocation2 + $0x18] sm:$0x3] }
 0x8c9   :  { %7829 = vtanh.f32 %v3533_v10  ;;  %v6577_v24 = vmul.f32 -1.442695, %v3533_v10 }
 0x8cc   :  { %v3604_v12 = vpop.f32.mrb[52].mxu1 }
 0x8cd   :  { %v3611_v13 = vrot.slane %v3604_v12, 6  ;;  %v7173_v16 = vpop.f32.mrb[53].mxu1 }
 0x8ce   :  { %v3607_v19 = vpop.f32.mrb[54].mxu1 }
 0x8cf   :  { %v3613_v20 = vadd.f32 %v3611_v13, %v3561_v18  ;;  %v7174_v21 = vpop.f32.mrb[55].mxu1 }
 0x8d1   :  { %7831 = vtanh.f32 %v3613_v20  ;;  %v6579_v25 = vmul.f32 -1.442695, %v3613_v20 }
 0x8d2   :  { %7833 = vpow2.f32 %v6577_v24 }
 0x8d3   :  { %v7830_v22 = vpop.eup %7829  ;;  %7835 = vpow2.f32 %v6579_v25 }
 0x8d4   :  { %3546 = vrot.lane.b32.xlu0 %v7830_v22, %s8261_s5 }
 0x8db   :  { %v7832_v23 = vpop.eup %7831 }
 0x8dc   :  { %3626 = vrot.lane.b32.xlu1 %v7832_v23, %s8261_s5  ;;  %v7834_v26 = vpop.eup %7833 }
 0x8dd   :  { %v3537_v27 = vadd.f32 1.0, %v7834_v26  ;;  %v7836_v28 = vpop.eup %7835 }
 0x8de   :  { %v3617_v29 = vadd.f32 1.0, %v7836_v28 }
 0x8df   :  { %7837 = vrcp.f32 %v3537_v27 }
 0x8e0   :  { %7839 = vrcp.f32 %v3617_v29 }
 0x8e9   :  { %v7838_v30 = vpop.eup %7837 }
 0x8ea   :  { %v7840_v33 = vpop.eup %7839  ;;  %v3544_v37 = vmul.f32 %v7838_v30, %v3542_v36 }
 0x8eb   :  { %v3624_v41 = vmul.f32 %v7840_v33, %v3622_v40 }
 0x946   :  { %v3547_v31 = vpop.permute.xlu0 %3546 }
 0x947   :  { %v3549_v32 = vmul.f32 %v7838_v30, %v3547_v31 }
 0x949   :  { %3551 = vrot.lane.b32.xlu0 %v3549_v32, %s8251_s7 }
 0x94e   :  { %v3627_v34 = vpop.permute.xlu1 %3626 }
 0x94f   :  { %v3629_v35 = vmul.f32 %v7840_v33, %v3627_v34 }
 0x951   :  { %3631 = vrot.lane.b32.xlu1 %v3629_v35, %s8251_s7 }
 0x9bb   :  { %v3552_v38 = vpop.permute.xlu0 %3551 }
 0x9bc   :  { %v9618_v39 = vadd.f32 %v3552_v38, %v3544_v37 }
 0x9be   :  { %7841 = vtanh.f32 %v9618_v39  ;;  %v3712_v32 = vrot.slane %v9618_v39, 6 }
 0x9c3   :  { %v3632_v42 = vpop.permute.xlu1 %3631 }
 0x9c4   :  { %v9622_v43 = vadd.f32 %v3632_v42, %v3624_v41 }
 0x9c6   :  { %7843 = vtanh.f32 %v9622_v43  ;;  %v3789_v36 = vrot.slane %v9622_v43, 2 }
 0x9c8   :  { %v7842_v45 = vpop.eup %7841 }
 0x9c9   :  { %3557 = vrot.lane.b32.xlu0 %v7842_v45, %s8261_s5 }
 0x9d0   :  { %v7844_v46 = vpop.eup %7843 }
 0x9d1   :  { %3637 = vrot.lane.b32.xlu1 %v7844_v46, %s8261_s5 }
 0xa3b   :  { %v3558_v44 = vpop.permute.xlu0 %3557 }
 0xa3c   :  { %v9627_v47 = vmul.f32 %v7838_v30, %v3558_v44 }
 0xa3e   :  { %v3652_v53 = vpack.c.bf16 %v9627_v47, %v9627_v47 }
 0xa40   :  { %v3654_v54 = vrot.slane %v3652_v53, 2 }
 0xa42   :  { %3655 = vrot.lane.b32.xlu0 %v3654_v54, %s8251_s7 }
 0xa43   :  { %v3638_v50 = vpop.permute.xlu1 %3637 }
 0xa44   :  { %v9632_v56 = vmul.f32 %v7840_v33, %v3638_v50 }
 0xa46   :  { %v3732_v59 = vpack.c.bf16 %v9632_v56, %v9632_v56 }
 0xa48   :  { %v3734_v60 = vrot.slane %v3732_v59, 1 }
 0xa4a   :  { %3735 = vrot.lane.b32.xlu1 %v3734_v60, %s8251_s7  ;;  %v3818_v60 = vld [vmem:[#allocation2 + $0x10] sm:$0x3] }
 0xab4   :  { %v3656_v61 = vpop.permute.xlu0 %3655 }
 0xab5   :  { %7180 = vmatmul.mubr.msk.bf16.vlgmr.msra.gmra.mrb[56].mxu1 %vm3134_vm1, %v3656_v61 }
 0xab6   :  { %7184 = vmatpush3.bf16.msra.mxu1 %v9495_v55  ;;  %7187 = vmatprep.mubr.msk.bf16.mxu1 %vm8260_vm0, %v8258_v49 }
 0xab7   :  { %7185 = vmatprep.subr.bf16.mxu1 %v8258_v49 }
 0xaba   :  { %7186 = vmatpush3.bf16.msra.mxu1 %v9504_v57 }
 0xabb   :  { %7199 = vmatprep.subr.bf16.mxu1 %v8258_v49 }
 0xabc   :  { %v3736_v63 = vpop.permute.xlu1 %3735 }
 0xabd   :  { %7188 = vmatmul.mubr.msk.bf16.vlgmr.msra.gmra.mrb[60].mxu1 %vm3134_vm1, %v3736_v63 }
 0xabe   :  { %7200 = vmatpush3.bf16.msra.mxu1 %v9495_v55  ;;  %7203 = vmatprep.mubr.msk.bf16.mxu1 %vm8260_vm0, %v8258_v49 }
 0xabf   :  { %7201 = vmatprep.subr.bf16.mxu1 %v8258_v49 }
 0xac2   :  { %7202 = vmatpush3.bf16.msra.mxu1 %v9504_v57 }
 0xac3   :  { %7215 = vmatprep.subr.bf16.mxu1 %v8258_v49 }
 0xb88   :  { %v3694_v0 = vpop.f32.mrb[56].mxu1 }
 0xb89   :  { %v3701_v1 = vrot.slane %v3694_v0, 2  ;;  %v7181_v3 = vpop.f32.mrb[57].mxu1 }
 0xb8a   :  { %v3697_v6 = vpop.f32.mrb[58].mxu1 }
 0xb8b   :  { %v3703_v7 = vadd.f32 %v3701_v1, %v3651_v4  ;;  %v7182_v8 = vpop.f32.mrb[59].mxu1 }
 0xb8c   :  { %v3895_v8 = vld [vmem:[#allocation2 + $0x8] sm:$0xc0] }
 0xb8d   :  { %7845 = vtanh.f32 %v3703_v7  ;;  %v6581_v20 = vmul.f32 -1.442695, %v3703_v7 }
 0xb90   :  { %v3774_v10 = vpop.f32.mrb[60].mxu1 }
 0xb91   :  { %v3780_v11 = vadd.f32 %v3774_v10, %v3731_v9  ;;  %v7189_v12 = vpop.f32.mrb[61].mxu1 }
 0xb92   :  { %v3777_v13 = vpop.f32.mrb[62].mxu1 }
 0xb93   :  { %7847 = vtanh.f32 %v3780_v11  ;;  %v7190_v16 = vpop.f32.mrb[63].mxu1  ;;  %v6583_v21 = vmul.f32 -1.442695, %v3780_v11 }
 0xb94   :  { %7849 = vpow2.f32 %v6581_v20 }
 0xb95   :  { %7851 = vpow2.f32 %v6583_v21 }
 0xb97   :  { %v7846_v18 = vpop.eup %7845 }
 0xb98   :  { %3716 = vrot.lane.b32.xlu1 %v7846_v18, %s8261_s5 }
 0xb9d   :  { %v7848_v19 = vpop.eup %7847 }
 0xb9e   :  { %3793 = vrot.lane.b32.xlu0 %v7848_v19, %s8261_s5  ;;  %v7850_v22 = vpop.eup %7849 }
 0xb9f   :  { %v3707_v23 = vadd.f32 1.0, %v7850_v22  ;;  %v7852_v24 = vpop.eup %7851 }
 0xba0   :  { %v3784_v25 = vadd.f32 1.0, %v7852_v24 }
 0xba1   :  { %7853 = vrcp.f32 %v3707_v23 }
 0xba2   :  { %7855 = vrcp.f32 %v3784_v25 }
 0xbab   :  { %v7854_v26 = vpop.eup %7853 }
 0xbac   :  { %v7856_v29 = vpop.eup %7855  ;;  %v3714_v33 = vmul.f32 %v7854_v26, %v3712_v32 }
 0xbad   :  { %v3791_v37 = vmul.f32 %v7856_v29, %v3789_v36 }
 0xc0a   :  { %v3717_v27 = vpop.permute.xlu1 %3716 }
 0xc0b   :  { %v3719_v28 = vmul.f32 %v7854_v26, %v3717_v27 }
 0xc0d   :  { %3721 = vrot.lane.b32.xlu1 %v3719_v28, %s8251_s7 }
 0xc10   :  { %v3794_v30 = vpop.permute.xlu0 %3793 }
 0xc11   :  { %v3796_v31 = vmul.f32 %v7856_v29, %v3794_v30 }
 0xc13   :  { %3798 = vrot.lane.b32.xlu0 %v3796_v31, %s8251_s7 }
 0xc7f   :  { %v3722_v34 = vpop.permute.xlu1 %3721 }
 0xc80   :  { %v9656_v35 = vadd.f32 %v3722_v34, %v3714_v33 }
 0xc82   :  { %7857 = vtanh.f32 %v9656_v35 }
 0xc85   :  { %v3799_v38 = vpop.permute.xlu0 %3798 }
 0xc86   :  { %v9660_v40 = vadd.f32 %v3799_v38, %v3791_v37 }
 0xc88   :  { %7859 = vtanh.f32 %v9660_v40  ;;  %v3955_v33 = vrot.slane %v9660_v40, 2 }
 0xc8c   :  { %v7858_v41 = vpop.eup %7857 }
 0xc8d   :  { %3727 = vrot.lane.b32.xlu1 %v7858_v41, %s8261_s5 }
 0xc92   :  { %v7860_v42 = vpop.eup %7859 }
 0xc93   :  { %3804 = vrot.lane.b32.xlu0 %v7860_v42, %s8261_s5 }
 0xcff   :  { %v3728_v39 = vpop.permute.xlu1 %3727 }
 0xd00   :  { %v9665_v45 = vmul.f32 %v7854_v26, %v3728_v39 }
 0xd02   :  { %v3819_v43 = vpack.c.bf16 %v9665_v45, %v9665_v45 }
 0xd04   :  { %v3821_v46 = vrot.slane %v3819_v43, 3 }
 0xd05   :  { %v3805_v44 = vpop.permute.xlu0 %3804 }
 0xd06   :  { %v9669_v53 = vmul.f32 %v7856_v29, %v3805_v44  ;;  %3822 = vrot.lane.b32.xlu1 %v3821_v46, %s8251_s7  ;;  %v3876_v29 = vrot.slane %v9656_v35, 6 }
 0xd08   :  { %v3896_v54 = vpack.c.bf16 %v9669_v53, %v9669_v53 }
 0xd0a   :  { %3898 = vrot.lane.b32.xlu0 %v3896_v54, %s8251_s7 }
 0xd78   :  { %v3823_v50 = vpop.permute.xlu1 %3822 }
 0xd79   :  { %7196 = vmatmul.mubr.msk.bf16.vlgmr.msra.gmra.mrb[36].mxu0 %vm3134_vm1, %v3823_v50 }
 0xd7a   :  { %7208 = vmatpush3.bf16.msra.mxu0 %v9471_v48  ;;  %7211 = vmatprep.mubr.msk.bf16.mxu0 %vm8260_vm0, %v8258_v49 }
 0xd7b   :  { %7209 = vmatprep.subr.bf16.mxu0 %v8258_v49 }
 0xd7c   :  { %v3899_v59 = vpop.permute.xlu0 %3898 }
 0xd7d   :  { %7204 = vmatmul.mubr.msk.bf16.vlgmr.msra.gmra.mrb[64].mxu1 %vm3134_vm1, %v3899_v59 }
 0xd7e   :  { %7210 = vmatpush3.bf16.msra.mxu0 %v9483_v52  ;;  %7216 = vmatpush3.bf16.msra.mxu1 %v9495_v55 }
 0xd7f   :  { %7217 = vmatprep.subr.bf16.mxu1 %v8258_v49  ;;  %7219 = vmatprep.mubr.msk.bf16.mxu1 %vm8260_vm0, %v8258_v49 }
 0xd80   :  { %7223 = vmatprep.subr.bf16.mxu0 %v8258_v49 }
 0xd82   :  { %7218 = vmatpush3.bf16.msra.mxu1 %v9504_v57 }
 0xd83   :  { %7231 = vmatprep.subr.bf16.mxu1 %v8258_v49 }
 0xe4c   :  { %v3861_v61 = vpop.f32.mrb[36].mxu0 }
 0xe4d   :  { %v3867_v63 = vadd.f32 %v3861_v61, %v3818_v60  ;;  %v7197_v0 = vpop.f32.mrb[37].mxu0 }
 0xe4e   :  { %v3864_v1 = vpop.f32.mrb[38].mxu0 }
 0xe4f   :  { %7861 = vtanh.f32 %v3867_v63  ;;  %v7198_v3 = vpop.f32.mrb[39].mxu0  ;;  %v6585_v16 = vmul.f32 -1.442695, %v3867_v63 }
 0xe50   :  { %v3937_v4 = vpop.f32.mrb[64].mxu1 }
 0xe51   :  { %v3944_v6 = vrot.slane %v3937_v4, 2  ;;  %v7205_v7 = vpop.f32.mrb[65].mxu1  ;;  %v4063_v4 = vld [vmem:[#allocation2 + $0x8] sm:$0x30] }
 0xe52   :  { %v3940_v9 = vpop.f32.mrb[66].mxu1 }
 0xe53   :  { %v3946_v10 = vadd.f32 %v3944_v6, %v3895_v8  ;;  %v7206_v11 = vpop.f32.mrb[67].mxu1 }
 0xe55   :  { %7863 = vtanh.f32 %v3946_v10  ;;  %v6587_v18 = vmul.f32 -1.442695, %v3946_v10 }
 0xe56   :  { %7865 = vpow2.f32 %v6585_v16 }
 0xe57   :  { %7867 = vpow2.f32 %v6587_v18 }
 0xe59   :  { %v7862_v12 = vpop.eup %7861 }
 0xe5a   :  { %3880 = vrot.lane.b32.xlu1 %v7862_v12, %s8261_s5 }
 0xe5f   :  { %v7864_v13 = vpop.eup %7863 }
 0xe60   :  { %3959 = vrot.lane.b32.xlu0 %v7864_v13, %s8261_s5  ;;  %v7866_v19 = vpop.eup %7865 }
 0xe61   :  { %v3871_v20 = vadd.f32 1.0, %v7866_v19  ;;  %v7868_v21 = vpop.eup %7867 }
 0xe62   :  { %v3950_v22 = vadd.f32 1.0, %v7868_v21 }
 0xe63   :  { %7869 = vrcp.f32 %v3871_v20 }
 0xe64   :  { %7871 = vrcp.f32 %v3950_v22 }
 0xe6d   :  { %v7870_v23 = vpop.eup %7869 }
 0xe6e   :  { %v7872_v26 = vpop.eup %7871  ;;  %v3878_v30 = vmul.f32 %v7870_v23, %v3876_v29 }
 0xe6f   :  { %v3957_v34 = vmul.f32 %v7872_v26, %v3955_v33 }
 0xecc   :  { %v3881_v24 = vpop.permute.xlu1 %3880 }
 0xecd   :  { %v3883_v25 = vmul.f32 %v7870_v23, %v3881_v24 }
 0xecf   :  { %3885 = vrot.lane.b32.xlu1 %v3883_v25, %s8251_s7 }
 0xed2   :  { %v3960_v27 = vpop.permute.xlu0 %3959 }
 0xed3   :  { %v3962_v28 = vmul.f32 %v7872_v26, %v3960_v27 }
 0xed5   :  { %3964 = vrot.lane.b32.xlu0 %v3962_v28, %s8251_s7 }
 0xf41   :  { %v3886_v31 = vpop.permute.xlu1 %3885 }
 0xf42   :  { %v9694_v32 = vadd.f32 %v3886_v31, %v3878_v30 }
 0xf44   :  { %7873 = vtanh.f32 %v9694_v32  ;;  %v4044_v25 = vrot.slane %v9694_v32, 6 }
 0xf47   :  { %v3965_v36 = vpop.permute.xlu0 %3964 }
 0xf48   :  { %v9698_v37 = vadd.f32 %v3965_v36, %v3957_v34 }
 0xf4a   :  { %7875 = vtanh.f32 %v9698_v37  ;;  %v4124_v29 = vrot.slane %v9698_v37, 2 }
 0xf4e   :  { %v7874_v38 = vpop.eup %7873 }
 0xf4f   :  { %3891 = vrot.lane.b32.xlu1 %v7874_v38, %s8261_s5 }
 0xf54   :  { %v7876_v41 = vpop.eup %7875 }
 0xf55   :  { %3970 = vrot.lane.b32.xlu0 %v7876_v41, %s8261_s5 }
 0xfc1   :  { %v3892_v35 = vpop.permute.xlu1 %3891 }
 0xfc2   :  { %v9703_v42 = vmul.f32 %v7870_v23, %v3892_v35 }
 0xfc4   :  { %v3985_v40 = vpack.c.bf16 %v9703_v42, %v9703_v42 }
 0xfc6   :  { %3987 = vrot.lane.b32.xlu1 %v3985_v40, %s8251_s7 }
 0xfc7   :  { %v3971_v39 = vpop.permute.xlu0 %3970 }
 0xfc8   :  { %v9708_v43 = vmul.f32 %v7872_v26, %v3971_v39 }
 0xfca   :  { %v4064_v46 = vpack.c.bf16 %v9708_v43, %v9708_v43 }
 0xfcc   :  { %v4066_v44 = vrot.slane %v4064_v46, 3 }
 0xfce   :  { %4067 = vrot.lane.b32.xlu0 %v4066_v44, %s8251_s7 }
0x1038   :  { %v3988_v54 = vpop.permute.xlu1 %3987 }
0x1039   :  { %7212 = vmatmul.mubr.msk.bf16.vlgmr.msra.gmra.mrb[40].mxu0 %vm3134_vm1, %v3988_v54  ;;  %v8053_v54 = vld [vmem:[%s10242_s4] ss:$8 sps:$4 sm:$0xff]  }
0x103a   :  { %7224 = vmatpush3.bf16.msra.mxu0 %v9471_v48  ;;  %7227 = vmatprep.mubr.msk.bf16.mxu0 %vm8260_vm0, %v8258_v49 }
0x103b   :  { %7225 = vmatprep.subr.bf16.mxu0 %v8258_v49 }
0x103e   :  { %7226 = vmatpush3.bf16.msra.mxu0 %v9483_v52  ;;  %v3984_v52 = vld [vmem:[#allocation2 + $0x10] sm:$0xc] }
0x103f   :  { %7239 = vmatprep.subr.bf16.mxu0 %v8258_v49 }
0x1040   :  { %v4068_v50 = vpop.permute.xlu0 %4067 }
0x1041   :  { %7220 = vmatmul.mubr.msk.bf16.vlgmr.msra.gmra.mrb[68].mxu1 %vm3134_vm1, %v4068_v50  ;;  %v8054_v50 = vld [vmem:[%s10242_s4 + $0x10] ss:$8 sps:$4 sm:$0xff]  }
0x1042   :  { %7232 = vmatpush3.bf16.msra.mxu1 %v9495_v55  ;;  %7235 = vmatprep.mubr.msk.bf16.mxu1 %vm8260_vm0, %v8258_v49 }
0x1043   :  { %7233 = vmatprep.subr.bf16.mxu1 %v8258_v49 }
0x1046   :  { %7234 = vmatpush3.bf16.msra.mxu1 %v9504_v57 }
0x1047   :  { %7247 = vmatprep.subr.bf16.mxu1 %v8258_v49 }
0x110c   :  { %v4026_v48 = vpop.f32.mrb[40].mxu0 }
0x110d   :  { %v4033_v59 = vrot.slane %v4026_v48, 6  ;;  %v7213_v60 = vpop.f32.mrb[41].mxu0 }
0x110e   :  { %v4029_v61 = vpop.f32.mrb[42].mxu0  ;;  %v8056_v60 = vld [vmem:[%s10242_s4 + $0x14] ss:$8 sps:$4 sm:$0xff]  }
0x110f   :  { %v4035_v63 = vadd.f32 %v4033_v59, %v3984_v52  ;;  %v7214_v0 = vpop.f32.mrb[43].mxu0  ;;  %v8055_v59 = vld [vmem:[%s10242_s4 + $0x4] ss:$8 sps:$4 sm:$0xff]  }
0x1110   :  { %v4153_v0 = vld [vmem:[#allocation2 + $0x10] sm:$0x30] }
0x1111   :  { %7877 = vtanh.f32 %v4035_v63  ;;  %v6589_v10 = vmul.f32 -1.442695, %v4035_v63 }
0x1114   :  { %v4106_v1 = vpop.f32.mrb[68].mxu1 }
0x1115   :  { %v4113_v3 = vrot.slane %v4106_v1, 4  ;;  %v7221_v55 = vpop.f32.mrb[69].mxu1 }
0x1116   :  { %v4109_v6 = vpop.f32.mrb[70].mxu1 }
0x1117   :  { %v4115_v7 = vadd.f32 %v4113_v3, %v4063_v4  ;;  %v7222_v8 = vpop.f32.mrb[71].mxu1 }
0x1118   :  { %v4233_v8 = vld [vmem:[#allocation2 + $0x8] sm:$0xc] }
0x1119   :  { %7879 = vtanh.f32 %v4115_v7  ;;  %v6591_v11 = vmul.f32 -1.442695, %v4115_v7 }
0x111a   :  { %7881 = vpow2.f32 %v6589_v10 }
0x111b   :  { %v7878_v9 = vpop.eup %7877  ;;  %7883 = vpow2.f32 %v6591_v11 }
0x111c   :  { %4048 = vrot.lane.b32.xlu1 %v7878_v9, %s8261_s5 }
0x1123   :  { %v7880_v57 = vpop.eup %7879 }
0x1124   :  { %4128 = vrot.lane.b32.xlu0 %v7880_v57, %s8261_s5  ;;  %v7882_v12 = vpop.eup %7881 }
0x1125   :  { %v4039_v13 = vadd.f32 1.0, %v7882_v12  ;;  %v7884_v16 = vpop.eup %7883 }
0x1126   :  { %v4119_v18 = vadd.f32 1.0, %v7884_v16 }
0x1127   :  { %7885 = vrcp.f32 %v4039_v13 }
0x1128   :  { %7887 = vrcp.f32 %v4119_v18 }
0x1131   :  { %v7886_v19 = vpop.eup %7885 }
0x1132   :  { %v7888_v22 = vpop.eup %7887  ;;  %v4046_v26 = vmul.f32 %v7886_v19, %v4044_v25 }
0x1133   :  { %v4126_v30 = vmul.f32 %v7888_v22, %v4124_v29 }
0x118e   :  { %v4049_v20 = vpop.permute.xlu1 %4048 }
0x118f   :  { %v4051_v21 = vmul.f32 %v7886_v19, %v4049_v20 }
0x1191   :  { %4053 = vrot.lane.b32.xlu1 %v4051_v21, %s8251_s7 }
0x1196   :  { %v4129_v23 = vpop.permute.xlu0 %4128 }
0x1197   :  { %v4131_v24 = vmul.f32 %v7888_v22, %v4129_v23 }
0x1199   :  { %4133 = vrot.lane.b32.xlu0 %v4131_v24, %s8251_s7 }
0x1203   :  { %v4054_v27 = vpop.permute.xlu1 %4053 }
0x1204   :  { %v9732_v28 = vadd.f32 %v4054_v27, %v4046_v26 }
0x1206   :  { %7889 = vtanh.f32 %v9732_v28  ;;  %v4214_v29 = vrot.slane %v9732_v28, 6 }
0x120b   :  { %v4134_v31 = vpop.permute.xlu0 %4133 }
0x120c   :  { %v9736_v33 = vadd.f32 %v4134_v31, %v4126_v30 }
0x120e   :  { %7891 = vtanh.f32 %v9736_v33 }
0x1210   :  { %v7890_v34 = vpop.eup %7889 }
0x1211   :  { %4059 = vrot.lane.b32.xlu1 %v7890_v34, %s8261_s5 }
0x1218   :  { %v7892_v36 = vpop.eup %7891 }
0x1219   :  { %4139 = vrot.lane.b32.xlu0 %v7892_v36, %s8261_s5  ;;  %v4294_v36 = vrot.slane %v9736_v33, 2 }
0x1283   :  { %v4060_v32 = vpop.permute.xlu1 %4059 }
0x1284   :  { %v9741_v38 = vmul.f32 %v7886_v19, %v4060_v32 }
0x1286   :  { %v4154_v41 = vpack.c.bf16 %v9741_v38, %v9741_v38 }
0x1288   :  { %v4156_v35 = vrot.slane %v4154_v41, 1 }
0x128a   :  { %4157 = vrot.lane.b32.xlu1 %v4156_v35, %s8251_s7 }
0x128b   :  { %v4140_v37 = vpop.permute.xlu0 %4139 }
0x128c   :  { %v9746_v40 = vmul.f32 %v7888_v22, %v4140_v37 }
0x128e   :  { %v4234_v39 = vpack.c.bf16 %v9746_v40, %v9746_v40 }
0x1290   :  { %v4236_v46 = vrot.slane %v4234_v39, 2 }
0x1292   :  { %4237 = vrot.lane.b32.xlu0 %v4236_v46, %s8251_s7 }
0x12fc   :  { %v4158_v44 = vpop.permute.xlu1 %4157 }
0x12fd   :  { %7228 = vmatmul.mubr.msk.bf16.vlgmr.msra.gmra.mrb[44].mxu0 %vm3134_vm1, %v4158_v44 }
0x12fe   :  { %7240 = vmatpush3.bf16.msra.mxu0 %v8053_v54  ;;  %7243 = vmatprep.mubr.msk.bf16.mxu0 %vm8260_vm0, %v8258_v49 }
0x12ff   :  { %7241 = vmatprep.subr.bf16.mxu0 %v8258_v49 }
0x1302   :  { %7242 = vmatpush3.bf16.msra.mxu0 %v8054_v50 }
0x1304   :  { %v4238_v48 = vpop.permute.xlu0 %4237 }
0x1305   :  { %7236 = vmatmul.mubr.msk.bf16.vlgmr.msra.gmra.mrb[72].mxu1 %vm3134_vm1, %v4238_v48 }
0x1306   :  { %7248 = vmatpush3.bf16.msra.mxu1 %v8055_v59  ;;  %7251 = vmatprep.mubr.msk.bf16.mxu1 %vm8260_vm0, %v8258_v49 }
0x1307   :  { %7249 = vmatprep.subr.bf16.mxu1 %v8258_v49 }
0x130a   :  { %7250 = vmatpush3.bf16.msra.mxu1 %v8056_v60 }
0x130b   :  { %7255 = vmatprep.subr.bf16.mxu1 %v8258_v49 }
0x13d0   :  { %v4196_v52 = vpop.f32.mrb[44].mxu0 }
0x13d1   :  { %v4203_v61 = vrot.slane %v4196_v52, 4  ;;  %v7229_v63 = vpop.f32.mrb[45].mxu0 }
0x13d2   :  { %v4199_v1 = vpop.f32.mrb[46].mxu0 }
0x13d3   :  { %v4205_v3 = vadd.f32 %v4203_v61, %v4153_v0  ;;  %v7230_v55 = vpop.f32.mrb[47].mxu0  ;;  %v4323_v1 = vld [vmem:[#allocation2 + $0x10] sm:$0xc0] }
0x13d5   :  { %7893 = vtanh.f32 %v4205_v3  ;;  %v6593_v13 = vmul.f32 -1.442695, %v4205_v3 }
0x13d8   :  { %v4276_v4 = vpop.f32.mrb[72].mxu1 }
0x13d9   :  { %v4283_v6 = vrot.slane %v4276_v4, 6  ;;  %v7237_v7 = vpop.f32.mrb[73].mxu1 }
0x13da   :  { %v4279_v9 = vpop.f32.mrb[74].mxu1 }
0x13db   :  { %v4285_v57 = vadd.f32 %v4283_v6, %v4233_v8  ;;  %v7238_v10 = vpop.f32.mrb[75].mxu1  ;;  %v4403_v6 = vld [vmem:[#allocation2 + $0x8] sm:$0x3] }
0x13dd   :  { %7895 = vtanh.f32 %v4285_v57  ;;  %v6595_v16 = vmul.f32 -1.442695, %v4285_v57 }
0x13de   :  { %7897 = vpow2.f32 %v6593_v13 }
0x13df   :  { %v7894_v11 = vpop.eup %7893  ;;  %7899 = vpow2.f32 %v6595_v16 }
0x13e0   :  { %4218 = vrot.lane.b32.xlu1 %v7894_v11, %s8261_s5 }
0x13e7   :  { %v7896_v12 = vpop.eup %7895 }
0x13e8   :  { %4298 = vrot.lane.b32.xlu0 %v7896_v12, %s8261_s5  ;;  %v7898_v18 = vpop.eup %7897 }
0x13e9   :  { %v4209_v19 = vadd.f32 1.0, %v7898_v18  ;;  %v7900_v20 = vpop.eup %7899 }
0x13ea   :  { %v4289_v21 = vadd.f32 1.0, %v7900_v20 }
0x13eb   :  { %7901 = vrcp.f32 %v4209_v19 }
0x13ec   :  { %7903 = vrcp.f32 %v4289_v21 }
0x13f5   :  { %v7902_v22 = vpop.eup %7901 }
0x13f6   :  { %v7904_v25 = vpop.eup %7903  ;;  %v4216_v30 = vmul.f32 %v7902_v22, %v4214_v29 }
0x13f7   :  { %v4296_v32 = vmul.f32 %v7904_v25, %v4294_v36 }
0x1452   :  { %v4219_v23 = vpop.permute.xlu1 %4218 }
0x1453   :  { %v4221_v24 = vmul.f32 %v7902_v22, %v4219_v23 }
0x1455   :  { %4223 = vrot.lane.b32.xlu1 %v4221_v24, %s8251_s7 }
0x145a   :  { %v4299_v26 = vpop.permute.xlu0 %4298 }
0x145b   :  { %v4301_v27 = vmul.f32 %v7904_v25, %v4299_v26 }
0x145d   :  { %4303 = vrot.lane.b32.xlu0 %v4301_v27, %s8251_s7 }
0x14c7   :  { %v4224_v31 = vpop.permute.xlu1 %4223 }
0x14c8   :  { %v9777_v34 = vadd.f32 %v4224_v31, %v4216_v30 }
0x14ca   :  { %7905 = vtanh.f32 %v9777_v34  ;;  %v4384_v29 = vrot.slane %v9777_v34, 6  ;;  %v9838_v34 = vld [vmem:[#allocation7] ss:$8 sps:$4 sm:$0xff]  }
0x14cf   :  { %v4304_v41 = vpop.permute.xlu0 %4303 }
0x14d0   :  { %v9781_v35 = vadd.f32 %v4304_v41, %v4296_v32 }
0x14d2   :  { %7907 = vtanh.f32 %v9781_v35  ;;  %v4461_v32 = vrot.slane %v9781_v35, 2 }
0x14d4   :  { %v7906_v37 = vpop.eup %7905 }
0x14d5   :  { %4229 = vrot.lane.b32.xlu1 %v7906_v37, %s8261_s5 }
0x14dc   :  { %v7908_v39 = vpop.eup %7907 }
0x14dd   :  { %4309 = vrot.lane.b32.xlu0 %v7908_v39, %s8261_s5 }
0x1547   :  { %v4230_v28 = vpop.permute.xlu1 %4229 }
0x1548   :  { %v9786_v46 = vmul.f32 %v7902_v22, %v4230_v28 }
0x154a   :  { %v4324_v44 = vpack.c.bf16 %v9786_v46, %v9786_v46 }
0x154c   :  { %v4326_v54 = vrot.slane %v4324_v44, 2 }
0x154e   :  { %4327 = vrot.lane.b32.xlu1 %v4326_v54, %s8251_s7 }
0x154f   :  { %v4310_v33 = vpop.permute.xlu0 %4309 }
0x1550   :  { %v9791_v50 = vmul.f32 %v7904_v25, %v4310_v33 }
0x1552   :  { %v4404_v48 = vpack.c.bf16 %v9791_v50, %v9791_v50 }
0x1554   :  { %v4406_v59 = vrot.slane %v4404_v48, 1 }
0x1556   :  { %4407 = vrot.lane.b32.xlu0 %v4406_v59, %s8251_s7  ;;  %v6610_v59 = vld [vmem:[%s10247_s9 + $0x4] sm:$0x3] }
0x15c0   :  { %v4328_v60 = vpop.permute.xlu1 %4327 }
0x15c1   :  { %7244 = vmatmul.mubr.msk.bf16.vlgmr.msra.gmra.mrb[48].mxu0 %vm3134_vm1, %v4328_v60  ;;  %v9859_v60 = vld [vmem:[#allocation7 + $0x4] ss:$8 sps:$4 sm:$0xff]  }
0x15c2   :  { %4559 = vmatprep.mubr.bf16.mxu0 %v8259_v51 }
0x15c8   :  { %v4408_v52 = vpop.permute.xlu0 %4407 }
0x15c9   :  { %7252 = vmatmul.mubr.msk.bf16.vlgmr.msra.gmra.mrb[76].mxu1 %vm3134_vm1, %v4408_v52  ;;  %v4673_v52 = vpack.c.bf16 %v6610_v59, %v6610_v59 }
0x15ca   :  { %7259 = vmatprep.mubr.msk.bf16.mxu1 %vm8260_vm0, %v8258_v49  ;;  %7256 = vmatpush3.bf16.msra.mxu1 %v9838_v34 }
0x15cb   :  { %7257 = vmatprep.subr.bf16.mxu1 %v8258_v49 }
0x1694   :  { %v4366_v61 = vpop.f32.mrb[48].mxu0 }
0x1695   :  { %v4373_v63 = vrot.slane %v4366_v61, 2  ;;  %v7245_v0 = vpop.f32.mrb[49].mxu0 }
0x1696   :  { %v4369_v3 = vpop.f32.mrb[50].mxu0 }
0x1697   :  { %v4375_v55 = vadd.f32 %v4373_v63, %v4323_v1  ;;  %v7246_v4 = vpop.f32.mrb[51].mxu0  ;;  %v6611_v63 = vld [vmem:[%s10247_s9 + $0x6] sm:$0x3] }
0x1698   :  { %v4759_v0 = vpack.c.bf16 %v6611_v63, %v6611_v63 }
0x1699   :  { %7909 = vtanh.f32 %v4375_v55  ;;  %v6597_v13 = vmul.f32 -1.442695, %v4375_v55 }
0x169c   :  { %v4446_v7 = vpop.f32.mrb[76].mxu1 }
0x169d   :  { %v4452_v8 = vadd.f32 %v4446_v7, %v4403_v6  ;;  %v7253_v9 = vpop.f32.mrb[77].mxu1 }
0x169e   :  { %v4449_v57 = vpop.f32.mrb[78].mxu1  ;;  %v7787_v9 = vld [vmem:[#allocation4] ss:$8 sps:$4 sm:$0xff]  }
0x169f   :  { %7911 = vtanh.f32 %v4452_v8  ;;  %v7254_v10 = vpop.f32.mrb[79].mxu1  ;;  %v6599_v16 = vmul.f32 -1.442695, %v4452_v8 }
0x16a0   :  { %7913 = vpow2.f32 %v6597_v13 }
0x16a1   :  { %7915 = vpow2.f32 %v6599_v16  ;;  %v7790_v16 = vld [vmem:[#allocation4 + $0x10] ss:$8 sps:$4 sm:$0xff]  }
0x16a3   :  { %v7910_v11 = vpop.eup %7909 }
0x16a4   :  { %4388 = vrot.lane.b32.xlu1 %v7910_v11, %s8261_s5 }
0x16a9   :  { %v7912_v12 = vpop.eup %7911 }
0x16aa   :  { %4465 = vrot.lane.b32.xlu0 %v7912_v12, %s8261_s5  ;;  %v7914_v18 = vpop.eup %7913  ;;  %v7792_v12 = vld [vmem:[#allocation4 + $0x14] ss:$8 sps:$4 sm:$0xff]  }
0x16ab   :  { %v4379_v19 = vadd.f32 1.0, %v7914_v18  ;;  %v7916_v20 = vpop.eup %7915 }
0x16ac   :  { %v4456_v21 = vadd.f32 1.0, %v7916_v20 }
0x16ad   :  { %7917 = vrcp.f32 %v4379_v19 }
0x16ae   :  { %7919 = vrcp.f32 %v4456_v21 }
0x16b7   :  { %v9803_v22 = vpop.eup %7917 }
0x16b8   :  { %v7920_v25 = vpop.eup %7919  ;;  %v4386_v30 = vmul.f32 %v9803_v22, %v4384_v29  ;;  %v4636_v29 = vld [vmem:[#allocation9] sm:$0x3] }
0x16b9   :  { %v4463_v41 = vmul.f32 %v7920_v25, %v4461_v32 }
0x1716   :  { %v4389_v23 = vpop.permute.xlu1 %4388 }
0x1717   :  { %v4391_v24 = vmul.f32 %v9803_v22, %v4389_v23 }
0x1719   :  { %4393 = vrot.lane.b32.xlu1 %v4391_v24, %s8251_s7 }
0x171c   :  { %v4466_v26 = vpop.permute.xlu0 %4465 }
0x171d   :  { %v4468_v27 = vmul.f32 %v7920_v25, %v4466_v26 }
0x171f   :  { %4470 = vrot.lane.b32.xlu0 %v4468_v27, %s8251_s7 }
0x178b   :  { %v4394_v31 = vpop.permute.xlu1 %4393 }
0x178c   :  { %v4396_v36 = vadd.f32 %v4394_v31, %v4386_v30  ;;  %v4641_v30 = vrot.slane %v4636_v29, %v2971_v15  ;;  %v4645_v31 = vrot.slane %v4636_v29, %v2975_v17  ;;  %v4671_v17 = vld [vmem:[#allocation10 + $0x6] sm:$0x3] }
0x178e   :  { %7921 = vtanh.f32 %v4396_v36 }
0x1791   :  { %v4471_v37 = vpop.permute.xlu0 %4470 }
0x1792   :  { %v4473_v39 = vadd.f32 %v4471_v37, %v4463_v41 }
0x1794   :  { %7923 = vtanh.f32 %v4473_v39 }
0x1798   :  { %v7922_v28 = vpop.eup %7921 }
0x1799   :  { %4399 = vrot.lane.b32.xlu1 %v7922_v28, %s8261_s5 }
0x179d   :  { %3476 = vrot.lane.b32.xlu1 %v9594_v62, %s8251_s7 }
0x179e   :  { %v7924_v44 = vpop.eup %7923 }
0x179f   :  { %4476 = vrot.lane.b32.xlu0 %v7924_v44, %s8261_s5 }
0x17a1   :  { %3814 = vrot.lane.b32.xlu1 %v9669_v53, %s8251_s7  ;;  %v7786_v53 = vld [vmem:[#allocation4 + $0x34] ss:$8 sps:$4 sm:$0xff]  }
0x17a3   :  { %3304 = vrot.lane.b32.xlu0 %v9555_v5, %s8251_s7  ;;  %v7781_v5 = vld [vmem:[#allocation4 + $0x20] ss:$8 sps:$4 sm:$0xff]  }
0x17a5   :  { %4149 = vrot.lane.b32.xlu1 %v9746_v40, %s8251_s7 }
0x17a7   :  { %3647 = vrot.lane.b32.xlu0 %v9632_v56, %s8251_s7  ;;  %v7784_v56 = vld [vmem:[#allocation4 + $0x30] ss:$8 sps:$4 sm:$0xff]  }
0x17a9   :  { %3470 = vrot.lane.b32.xlu1 %v9589_v58, %s8251_s7  ;;  %v7783_v58 = vld [vmem:[#allocation4 + $0x24] ss:$8 sps:$4 sm:$0xff]  }
0x17aa   :  { %4527 = vmatprep.subr.bf16.mxu0 %v7783_v58 }
0x17ab   :  { %3980 = vrot.lane.b32.xlu0 %v9708_v43, %s8251_s7  ;;  %4528 = vmatpush1.bf16.msra.mxu0 %v7781_v5  ;;  %v7789_v43 = vld [vmem:[#allocation4 + $0x4] ss:$8 sps:$4 sm:$0xff]  }
0x17ac   :  { %4529 = vmatprep.subr.bf16.mxu0 %v7786_v53 }
0x17af   :  { %4319 = vrot.lane.b32.xlu0 %v9791_v50, %s8251_s7  ;;  %4530 = vmatpush1.bf16.msra.mxu0 %v7784_v56 }
0x17b0   :  { %4593 = vmatprep.subr.bf16.mxu0 %v7789_v43 }
0x17b3   :  { %3298 = vrot.lane.b32.xlu0 %v9551_v2, %s8251_s7 }
0x17b7   :  { %3642 = vrot.lane.b32.xlu0 %v9627_v47, %s8251_s7 }
0x17bb   :  { %3975 = vrot.lane.b32.xlu0 %v9703_v42, %s8251_s7 }
0x17bf   :  { %4314 = vrot.lane.b32.xlu0 %v9786_v46, %s8251_s7  ;;  %v9845_v46 = vld [vmem:[#allocation7 + $0x10] ss:$8 sps:$4 sm:$0xff]  }
0x17c0   :  { %7258 = vmatpush3.bf16.msra.mxu1 %v9845_v46 }
0x17c1   :  { %7263 = vmatprep.subr.bf16.mxu1 %v8258_v49 }
0x17c3   :  { %7260 = vmatmul.mubr.msk.bf16.vlgmr.msra.gmra.mrb[80].mxu1 %vm3134_vm1, %v4673_v52 }
0x17c4   :  { %7264 = vmatpush3.bf16.msra.mxu1 %v9859_v60  ;;  %7267 = vmatprep.mubr.msk.bf16.mxu1 %vm8260_vm0, %v8258_v49 }
0x17c5   :  { %7265 = vmatprep.subr.bf16.mxu1 %v8258_v49 }
0x180b   :  { %v4400_v62 = vpop.permute.xlu1 %4399 }
0x180f   :  { %v3477_v2 = vpop.permute.xlu1 %3476 }
0x1810   :  { %3480 = vst.msk [vmem:[#allocation3 + $0x18] sm:$0x30] %vm3479_vm2, %v3477_v2  ;;  %v4667_v2 = vld [vmem:[#allocation10 + $0x4] sm:$0x3] }
0x1811   :  { %v4477_v47 = vpop.permute.xlu0 %4476 }
0x1812   :  { %v4479_v42 = vmul.f32 %v7920_v25, %v4477_v47  ;;  %v4827_v47 = vrot.slane %v4671_v17, 2 }
0x1813   :  { %v3815_v40 = vpop.permute.xlu1 %3814 }
0x1814   :  { %3817 = vst.msk [vmem:[#allocation3 + $0x18] sm:$0x3] %vm3301_vm3, %v3815_v40  ;;  %4486 = vrot.lane.b32.xlu1 %v4479_v42, %s8251_s7 }
0x1815   :  { %v3305_v35 = vpop.permute.xlu0 %3304 }
0x1816   :  { %3309 = vst.msk [vmem:[#allocation3 + $0x18] sm:$0xc0] %vm3308_vm4, %v3305_v35 }
0x1817   :  { %v4150_v54 = vpop.permute.xlu1 %4149 }
0x1818   :  { %4152 = vst.msk [vmem:[#allocation3 + $0x10] sm:$0x30] %vm3479_vm2, %v4150_v54  ;;  %3809 = vrot.lane.b32.xlu1 %v9665_v45, %s8251_s7  ;;  %v4402_v45 = vmul.f32 %v9803_v22, %v4400_v62 }
0x1819   :  { %v3648_v33 = vpop.permute.xlu0 %3647 }
0x181a   :  { %3650 = vst.msk [vmem:[#allocation3 + $0x18] sm:$0xc] %vm3473_vm5, %v3648_v33 }
0x181b   :  { %v3471_v50 = vpop.permute.xlu1 %3470 }
0x181c   :  { %3474 = vst.msk [vmem:[#allocation3] sm:$0xc] %vm3473_vm5, %v3471_v50  ;;  %4144 = vrot.lane.b32.xlu1 %v9741_v38, %s8251_s7  ;;  %v9866_v38 = vld [vmem:[#allocation7 + $0x14] ss:$8 sps:$4 sm:$0xff]  }
0x181d   :  { %v3981_v48 = vpop.permute.xlu0 %3980  ;;  %7266 = vmatpush3.bf16.msra.mxu1 %v9866_v38 }
0x181e   :  { %3983 = vst.msk [vmem:[#allocation3 + $0x10] sm:$0xc0] %vm3308_vm4, %v3981_v48  ;;  %7279 = vmatprep.subr.bf16.mxu1 %v8258_v49 }
0x1820   :  { %4481 = vrot.lane.b32.xlu1 %v4402_v45, %s8251_s7  ;;  %7268 = vmatmul.mubr.msk.bf16.vlgmr.msra.gmra.mrb[84].mxu1 %vm3134_vm1, %v4759_v0 }
0x1821   :  { %v4320_v61 = vpop.permute.xlu0 %4319  ;;  %7280 = vmatpush3.bf16.msra.mxu1 %v9859_v60  ;;  %7283 = vmatprep.mubr.msk.bf16.mxu1 %vm8260_vm0, %v8258_v49  ;;  %v4498_v10 = vld [vmem:[#allocation3 + $0x18] sm:$0xff] }
0x1822   :  { %4322 = vst.msk [vmem:[#allocation3 + $0x10] sm:$0xc] %vm3473_vm5, %v4320_v61  ;;  %7281 = vmatprep.subr.bf16.mxu1 %v8258_v49 }
0x1825   :  { %v3299_v1 = vpop.permute.xlu0 %3298  ;;  %7282 = vmatpush3.bf16.msra.mxu1 %v9866_v38 }
0x1826   :  { %3302 = vst.msk [vmem:[#allocation3] sm:$0x3] %vm3301_vm3, %v3299_v1  ;;  %7295 = vmatprep.subr.bf16.mxu1 %v8258_v49 }
0x1829   :  { %v3643_v3 = vpop.permute.xlu0 %3642 }
0x182a   :  { %3645 = vst.msk [vmem:[#allocation3] sm:$0x30] %vm3479_vm2, %v3643_v3 }
0x182d   :  { %v3976_v55 = vpop.permute.xlu0 %3975 }
0x182e   :  { %3978 = vst.msk [vmem:[#allocation3 + $0x8] sm:$0x3] %vm3301_vm3, %v3976_v55 }
0x1831   :  { %v4315_v4 = vpop.permute.xlu0 %4314 }
0x1832   :  { %4317 = vst.msk [vmem:[#allocation3 + $0x8] sm:$0x30] %vm3479_vm2, %v4315_v4 }
0x1886   :  { %v4487_v6 = vpop.permute.xlu1 %4486 }
0x1887   :  { %4489 = vst.msk [vmem:[#allocation3 + $0x10] sm:$0x3] %vm3301_vm3, %v4487_v6 }
0x188a   :  { %v3810_v7 = vpop.permute.xlu1 %3809 }
0x188b   :  { %3812 = vst.msk [vmem:[#allocation3] sm:$0xc0] %vm3308_vm4, %v3810_v7 }
0x188e   :  { %v4145_v8 = vpop.permute.xlu1 %4144  ;;  %v4497_v57 = vld [vmem:[#allocation3 + $0x10] sm:$0xff] }
0x188f   :  { %4147 = vst.msk [vmem:[#allocation3 + $0x8] sm:$0xc] %vm3473_vm5, %v4145_v8  ;;  %v4499_v11 = vpack.c.bf16 %v4498_v10, %v4497_v57 }
0x1891   :  { %6604 = vmatmul.mubr.msk.bf16.vlgmr.msra.gmra.mrb[52].mxu0 %vm3134_vm1, %v4499_v11 }
0x1892   :  { %4594 = vmatpush1.bf16.msra.mxu0 %v7787_v9  ;;  %v4482_v13 = vpop.permute.xlu1 %4481  ;;  %4625 = vmatprep.mubr.bf16.mxu0 %v8259_v51  ;;  %v4490_v18 = vld [vmem:[#allocation3] sm:$0xff] }
0x1893   :  { %4484 = vst.msk [vmem:[#allocation3 + $0x8] sm:$0xc0] %vm3308_vm4, %v4482_v13  ;;  %4595 = vmatprep.subr.bf16.mxu0 %v7792_v12 }
0x1896   :  { %4596 = vmatpush1.bf16.msra.mxu0 %v7790_v16  ;;  %v4723_v51 = vpop.f32.mrb[80].mxu1 }
0x1897   :  { %7271 = vmatprep.subr.bf16.mxu0 %v8258_v49  ;;  %v7261_v21 = vpop.f32.mrb[81].mxu1 }
0x1898   :  { %v4726_v22 = vpop.f32.mrb[82].mxu1 }
0x1899   :  { %v7262_v23 = vpop.f32.mrb[83].mxu1 }
0x189a   :  { %v4491_v19 = vld [vmem:[#allocation3 + $0x8] sm:$0xff] }
0x189b   :  { %v4492_v20 = vpack.c.bf16 %v4491_v19, %v4490_v18 }
0x189d   :  { %6609 = vmatmul.mubr.msk.bf16.vlgmr.msra.gmra.mrb[52].mxu0 %vm3134_vm1, %v4492_v20 }
0x189e   :  { %7272 = vmatpush3.bf16.msra.mxu0 %v9838_v34  ;;  %7275 = vmatprep.mubr.msk.bf16.mxu0 %vm8260_vm0, %v8258_v49 }
0x189f   :  { %7273 = vmatprep.subr.bf16.mxu0 %v8258_v49 }
0x18a2   :  { %7274 = vmatpush3.bf16.msra.mxu0 %v9845_v46 }
0x18a3   :  { %7287 = vmatprep.subr.bf16.mxu0 %v8258_v49 }
0x18f3   :  { %v4809_v24 = vpop.f32.mrb[84].mxu1 }
0x18f4   :  { %v7269_v25 = vpop.f32.mrb[85].mxu1  ;;  %v4816_v62 = vrot.slane %v4809_v24, 2 }
0x18f5   :  { %v4812_v26 = vpop.f32.mrb[86].mxu1 }
0x18f6   :  { %v7270_v27 = vpop.f32.mrb[87].mxu1 }
0x1970   :  { %v4627_v36 = vpop.f32.mrb[52].mxu0 }
0x1971   :  { %v4648_v32 = vadd.f32 %v4641_v30, %v4627_v36  ;;  %v4629_v41 = vpop.f32.mrb[53].mxu0 }
0x1972   :  { %v4649_v37 = vadd.f32 %v4645_v31, %v4629_v41  ;;  %v4631_v39 = vpop.f32.mrb[54].mxu0 }
0x1973   :  { %4652 = vst [vmem:[#allocation2] sm:$0xff] %v4648_v32  ;;  %v4650_v28 = vadd.f32 %v4641_v30, %v4631_v39  ;;  %v4633_v44 = vpop.f32.mrb[55].mxu0 }
0x1974   :  { %4653 = vst [vmem:[#allocation2 + $0x8] sm:$0xff] %v4649_v37  ;;  %v4651_v5 = vadd.f32 %v4645_v31, %v4633_v44 }
0x1975   :  { %4654 = vst [vmem:[#allocation2 + $0x10] sm:$0xff] %v4650_v28 }
0x1976   :  { %4655 = vst [vmem:[#allocation2 + $0x18] sm:$0xff] %v4651_v5 }
0x197a   :  { %v4672_v58 = vld [vmem:[#allocation2] sm:$0x3]  ;;  %v4850_v24 = vld [vmem:[#allocation2] sm:$0xc] }
0x197b   :  { %v4729_v56 = vadd.f32 %v4723_v51, %v4672_v58 }
0x197d   :  { %7925 = vtanh.f32 %v4729_v56  ;;  %v4758_v15 = vld [vmem:[#allocation2 + $0x18] sm:$0xc0]  ;;  %v6615_v42 = vmul.f32 -1.442695, %v4729_v56  ;;  %v4929_v36 = vld [vmem:[#allocation2 + $0x18] sm:$0x30] }
0x197e   :  { %v4818_v53 = vadd.f32 %v4816_v62, %v4758_v15 }
0x1980   :  { %7927 = vtanh.f32 %v4818_v53  ;;  %v6619_v40 = vmul.f32 -1.442695, %v4818_v53 }
0x1981   :  { %7929 = vpow2.f32 %v6615_v42 }
0x1982   :  { %7931 = vpow2.f32 %v6619_v40 }
0x1987   :  { %v7926_v14 = vpop.eup %7925 }
0x1988   :  { %4743 = vrot.lane.b32.xlu1 %v7926_v14, %s8261_s5 }
0x198a   :  { %v7928_v43 = vpop.eup %7927 }
0x198b   :  { %4833 = vrot.lane.b32.xlu0 %v7928_v43, %s8261_s5  ;;  %v7930_v35 = vpop.eup %7929 }
0x198c   :  { %4738 = vrot.lane.b32.xlu1 %v4667_v2, %s8251_s7  ;;  %v7932_v54 = vpop.eup %7931  ;;  %v4733_v33 = vadd.f32 1.0, %v7930_v35 }
0x198d   :  { %v4822_v50 = vadd.f32 1.0, %v7932_v54 }
0x198e   :  { %7933 = vrcp.f32 %v4733_v33 }
0x198f   :  { %4828 = vrot.lane.b32.xlu0 %v4827_v47, %s8251_s7  ;;  %7935 = vrcp.f32 %v4822_v50 }
0x1998   :  { %v7934_v48 = vpop.eup %7933 }
0x1999   :  { %v7936_v52 = vpop.eup %7935 }
0x19fa   :  { %v4744_v59 = vpop.permute.xlu1 %4743 }
0x19fb   :  { %v4746_v45 = vmul.f32 %v7934_v48, %v4744_v59 }
0x19fd   :  { %4748 = vrot.lane.b32.xlu1 %v4746_v45, %s8251_s7  ;;  %v4834_v61 = vpop.permute.xlu0 %4833 }
0x19fe   :  { %v4836_v63 = vmul.f32 %v7936_v52, %v4834_v61  ;;  %v4739_v0 = vpop.permute.xlu1 %4738 }
0x19ff   :  { %v4741_v1 = vmul.f32 %v7934_v48, %v4739_v0 }
0x1a00   :  { %4838 = vrot.lane.b32.xlu0 %v4836_v63, %s8251_s7 }
0x1a01   :  { %v4829_v3 = vpop.permute.xlu0 %4828 }
0x1a02   :  { %v4831_v6 = vmul.f32 %v7936_v52, %v4829_v3 }
0x1a6f   :  { %v4749_v55 = vpop.permute.xlu1 %4748 }
0x1a70   :  { %v9912_v4 = vadd.f32 %v4749_v55, %v4741_v1 }
0x1a72   :  { %7937 = vtanh.f32 %v9912_v4  ;;  %v4839_v7 = vpop.permute.xlu0 %4838  ;;  %v4910_v42 = vrot.slane %v9912_v4, 6 }
0x1a73   :  { %v9915_v8 = vadd.f32 %v4839_v7, %v4831_v6 }
0x1a75   :  { %7939 = vtanh.f32 %v9915_v8  ;;  %v4990_v33 = vrot.slane %v9915_v8, 2 }
0x1a7c   :  { %v7938_v9 = vpop.eup %7937 }
0x1a7d   :  { %4754 = vrot.lane.b32.xlu1 %v7938_v9, %s8261_s5 }
0x1a7f   :  { %v7940_v57 = vpop.eup %7939 }
0x1a80   :  { %4844 = vrot.lane.b32.xlu0 %v7940_v57, %s8261_s5 }
0x1aef   :  { %v4755_v10 = vpop.permute.xlu1 %4754 }
0x1af0   :  { %v9920_v11 = vmul.f32 %v7934_v48, %v4755_v10 }
0x1af2   :  { %v4845_v12 = vpop.permute.xlu0 %4844  ;;  %v4851_v13 = vpack.c.bf16 %v9920_v11, %v9920_v11 }
0x1af3   :  { %v9924_v16 = vmul.f32 %v7936_v52, %v4845_v12  ;;  %v5017_v12 = vld [vmem:[#allocation2] sm:$0x30] }
0x1af4   :  { %4853 = vrot.lane.b32.xlu0 %v4851_v13, %s8251_s7 }
0x1af5   :  { %v4930_v18 = vpack.c.bf16 %v9924_v16, %v9924_v16 }
0x1af7   :  { %v4932_v19 = vrot.slane %v4930_v18, 3 }
0x1af9   :  { %4933 = vrot.lane.b32.xlu1 %v4932_v19, %s8251_s7 }
0x1b66   :  { %v4854_v20 = vpop.permute.xlu0 %4853 }
0x1b67   :  { %7276 = vmatmul.mubr.msk.bf16.vlgmr.msra.gmra.mrb[56].mxu0 %vm3134_vm1, %v4854_v20 }
0x1b68   :  { %7288 = vmatpush3.bf16.msra.mxu0 %v9838_v34  ;;  %7291 = vmatprep.mubr.msk.bf16.mxu0 %vm8260_vm0, %v8258_v49 }
0x1b69   :  { %7289 = vmatprep.subr.bf16.mxu0 %v8258_v49 }
0x1b6b   :  { %v4934_v51 = vpop.permute.xlu1 %4933 }
0x1b6c   :  { %7284 = vmatmul.mubr.msk.bf16.vlgmr.msra.gmra.mrb[88].mxu1 %vm3134_vm1, %v4934_v51  ;;  %7290 = vmatpush3.bf16.msra.mxu0 %v9845_v46 }
0x1b6d   :  { %7296 = vmatpush3.bf16.msra.mxu1 %v9859_v60  ;;  %7299 = vmatprep.mubr.msk.bf16.mxu1 %vm8260_vm0, %v8258_v49 }
0x1b6e   :  { %7297 = vmatprep.subr.bf16.mxu1 %v8258_v49  ;;  %7303 = vmatprep.subr.bf16.mxu0 %v8258_v49 }
0x1b71   :  { %7298 = vmatpush3.bf16.msra.mxu1 %v9866_v38 }
0x1b72   :  { %7311 = vmatprep.subr.bf16.mxu1 %v8258_v49 }
0x1c3a   :  { %v4892_v21 = vpop.f32.mrb[56].mxu0 }
0x1c3b   :  { %v4899_v22 = vrot.slane %v4892_v21, 6  ;;  %v7277_v23 = vpop.f32.mrb[57].mxu0 }
0x1c3c   :  { %v4895_v25 = vpop.f32.mrb[58].mxu0 }
0x1c3d   :  { %v4901_v26 = vadd.f32 %v4899_v22, %v4850_v24  ;;  %v7278_v27 = vpop.f32.mrb[59].mxu0  ;;  %v5097_v22 = vld [vmem:[#allocation2 + $0x18] sm:$0xc] }
0x1c3f   :  { %7941 = vtanh.f32 %v4901_v26  ;;  %v4972_v29 = vpop.f32.mrb[88].mxu1  ;;  %v6621_v44 = vmul.f32 -1.442695, %v4901_v26 }
0x1c40   :  { %v4979_v30 = vrot.slane %v4972_v29, 4  ;;  %v7285_v31 = vpop.f32.mrb[89].mxu1 }
0x1c41   :  { %v4975_v32 = vpop.f32.mrb[90].mxu1 }
0x1c42   :  { %v4981_v41 = vadd.f32 %v4979_v30, %v4929_v36  ;;  %v7286_v37 = vpop.f32.mrb[91].mxu1 }
0x1c44   :  { %7943 = vtanh.f32 %v4981_v41  ;;  %v6623_v5 = vmul.f32 -1.442695, %v4981_v41 }
0x1c45   :  { %7945 = vpow2.f32 %v6621_v44 }
0x1c46   :  { %7947 = vpow2.f32 %v6623_v5 }
0x1c49   :  { %v7942_v39 = vpop.eup %7941 }
0x1c4a   :  { %4914 = vrot.lane.b32.xlu0 %v7942_v39, %s8261_s5 }
0x1c4e   :  { %v7944_v28 = vpop.eup %7943 }
0x1c4f   :  { %4994 = vrot.lane.b32.xlu1 %v7944_v28, %s8261_s5  ;;  %v7946_v58 = vpop.eup %7945 }
0x1c50   :  { %v4905_v62 = vadd.f32 1.0, %v7946_v58  ;;  %v7948_v56 = vpop.eup %7947 }
0x1c51   :  { %v4985_v15 = vadd.f32 1.0, %v7948_v56 }
0x1c52   :  { %7949 = vrcp.f32 %v4905_v62 }
0x1c53   :  { %7951 = vrcp.f32 %v4985_v15 }
0x1c5c   :  { %v7950_v53 = vpop.eup %7949 }
0x1c5d   :  { %v7952_v2 = vpop.eup %7951  ;;  %v4912_v40 = vmul.f32 %v7950_v53, %v4910_v42 }
0x1c5e   :  { %v4992_v50 = vmul.f32 %v7952_v2, %v4990_v33 }
0x1cbc   :  { %v4915_v14 = vpop.permute.xlu0 %4914 }
0x1cbd   :  { %v4917_v17 = vmul.f32 %v7950_v53, %v4915_v14 }
0x1cbf   :  { %4919 = vrot.lane.b32.xlu0 %v4917_v17, %s8251_s7 }
0x1cc1   :  { %v4995_v43 = vpop.permute.xlu1 %4994 }
0x1cc2   :  { %v4997_v47 = vmul.f32 %v7952_v2, %v4995_v43 }
0x1cc4   :  { %4999 = vrot.lane.b32.xlu1 %v4997_v47, %s8251_s7 }
0x1d31   :  { %v4920_v35 = vpop.permute.xlu0 %4919 }
0x1d32   :  { %v9949_v54 = vadd.f32 %v4920_v35, %v4912_v40 }
0x1d34   :  { %7953 = vtanh.f32 %v9949_v54  ;;  %v5078_v62 = vrot.slane %v9949_v54, 6 }
0x1d36   :  { %v5000_v48 = vpop.permute.xlu1 %4999 }
0x1d37   :  { %v9953_v59 = vadd.f32 %v5000_v48, %v4992_v50 }
0x1d39   :  { %7955 = vtanh.f32 %v9953_v59  ;;  %v5158_v14 = vrot.slane %v9953_v59, 2 }
0x1d3e   :  { %v7954_v45 = vpop.eup %7953 }
0x1d3f   :  { %4925 = vrot.lane.b32.xlu0 %v7954_v45, %s8261_s5 }
0x1d43   :  { %v7956_v52 = vpop.eup %7955 }
0x1d44   :  { %5005 = vrot.lane.b32.xlu1 %v7956_v52, %s8261_s5 }
0x1db1   :  { %v4926_v61 = vpop.permute.xlu0 %4925 }
0x1db2   :  { %v9958_v63 = vmul.f32 %v7950_v53, %v4926_v61 }
0x1db4   :  { %v5018_v0 = vpack.c.bf16 %v9958_v63, %v9958_v63  ;;  %v5010_v40 = vrot.slane %v9958_v63, 2 }
0x1db6   :  { %v5006_v1 = vpop.permute.xlu1 %5005  ;;  %v5020_v3 = vrot.slane %v5018_v0, 1  ;;  %v5012_v33 = vadd.f32 %v5010_v40, %v9920_v11 }
0x1db7   :  { %v9962_v55 = vmul.f32 %v7952_v2, %v5006_v1 }
0x1db8   :  { %5021 = vrot.lane.b32.xlu0 %v5020_v3, %s8251_s7 }
0x1db9   :  { %v5098_v4 = vpack.c.bf16 %v9962_v55, %v9962_v55  ;;  %v5014_v59 = vrot.slane %v9962_v55, 6 }
0x1dbb   :  { %v5100_v6 = vrot.slane %v5098_v4, 2  ;;  %v5016_v1 = vadd.f32 %v5014_v59, %v9924_v16 }
0x1dbd   :  { %5101 = vrot.lane.b32.xlu1 %v5100_v6, %s8251_s7 }
0x1e2a   :  { %v5022_v7 = vpop.permute.xlu0 %5021 }
0x1e2b   :  { %7292 = vmatmul.mubr.msk.bf16.vlgmr.msra.gmra.mrb[60].mxu0 %vm3134_vm1, %v5022_v7 }
0x1e2c   :  { %7304 = vmatpush3.bf16.msra.mxu0 %v9838_v34  ;;  %7307 = vmatprep.mubr.msk.bf16.mxu0 %vm8260_vm0, %v8258_v49 }
0x1e2d   :  { %7305 = vmatprep.subr.bf16.mxu0 %v8258_v49 }
0x1e2f   :  { %v5102_v8 = vpop.permute.xlu1 %5101 }
0x1e30   :  { %7300 = vmatmul.mubr.msk.bf16.vlgmr.msra.gmra.mrb[92].mxu1 %vm3134_vm1, %v5102_v8  ;;  %7306 = vmatpush3.bf16.msra.mxu0 %v9845_v46 }
0x1e31   :  { %7312 = vmatpush3.bf16.msra.mxu1 %v9859_v60  ;;  %7315 = vmatprep.mubr.msk.bf16.mxu1 %vm8260_vm0, %v8258_v49 }
0x1e32   :  { %7313 = vmatprep.subr.bf16.mxu1 %v8258_v49  ;;  %7319 = vmatprep.subr.bf16.mxu0 %v8258_v49 }
0x1e35   :  { %7314 = vmatpush3.bf16.msra.mxu1 %v9866_v38 }
0x1e36   :  { %7327 = vmatprep.subr.bf16.mxu1 %v8258_v49 }
0x1efe   :  { %v5060_v9 = vpop.f32.mrb[60].mxu0 }
0x1eff   :  { %v5067_v57 = vrot.slane %v5060_v9, 4  ;;  %v7293_v10 = vpop.f32.mrb[61].mxu0  ;;  %v5185_v9 = vld [vmem:[#allocation2] sm:$0xc0] }
0x1f00   :  { %v5063_v13 = vpop.f32.mrb[62].mxu0 }
0x1f01   :  { %v5069_v18 = vadd.f32 %v5067_v57, %v5017_v12  ;;  %v7294_v19 = vpop.f32.mrb[63].mxu0  ;;  %v5265_v13 = vld [vmem:[#allocation2 + $0x18] sm:$0x3] }
0x1f03   :  { %7957 = vtanh.f32 %v5069_v18  ;;  %v5140_v20 = vpop.f32.mrb[92].mxu1  ;;  %v6625_v29 = vmul.f32 -1.442695, %v5069_v18 }
0x1f04   :  { %v5147_v51 = vrot.slane %v5140_v20, 6  ;;  %v7301_v21 = vpop.f32.mrb[93].mxu1 }
0x1f05   :  { %v5143_v23 = vpop.f32.mrb[94].mxu1 }
0x1f06   :  { %v5149_v24 = vadd.f32 %v5147_v51, %v5097_v22  ;;  %v7302_v25 = vpop.f32.mrb[95].mxu1 }
0x1f08   :  { %7959 = vtanh.f32 %v5149_v24  ;;  %v6627_v30 = vmul.f32 -1.442695, %v5149_v24 }
0x1f09   :  { %7961 = vpow2.f32 %v6625_v29 }
0x1f0a   :  { %7963 = vpow2.f32 %v6627_v30 }
0x1f0d   :  { %v7958_v26 = vpop.eup %7957 }
0x1f0e   :  { %5082 = vrot.lane.b32.xlu0 %v7958_v26, %s8261_s5 }
0x1f12   :  { %v7960_v27 = vpop.eup %7959 }
0x1f13   :  { %5162 = vrot.lane.b32.xlu1 %v7960_v27, %s8261_s5  ;;  %v7962_v31 = vpop.eup %7961 }
0x1f14   :  { %v5073_v36 = vadd.f32 1.0, %v7962_v31  ;;  %v7964_v32 = vpop.eup %7963 }
0x1f15   :  { %v5153_v41 = vadd.f32 1.0, %v7964_v32 }
0x1f16   :  { %7965 = vrcp.f32 %v5073_v36 }
0x1f17   :  { %7967 = vrcp.f32 %v5153_v41 }
0x1f20   :  { %v7966_v37 = vpop.eup %7965 }
0x1f21   :  { %v7968_v44 = vpop.eup %7967  ;;  %v5080_v56 = vmul.f32 %v7966_v37, %v5078_v62 }
0x1f22   :  { %v5160_v17 = vmul.f32 %v7968_v44, %v5158_v14 }
0x1f80   :  { %v5083_v39 = vpop.permute.xlu0 %5082 }
0x1f81   :  { %v5085_v28 = vmul.f32 %v7966_v37, %v5083_v39 }
0x1f83   :  { %5087 = vrot.lane.b32.xlu0 %v5085_v28, %s8251_s7 }
0x1f85   :  { %v5163_v5 = vpop.permute.xlu1 %5162 }
0x1f86   :  { %v5165_v58 = vmul.f32 %v7968_v44, %v5163_v5 }
0x1f88   :  { %5167 = vrot.lane.b32.xlu1 %v5165_v58, %s8251_s7 }
0x1ff5   :  { %v5088_v15 = vpop.permute.xlu0 %5087 }
0x1ff6   :  { %v9987_v53 = vadd.f32 %v5088_v15, %v5080_v56 }
0x1ff8   :  { %7969 = vtanh.f32 %v9987_v53  ;;  %v5246_v28 = vrot.slane %v9987_v53, 6 }
0x1ffa   :  { %v5168_v2 = vpop.permute.xlu1 %5167 }
0x1ffb   :  { %v9991_v43 = vadd.f32 %v5168_v2, %v5160_v17 }
0x1ffd   :  { %7971 = vtanh.f32 %v9991_v43  ;;  %v5323_v5 = vrot.slane %v9991_v43, 2 }
0x2002   :  { %v7970_v47 = vpop.eup %7969 }
0x2003   :  { %5093 = vrot.lane.b32.xlu0 %v7970_v47, %s8261_s5 }
0x2007   :  { %v7972_v42 = vpop.eup %7971 }
0x2008   :  { %5173 = vrot.lane.b32.xlu1 %v7972_v42, %s8261_s5 }
0x2075   :  { %v5094_v35 = vpop.permute.xlu0 %5093 }
0x2076   :  { %v5096_v54 = vmul.f32 %v7966_v37, %v5094_v35 }
0x2078   :  { %v5178_v50 = vrot.slane %v5096_v54, 4  ;;  %v5186_v48 = vpack.c.bf16 %v5096_v54, %v5096_v54 }
0x207a   :  { %v9999_v45 = vadd.f32 %v5178_v50, %v5012_v33  ;;  %v5188_v52 = vrot.slane %v5186_v48, 2  ;;  %v5174_v61 = vpop.permute.xlu1 %5173 }
0x207b   :  { %v5176_v0 = vmul.f32 %v7968_v44, %v5174_v61 }
0x207c   :  { %5189 = vrot.lane.b32.xlu0 %v5188_v52, %s8251_s7 }
0x207d   :  { %v5182_v3 = vrot.slane %v5176_v0, 4  ;;  %v5266_v4 = vpack.c.bf16 %v5176_v0, %v5176_v0 }
0x207f   :  { %v10003_v63 = vadd.f32 %v5182_v3, %v5016_v1  ;;  %v5268_v6 = vrot.slane %v5266_v4, 1 }
0x2081   :  { %5269 = vrot.lane.b32.xlu1 %v5268_v6, %s8251_s7 }
0x20ee   :  { %v5190_v11 = vpop.permute.xlu0 %5189 }
0x20ef   :  { %7308 = vmatmul.mubr.msk.bf16.vlgmr.msra.gmra.mrb[64].mxu0 %vm3134_vm1, %v5190_v11 }
0x20f0   :  { %7320 = vmatpush3.bf16.msra.mxu0 %v9838_v34  ;;  %7323 = vmatprep.mubr.msk.bf16.mxu0 %vm8260_vm0, %v8258_v49 }
0x20f1   :  { %7321 = vmatprep.subr.bf16.mxu0 %v8258_v49 }
0x20f3   :  { %v5270_v55 = vpop.permute.xlu1 %5269 }
0x20f4   :  { %7316 = vmatmul.mubr.msk.bf16.vlgmr.msra.gmra.mrb[96].mxu1 %vm3134_vm1, %v5270_v55  ;;  %7322 = vmatpush3.bf16.msra.mxu0 %v9845_v46  ;;  %v5427_v55 = vld [vmem:[#allocation2 + $0x8] sm:$0xc0] }
0x20f5   :  { %7328 = vmatpush3.bf16.msra.mxu1 %v9859_v60  ;;  %7331 = vmatprep.mubr.msk.bf16.mxu1 %vm8260_vm0, %v8258_v49 }
0x20f6   :  { %7329 = vmatprep.subr.bf16.mxu1 %v8258_v49  ;;  %7335 = vmatprep.subr.bf16.mxu0 %v8258_v49 }
0x20f9   :  { %7330 = vmatpush3.bf16.msra.mxu1 %v9866_v38 }
0x20fa   :  { %7343 = vmatprep.subr.bf16.mxu1 %v8258_v49 }
0x21c2   :  { %v5228_v16 = vpop.f32.mrb[64].mxu0 }
0x21c3   :  { %v5235_v7 = vrot.slane %v5228_v16, 2  ;;  %v7309_v8 = vpop.f32.mrb[65].mxu0 }
0x21c4   :  { %v5231_v57 = vpop.f32.mrb[66].mxu0 }
0x21c5   :  { %v5237_v10 = vadd.f32 %v5235_v7, %v5185_v9  ;;  %v7310_v12 = vpop.f32.mrb[67].mxu0 }
0x21c7   :  { %7973 = vtanh.f32 %v5237_v10  ;;  %v5308_v18 = vpop.f32.mrb[96].mxu1  ;;  %v6629_v24 = vmul.f32 -1.442695, %v5237_v10 }
0x21c8   :  { %v5314_v19 = vadd.f32 %v5308_v18, %v5265_v13  ;;  %v7317_v20 = vpop.f32.mrb[97].mxu1 }
0x21c9   :  { %v5311_v51 = vpop.f32.mrb[98].mxu1 }
0x21ca   :  { %7975 = vtanh.f32 %v5314_v19  ;;  %v7318_v21 = vpop.f32.mrb[99].mxu1  ;;  %v6631_v25 = vmul.f32 -1.442695, %v5314_v19 }
0x21cb   :  { %7977 = vpow2.f32 %v6629_v24 }
0x21cc   :  { %7979 = vpow2.f32 %v6631_v25 }
0x21d1   :  { %v7974_v22 = vpop.eup %7973 }
0x21d2   :  { %5250 = vrot.lane.b32.xlu1 %v7974_v22, %s8261_s5 }
0x21d4   :  { %v7976_v23 = vpop.eup %7975 }
0x21d5   :  { %5327 = vrot.lane.b32.xlu0 %v7976_v23, %s8261_s5  ;;  %v7978_v26 = vpop.eup %7977 }
0x21d6   :  { %v7980_v27 = vpop.eup %7979  ;;  %v5241_v29 = vadd.f32 1.0, %v7978_v26 }
0x21d7   :  { %v5318_v30 = vadd.f32 1.0, %v7980_v27 }
0x21d8   :  { %7981 = vrcp.f32 %v5241_v29 }
0x21d9   :  { %7983 = vrcp.f32 %v5318_v30 }
0x21e2   :  { %v7982_v31 = vpop.eup %7981 }
0x21e3   :  { %v7984_v41 = vpop.eup %7983  ;;  %v5248_v44 = vmul.f32 %v7982_v31, %v5246_v28 }
0x21e4   :  { %v5325_v56 = vmul.f32 %v7984_v41, %v5323_v5 }
0x2244   :  { %v5251_v36 = vpop.permute.xlu1 %5250 }
0x2245   :  { %v5253_v32 = vmul.f32 %v7982_v31, %v5251_v36 }
0x2247   :  { %5255 = vrot.lane.b32.xlu1 %v5253_v32, %s8251_s7  ;;  %v5328_v37 = vpop.permute.xlu0 %5327 }
0x2248   :  { %v5330_v39 = vmul.f32 %v7984_v41, %v5328_v37 }
0x224a   :  { %5332 = vrot.lane.b32.xlu0 %v5330_v39, %s8251_s7 }
0x22b9   :  { %v5256_v58 = vpop.permute.xlu1 %5255 }
0x22ba   :  { %v10026_v62 = vadd.f32 %v5256_v58, %v5248_v44 }
0x22bc   :  { %7985 = vtanh.f32 %v10026_v62  ;;  %v5333_v15 = vpop.permute.xlu0 %5332  ;;  %v5408_v27 = vrot.slane %v10026_v62, 6 }
0x22bd   :  { %v10029_v14 = vadd.f32 %v5333_v15, %v5325_v56 }
0x22bf   :  { %7987 = vtanh.f32 %v10029_v14  ;;  %v5487_v30 = vrot.slane %v10029_v14, 2 }
0x22c6   :  { %v7986_v17 = vpop.eup %7985 }
0x22c7   :  { %5261 = vrot.lane.b32.xlu1 %v7986_v17, %s8261_s5 }
0x22c9   :  { %v7988_v2 = vpop.eup %7987 }
0x22ca   :  { %5338 = vrot.lane.b32.xlu0 %v7988_v2, %s8261_s5 }
0x2339   :  { %v5262_v53 = vpop.permute.xlu1 %5261 }
0x233a   :  { %v5264_v47 = vmul.f32 %v7982_v31, %v5262_v53 }
0x233c   :  { %v5343_v43 = vrot.slane %v5264_v47, 6  ;;  %v5351_v42 = vpack.c.bf16 %v5264_v47, %v5264_v47  ;;  %v5339_v40 = vpop.permute.xlu0 %5338 }
0x233d   :  { %v5341_v35 = vmul.f32 %v7984_v41, %v5339_v40  ;;  %v5508_v40 = vld [vmem:[#allocation2 + $0x10] sm:$0xc] }
0x233e   :  { %v5353_v54 = vrot.slane %v5351_v42, 3  ;;  %v10035_v33 = vadd.f32 %v5343_v43, %v9999_v45  ;;  %v5350_v45 = vld [vmem:[#allocation2 + $0x10] sm:$0x3] }
0x233f   :  { %v5347_v50 = vrot.slane %v5341_v35, 2  ;;  %v5428_v48 = vpack.c.bf16 %v5341_v35, %v5341_v35 }
0x2340   :  { %5354 = vrot.lane.b32.xlu1 %v5353_v54, %s8251_s7 }
0x2341   :  { %5430 = vrot.lane.b32.xlu0 %v5428_v48, %s8251_s7  ;;  %v10040_v59 = vadd.f32 %v5347_v50, %v10003_v63  ;;  %v5587_v48 = vld [vmem:[#allocation2 + $0x8] sm:$0x30] }
0x23b2   :  { %v5355_v52 = vpop.permute.xlu1 %5354 }
0x23b3   :  { %7324 = vmatmul.mubr.msk.bf16.vlgmr.msra.gmra.mrb[68].mxu0 %vm3134_vm1, %v5355_v52  ;;  %v5431_v61 = vpop.permute.xlu0 %5430 }
0x23b4   :  { %7332 = vmatmul.mubr.msk.bf16.vlgmr.msra.gmra.mrb[100].mxu1 %vm3134_vm1, %v5431_v61  ;;  %7336 = vmatpush3.bf16.msra.mxu0 %v9838_v34 }
0x23b5   :  { %7337 = vmatprep.subr.bf16.mxu0 %v8258_v49  ;;  %7344 = vmatpush3.bf16.msra.mxu1 %v9859_v60 }
0x23b6   :  { %7339 = vmatprep.mubr.msk.bf16.mxu0 %vm8260_vm0, %v8258_v49  ;;  %7345 = vmatprep.subr.bf16.mxu1 %v8258_v49 }
0x23b7   :  { %7347 = vmatprep.mubr.msk.bf16.mxu1 %vm8260_vm0, %v8258_v49 }
0x23b8   :  { %7338 = vmatpush3.bf16.msra.mxu0 %v9845_v46 }
0x23b9   :  { %7346 = vmatpush3.bf16.msra.mxu1 %v9866_v38  ;;  %7351 = vmatprep.subr.bf16.mxu0 %v8258_v49 }
0x23ba   :  { %7359 = vmatprep.subr.bf16.mxu1 %v8258_v49 }
0x2486   :  { %v5393_v0 = vpop.f32.mrb[68].mxu0 }
0x2487   :  { %v5399_v1 = vadd.f32 %v5393_v0, %v5350_v45  ;;  %v7325_v3 = vpop.f32.mrb[69].mxu0  ;;  %v5469_v4 = vpop.f32.mrb[100].mxu1 }
0x2488   :  { %v5476_v63 = vrot.slane %v5469_v4, 2  ;;  %v5396_v6 = vpop.f32.mrb[70].mxu0  ;;  %v7333_v11 = vpop.f32.mrb[101].mxu1 }
0x2489   :  { %7989 = vtanh.f32 %v5399_v1  ;;  %v7326_v16 = vpop.f32.mrb[71].mxu0  ;;  %v5472_v7 = vpop.f32.mrb[102].mxu1  ;;  %v6633_v12 = vmul.f32 -1.442695, %v5399_v1 }
0x248a   :  { %v5478_v8 = vadd.f32 %v5476_v63, %v5427_v55  ;;  %v7334_v9 = vpop.f32.mrb[103].mxu1 }
0x248c   :  { %7991 = vtanh.f32 %v5478_v8  ;;  %v6635_v13 = vmul.f32 -1.442695, %v5478_v8 }
0x248d   :  { %7993 = vpow2.f32 %v6633_v12 }
0x248e   :  { %7995 = vpow2.f32 %v6635_v13 }
0x2493   :  { %v7990_v57 = vpop.eup %7989 }
0x2494   :  { %5412 = vrot.lane.b32.xlu1 %v7990_v57, %s8261_s5 }
0x2496   :  { %v7992_v10 = vpop.eup %7991 }
0x2497   :  { %5491 = vrot.lane.b32.xlu0 %v7992_v10, %s8261_s5  ;;  %v7994_v18 = vpop.eup %7993 }
0x2498   :  { %v7996_v19 = vpop.eup %7995  ;;  %v5403_v20 = vadd.f32 1.0, %v7994_v18 }
0x2499   :  { %v5482_v51 = vadd.f32 1.0, %v7996_v19 }
0x249a   :  { %7997 = vrcp.f32 %v5403_v20 }
0x249b   :  { %7999 = vrcp.f32 %v5482_v51 }
0x24a4   :  { %v7998_v21 = vpop.eup %7997 }
0x24a5   :  { %v8000_v24 = vpop.eup %7999  ;;  %v5410_v29 = vmul.f32 %v7998_v21, %v5408_v27 }
0x24a6   :  { %v5489_v32 = vmul.f32 %v8000_v24, %v5487_v30 }
0x2506   :  { %v5413_v22 = vpop.permute.xlu1 %5412 }
0x2507   :  { %v5415_v23 = vmul.f32 %v7998_v21, %v5413_v22 }
0x2509   :  { %5417 = vrot.lane.b32.xlu1 %v5415_v23, %s8251_s7  ;;  %v5492_v25 = vpop.permute.xlu0 %5491 }
0x250a   :  { %v5494_v26 = vmul.f32 %v8000_v24, %v5492_v25 }
0x250c   :  { %5496 = vrot.lane.b32.xlu0 %v5494_v26, %s8251_s7 }
0x257b   :  { %v5418_v31 = vpop.permute.xlu1 %5417 }
0x257c   :  { %v10062_v36 = vadd.f32 %v5418_v31, %v5410_v29 }
0x257e   :  { %8001 = vtanh.f32 %v10062_v36  ;;  %v5497_v41 = vpop.permute.xlu0 %5496  ;;  %v5568_v57 = vrot.slane %v10062_v36, 6 }
0x257f   :  { %v10065_v37 = vadd.f32 %v5497_v41, %v5489_v32 }
0x2581   :  { %8003 = vtanh.f32 %v10065_v37  ;;  %v5648_v18 = vrot.slane %v10065_v37, 2 }
0x2588   :  { %v8002_v39 = vpop.eup %8001 }
0x2589   :  { %5423 = vrot.lane.b32.xlu1 %v8002_v39, %s8261_s5 }
0x258b   :  { %v8004_v28 = vpop.eup %8003 }
0x258c   :  { %5502 = vrot.lane.b32.xlu0 %v8004_v28, %s8261_s5  ;;  %v8057_v28 = vld [vmem:[#allocation7] ss:$8 sps:$4 sm:$0xff]  }
0x25fb   :  { %v5424_v44 = vpop.permute.xlu1 %5423 }
0x25fc   :  { %v5426_v5 = vmul.f32 %v7998_v21, %v5424_v44 }
0x25fe   :  { %v10071_v58 = vadd.f32 %v5426_v5, %v10035_v33  ;;  %v5509_v62 = vpack.c.bf16 %v5426_v5, %v5426_v5  ;;  %v5503_v56 = vpop.permute.xlu0 %5502  ;;  %v8058_v5 = vld [vmem:[#allocation7 + $0x10] ss:$8 sps:$4 sm:$0xff]  }
0x25ff   :  { %v5505_v15 = vmul.f32 %v8000_v24, %v5503_v56 }
0x2600   :  { %5511 = vrot.lane.b32.xlu0 %v5509_v62, %s8251_s7  ;;  %v8060_v62 = vld [vmem:[#allocation7 + $0x14] ss:$8 sps:$4 sm:$0xff]  }
0x2601   :  { %v10075_v14 = vadd.f32 %v5505_v15, %v10040_v59  ;;  %v5588_v17 = vpack.c.bf16 %v5505_v15, %v5505_v15 }
0x2603   :  { %v5590_v2 = vrot.slane %v5588_v17, 3  ;;  %v5675_v17 = vld [vmem:[#allocation2 + $0x10] sm:$0x30] }
0x2605   :  { %5591 = vrot.lane.b32.xlu1 %v5590_v2, %s8251_s7 }
0x2672   :  { %v5512_v53 = vpop.permute.xlu0 %5511 }
0x2673   :  { %7340 = vmatmul.mubr.msk.bf16.vlgmr.msra.gmra.mrb[72].mxu0 %vm3134_vm1, %v5512_v53 }
0x2674   :  { %7352 = vmatpush3.bf16.msra.mxu0 %v9838_v34  ;;  %7355 = vmatprep.mubr.msk.bf16.mxu0 %vm8260_vm0, %v8258_v49 }
0x2675   :  { %7353 = vmatprep.subr.bf16.mxu0 %v8258_v49 }
0x2677   :  { %v5592_v47 = vpop.permute.xlu1 %5591 }
0x2678   :  { %7348 = vmatmul.mubr.msk.bf16.vlgmr.msra.gmra.mrb[104].mxu1 %vm3134_vm1, %v5592_v47  ;;  %7354 = vmatpush3.bf16.msra.mxu0 %v9845_v46 }
0x2679   :  { %7360 = vmatpush3.bf16.msra.mxu1 %v9859_v60  ;;  %7363 = vmatprep.mubr.msk.bf16.mxu1 %vm8260_vm0, %v8258_v49 }
0x267a   :  { %7361 = vmatprep.subr.bf16.mxu1 %v8258_v49  ;;  %7367 = vmatprep.subr.bf16.mxu0 %v8258_v49 }
0x267d   :  { %7362 = vmatpush3.bf16.msra.mxu1 %v9866_v38 }
0x267e   :  { %7375 = vmatprep.subr.bf16.mxu1 %v8258_v49 }
0x2746   :  { %v5550_v34 = vpop.f32.mrb[72].mxu0 }
0x2747   :  { %v5557_v43 = vrot.slane %v5550_v34, 6  ;;  %v7341_v42 = vpop.f32.mrb[73].mxu0 }
0x2748   :  { %v5553_v35 = vpop.f32.mrb[74].mxu0 }
0x2749   :  { %v5559_v54 = vadd.f32 %v5557_v43, %v5508_v40  ;;  %v7342_v46 = vpop.f32.mrb[75].mxu0  ;;  %v5755_v40 = vld [vmem:[#allocation2 + $0x8] sm:$0xc] }
0x274b   :  { %8005 = vtanh.f32 %v5559_v54  ;;  %v5630_v60 = vpop.f32.mrb[104].mxu1  ;;  %v6637_v0 = vmul.f32 -1.442695, %v5559_v54 }
0x274c   :  { %v5637_v33 = vrot.slane %v5630_v60, 4  ;;  %v7349_v50 = vpop.f32.mrb[105].mxu1 }
0x274d   :  { %v5633_v59 = vpop.f32.mrb[106].mxu1 }
0x274e   :  { %v5639_v52 = vadd.f32 %v5637_v33, %v5587_v48  ;;  %v7350_v61 = vpop.f32.mrb[107].mxu1 }
0x2750   :  { %8007 = vtanh.f32 %v5639_v52  ;;  %v6639_v1 = vmul.f32 -1.442695, %v5639_v52 }
0x2751   :  { %8009 = vpow2.f32 %v6637_v0 }
0x2752   :  { %8011 = vpow2.f32 %v6639_v1 }
0x2755   :  { %v8006_v45 = vpop.eup %8005 }
0x2756   :  { %5572 = vrot.lane.b32.xlu0 %v8006_v45, %s8261_s5 }
0x275a   :  { %v8008_v38 = vpop.eup %8007 }
0x275b   :  { %5652 = vrot.lane.b32.xlu1 %v8008_v38, %s8261_s5  ;;  %v8010_v3 = vpop.eup %8009 }
0x275c   :  { %v5563_v4 = vadd.f32 1.0, %v8010_v3  ;;  %v8012_v63 = vpop.eup %8011 }
0x275d   :  { %v5643_v6 = vadd.f32 1.0, %v8012_v63 }
0x275e   :  { %8013 = vrcp.f32 %v5563_v4 }
0x275f   :  { %8015 = vrcp.f32 %v5643_v6 }
0x2768   :  { %v8014_v11 = vpop.eup %8013 }
0x2769   :  { %v8016_v7 = vpop.eup %8015  ;;  %v5570_v10 = vmul.f32 %v8014_v11, %v5568_v57 }
0x276a   :  { %v5650_v19 = vmul.f32 %v8016_v7, %v5648_v18 }
0x27c8   :  { %v5573_v55 = vpop.permute.xlu0 %5572 }
0x27c9   :  { %v5575_v16 = vmul.f32 %v8014_v11, %v5573_v55 }
0x27cb   :  { %5577 = vrot.lane.b32.xlu0 %v5575_v16, %s8251_s7 }
0x27cd   :  { %v5653_v8 = vpop.permute.xlu1 %5652 }
0x27ce   :  { %v5655_v9 = vmul.f32 %v8016_v7, %v5653_v8 }
0x27d0   :  { %5657 = vrot.lane.b32.xlu1 %v5655_v9, %s8251_s7 }
0x283d   :  { %v5578_v12 = vpop.permute.xlu0 %5577 }
0x283e   :  { %v10097_v13 = vadd.f32 %v5578_v12, %v5570_v10 }
0x2840   :  { %8017 = vtanh.f32 %v10097_v13  ;;  %v5736_v6 = vrot.slane %v10097_v13, 6 }
0x2842   :  { %v5658_v20 = vpop.permute.xlu1 %5657 }
0x2843   :  { %v10101_v51 = vadd.f32 %v5658_v20, %v5650_v19 }
0x2845   :  { %8019 = vtanh.f32 %v10101_v51 }
0x284a   :  { %v8018_v21 = vpop.eup %8017 }
0x284b   :  { %5583 = vrot.lane.b32.xlu0 %v8018_v21, %s8261_s5 }
0x284f   :  { %v8020_v22 = vpop.eup %8019 }
0x2850   :  { %5663 = vrot.lane.b32.xlu1 %v8020_v22, %s8261_s5 }
0x28bd   :  { %v5584_v23 = vpop.permute.xlu0 %5583 }
0x28be   :  { %v5586_v24 = vmul.f32 %v8014_v11, %v5584_v23 }
0x28c0   :  { %v5668_v25 = vrot.slane %v5586_v24, 2  ;;  %v5676_v26 = vpack.c.bf16 %v5586_v24, %v5586_v24 }
0x28c2   :  { %v10107_v27 = vadd.f32 %v5668_v25, %v10071_v58  ;;  %v5678_v29 = vrot.slane %v5676_v26, 1  ;;  %v5664_v30 = vpop.permute.xlu1 %5663  ;;  %v8059_v58 = vld [vmem:[#allocation7 + $0x4] ss:$8 sps:$4 sm:$0xff]  }
0x28c3   :  { %v5666_v31 = vmul.f32 %v8016_v7, %v5664_v30  ;;  %v5816_v7 = vrot.slane %v10101_v51, 2 }
0x28c4   :  { %5679 = vrot.lane.b32.xlu0 %v5678_v29, %s8251_s7 }
0x28c5   :  { %v5672_v36 = vrot.slane %v5666_v31, 6  ;;  %v5756_v32 = vpack.c.bf16 %v5666_v31, %v5666_v31 }
0x28c7   :  { %v10111_v41 = vadd.f32 %v5672_v36, %v10075_v14  ;;  %v5758_v37 = vrot.slane %v5756_v32, 2 }
0x28c9   :  { %5759 = vrot.lane.b32.xlu1 %v5758_v37, %s8251_s7 }
0x2936   :  { %v5680_v39 = vpop.permute.xlu0 %5679 }
0x2937   :  { %7356 = vmatmul.mubr.msk.bf16.vlgmr.msra.gmra.mrb[76].mxu0 %vm3134_vm1, %v5680_v39 }
0x2938   :  { %7368 = vmatpush3.bf16.msra.mxu0 %v8057_v28  ;;  %7371 = vmatprep.mubr.msk.bf16.mxu0 %vm8260_vm0, %v8258_v49 }
0x2939   :  { %7369 = vmatprep.subr.bf16.mxu0 %v8258_v49 }
0x293b   :  { %v5760_v44 = vpop.permute.xlu1 %5759 }
0x293c   :  { %7364 = vmatmul.mubr.msk.bf16.vlgmr.msra.gmra.mrb[108].mxu1 %vm3134_vm1, %v5760_v44  ;;  %7370 = vmatpush3.bf16.msra.mxu0 %v8058_v5  ;;  %v5923_v44 = vld [vmem:[#allocation2 + $0x8] sm:$0x3] }
0x293d   :  { %7376 = vmatpush3.bf16.msra.mxu1 %v8059_v58  ;;  %7379 = vmatprep.mubr.msk.bf16.mxu1 %vm8260_vm0, %v8258_v49 }
0x293e   :  { %7377 = vmatprep.subr.bf16.mxu1 %v8258_v49 }
0x2941   :  { %7378 = vmatpush3.bf16.msra.mxu1 %v8060_v62 }
0x2a0a   :  { %v5718_v56 = vpop.f32.mrb[76].mxu0 }
0x2a0b   :  { %v5725_v15 = vrot.slane %v5718_v56, 4  ;;  %v7357_v14 = vpop.f32.mrb[77].mxu0 }
0x2a0c   :  { %v5721_v2 = vpop.f32.mrb[78].mxu0 }
0x2a0d   :  { %v5727_v53 = vadd.f32 %v5725_v15, %v5675_v17  ;;  %v7358_v47 = vpop.f32.mrb[79].mxu0 }
0x2a0f   :  { %8021 = vtanh.f32 %v5727_v53  ;;  %v5798_v34 = vpop.f32.mrb[108].mxu1  ;;  %v6641_v50 = vmul.f32 -1.442695, %v5727_v53 }
0x2a10   :  { %v5805_v43 = vrot.slane %v5798_v34, 6  ;;  %v7365_v42 = vpop.f32.mrb[109].mxu1 }
0x2a11   :  { %v5801_v35 = vpop.f32.mrb[110].mxu1 }
0x2a12   :  { %v5807_v54 = vadd.f32 %v5805_v43, %v5755_v40  ;;  %v7366_v46 = vpop.f32.mrb[111].mxu1 }
0x2a14   :  { %8023 = vtanh.f32 %v5807_v54  ;;  %v6643_v48 = vmul.f32 -1.442695, %v5807_v54 }
0x2a15   :  { %8025 = vpow2.f32 %v6641_v50 }
0x2a16   :  { %8027 = vpow2.f32 %v6643_v48 }
0x2a19   :  { %v8022_v60 = vpop.eup %8021 }
0x2a1a   :  { %5740 = vrot.lane.b32.xlu0 %v8022_v60, %s8261_s5 }
0x2a1e   :  { %v8024_v33 = vpop.eup %8023 }
0x2a1f   :  { %5820 = vrot.lane.b32.xlu1 %v8024_v33, %s8261_s5  ;;  %v8026_v59 = vpop.eup %8025 }
0x2a20   :  { %v5731_v52 = vadd.f32 1.0, %v8026_v59  ;;  %v8028_v61 = vpop.eup %8027 }
0x2a21   :  { %v5811_v45 = vadd.f32 1.0, %v8028_v61 }
0x2a22   :  { %8029 = vrcp.f32 %v5731_v52 }
0x2a23   :  { %8031 = vrcp.f32 %v5811_v45 }
0x2a2c   :  { %v8030_v38 = vpop.eup %8029 }
0x2a2d   :  { %v8032_v3 = vpop.eup %8031  ;;  %v5738_v11 = vmul.f32 %v8030_v38, %v5736_v6  ;;  %v8262_v6 = vmov 0.0|0.0  }
0x2a2e   :  { %v5818_v8 = vmul.f32 %v8032_v3, %v5816_v7  ;;  %7446 = vmatprep.subr.bf16.mxu1 %v8262_v6  ;;  %7440 = vmatprep.subr.bf16.mxu0 %v8262_v6  ;;  %v6013_v7 = vld [vmem:[#allocation12 + $0x18] sm:$0xff] }
0x2a8c   :  { %v5741_v0 = vpop.permute.xlu0 %5740 }
0x2a8d   :  { %v5743_v1 = vmul.f32 %v8030_v38, %v5741_v0 }
0x2a8f   :  { %5745 = vrot.lane.b32.xlu0 %v5743_v1, %s8251_s7 }
0x2a91   :  { %v5821_v4 = vpop.permute.xlu1 %5820 }
0x2a92   :  { %v5823_v63 = vmul.f32 %v8032_v3, %v5821_v4  ;;  %v6011_v4 = vld [vmem:[#allocation12 + $0x8] sm:$0xff] }
0x2a94   :  { %5825 = vrot.lane.b32.xlu1 %v5823_v63, %s8251_s7  ;;  %v6014_v63 = vld [vmem:[#allocation12 + $0x20] sm:$0xff] }
0x2b01   :  { %v5746_v55 = vpop.permute.xlu0 %5745 }
0x2b02   :  { %v10127_v16 = vadd.f32 %v5746_v55, %v5738_v11  ;;  %v6015_v55 = vld [vmem:[#allocation12 + $0x28] sm:$0xff] }
0x2b04   :  { %8033 = vtanh.f32 %v10127_v16  ;;  %v5904_v50 = vrot.slane %v10127_v16, 6  ;;  %v6012_v16 = vld [vmem:[#allocation12 + $0x10] sm:$0xff] }
0x2b06   :  { %v5826_v9 = vpop.permute.xlu1 %5825 }
0x2b07   :  { %v10131_v57 = vadd.f32 %v5826_v9, %v5818_v8  ;;  %v7441_v9 = vpack.c.bf16 %v6015_v55, %v6014_v63 }
0x2b09   :  { %8035 = vtanh.f32 %v10131_v57  ;;  %v5981_v59 = vrot.slane %v10131_v57, 2  ;;  %v7450_v57 = vpack.c.bf16 %v6013_v7, %v6012_v16 }
0x2b0e   :  { %v8034_v10 = vpop.eup %8033 }
0x2b0f   :  { %5751 = vrot.lane.b32.xlu0 %v8034_v10, %s8261_s5  ;;  %v6016_v10 = vld [vmem:[#allocation12 + $0x30] sm:$0xff] }
0x2b13   :  { %v8036_v12 = vpop.eup %8035 }
0x2b14   :  { %5831 = vrot.lane.b32.xlu1 %v8036_v12, %s8261_s5  ;;  %v6017_v12 = vld [vmem:[#allocation12 + $0x38] sm:$0xff] }
0x2b81   :  { %v5752_v13 = vpop.permute.xlu0 %5751 }
0x2b82   :  { %v5754_v18 = vmul.f32 %v8030_v38, %v5752_v13  ;;  %v7444_v13 = vpack.c.bf16 %v6017_v12, %v6016_v10 }
0x2b84   :  { %v5836_v19 = vrot.slane %v5754_v18, 4  ;;  %v5844_v20 = vpack.c.bf16 %v5754_v18, %v5754_v18 }
0x2b86   :  { %v10137_v51 = vadd.f32 %v5836_v19, %v10107_v27  ;;  %v5846_v21 = vrot.slane %v5844_v20, 2  ;;  %v5832_v22 = vpop.permute.xlu1 %5831 }
0x2b87   :  { %v5834_v23 = vmul.f32 %v8032_v3, %v5832_v22  ;;  %v6010_v3 = vld [vmem:[#allocation12] sm:$0xff] }
0x2b88   :  { %5847 = vrot.lane.b32.xlu0 %v5846_v21, %s8251_s7  ;;  %v7447_v11 = vpack.c.bf16 %v6011_v4, %v6010_v3 }
0x2b89   :  { %v5840_v24 = vrot.slane %v5834_v23, 4  ;;  %v5924_v25 = vpack.c.bf16 %v5834_v23, %v5834_v23 }
0x2b8b   :  { %v10141_v26 = vadd.f32 %v5840_v24, %v10111_v41  ;;  %v5926_v29 = vrot.slane %v5924_v25, 1  ;;  %v5843_v41 = vld [vmem:[#allocation2 + $0x10] sm:$0xc0] }
0x2b8d   :  { %5927 = vrot.lane.b32.xlu1 %v5926_v29, %s8251_s7 }
0x2bfa   :  { %v5848_v30 = vpop.permute.xlu0 %5847 }
0x2bfb   :  { %7372 = vmatmul.mubr.msk.bf16.vlgmr.msra.gmra.mrb[80].mxu0 %vm3134_vm1, %v5848_v30 }
0x2bfc   :  { %7391 = vmatprep.mubr.msk.f32.mxu0 %vm8260_vm0, %v8258_v49  ;;  %7442 = vmatpush3.bf16.msra.mxu0 %v7441_v9 }
0x2bfd   :  { %7443 = vmatprep.subr.bf16.mxu0 %v8262_v6 }
0x2bff   :  { %v5928_v27 = vpop.permute.xlu1 %5927 }
0x2c00   :  { %7380 = vmatmul.mubr.msk.bf16.vlgmr.msra.gmra.mrb[112].mxu1 %vm3134_vm1, %v5928_v27  ;;  %7445 = vmatpush3.bf16.msra.mxu0 %v7444_v13 }
0x2c01   :  { %7402 = vmatprep.mubr.msk.f32.mxu1 %vm8260_vm0, %v8258_v49  ;;  %7448 = vmatpush3.bf16.msra.mxu1 %v7447_v11 }
0x2c02   :  { %7449 = vmatprep.subr.bf16.mxu1 %v8262_v6  ;;  %7452 = vmatprep.subr.bf16.mxu0 %v8262_v6 }
0x2c05   :  { %7451 = vmatpush3.bf16.msra.mxu1 %v7450_v57 }
0x2cce   :  { %v5886_v31 = vpop.f32.mrb[80].mxu0 }
0x2ccf   :  { %v5893_v36 = vrot.slane %v5886_v31, 2  ;;  %v7373_v32 = vpop.f32.mrb[81].mxu0 }
0x2cd0   :  { %v5889_v37 = vpop.f32.mrb[82].mxu0  ;;  %v6178_v32 = vld [vmem:[%s10251_s13 + $0x8] sm:$0xff] }
0x2cd1   :  { %v5895_v39 = vadd.f32 %v5893_v36, %v5843_v41  ;;  %v7374_v28 = vpop.f32.mrb[83].mxu0  ;;  %v6177_v36 = vld [vmem:[%s10251_s13] sm:$0xff]  ;;  %v6180_v41 = vld [vmem:[%s10251_s13 + $0x18] sm:$0xff] }
0x2cd2   :  { %v6181_v28 = vld [vmem:[%s10251_s13 + $0x20] sm:$0xff] }
0x2cd3   :  { %8037 = vtanh.f32 %v5895_v39  ;;  %v5966_v5 = vpop.f32.mrb[112].mxu1  ;;  %v6645_v2 = vmul.f32 -1.442695, %v5895_v39 }
0x2cd4   :  { %v5972_v58 = vadd.f32 %v5966_v5, %v5923_v44  ;;  %v7381_v62 = vpop.f32.mrb[113].mxu1  ;;  %v6182_v44 = vld [vmem:[%s10251_s13 + $0x28] sm:$0xff] }
0x2cd5   :  { %v5969_v56 = vpop.f32.mrb[114].mxu1  ;;  %v7459_v5 = vpack.c.bf16 %v6182_v44, %v6181_v28 }
0x2cd6   :  { %8039 = vtanh.f32 %v5972_v58  ;;  %v7382_v15 = vpop.f32.mrb[115].mxu1  ;;  %v6647_v53 = vmul.f32 -1.442695, %v5972_v58  ;;  %v6183_v58 = vld [vmem:[%s10251_s13 + $0x30] sm:$0xff]  ;;  %v6185_v56 = vld [vmem:[%s10251_s13 + $0x40] sm:$0xff] }
0x2cd7   :  { %8041 = vpow2.f32 %v6645_v2  ;;  %v6186_v15 = vld [vmem:[%s10251_s13 + $0x48] sm:$0xff]  ;;  %v6188_v2 = vld [vmem:[%s10251_s13 + $0x58] sm:$0xff] }
0x2cd8   :  { %8043 = vpow2.f32 %v6647_v53 }
0x2cdd   :  { %v8038_v14 = vpop.eup %8037 }
0x2cde   :  { %5908 = vrot.lane.b32.xlu1 %v8038_v14, %s8261_s5  ;;  %v7465_v14 = vpack.c.bf16 %v6186_v15, %v6185_v56 }
0x2ce0   :  { %v8040_v17 = vpop.eup %8039 }
0x2ce1   :  { %5985 = vrot.lane.b32.xlu0 %v8040_v17, %s8261_s5  ;;  %v8042_v47 = vpop.eup %8041  ;;  %v6187_v17 = vld [vmem:[%s10251_s13 + $0x50] sm:$0xff] }
0x2ce2   :  { %v8044_v34 = vpop.eup %8043  ;;  %v5899_v43 = vadd.f32 1.0, %v8042_v47  ;;  %v7468_v53 = vpack.c.bf16 %v6188_v2, %v6187_v17  ;;  %v6189_v47 = vld [vmem:[%s10251_s13 + $0x60] sm:$0xff] }
0x2ce3   :  { %v5976_v42 = vadd.f32 1.0, %v8044_v34  ;;  %v6190_v34 = vld [vmem:[%s10251_s13 + $0x68] sm:$0xff] }
0x2ce4   :  { %8045 = vrcp.f32 %v5899_v43  ;;  %v7471_v43 = vpack.c.bf16 %v6190_v34, %v6189_v47 }
0x2ce5   :  { %8047 = vrcp.f32 %v5976_v42  ;;  %v6191_v42 = vld [vmem:[%s10251_s13 + $0x70] sm:$0xff] }
0x2cee   :  { %v8046_v40 = vpop.eup %8045 }
0x2cef   :  { %v8048_v46 = vpop.eup %8047  ;;  %v5906_v48 = vmul.f32 %v8046_v40, %v5904_v50 }
0x2cf0   :  { %v5983_v45 = vmul.f32 %v8048_v46, %v5981_v59 }
0x2d50   :  { %v5909_v35 = vpop.permute.xlu1 %5908 }
0x2d51   :  { %v5911_v54 = vmul.f32 %v8046_v40, %v5909_v35 }
0x2d53   :  { %5913 = vrot.lane.b32.xlu1 %v5911_v54, %s8251_s7  ;;  %v5986_v60 = vpop.permute.xlu0 %5985 }
0x2d54   :  { %v5988_v33 = vmul.f32 %v8048_v46, %v5986_v60 }
0x2d56   :  { %5990 = vrot.lane.b32.xlu0 %v5988_v33, %s8251_s7  ;;  %v6650_v33 = vld [vmem:[#allocation13] ss:$0 sm:$0xff] }
0x2dc5   :  { %v5914_v52 = vpop.permute.xlu1 %5913 }
0x2dc6   :  { %v5916_v61 = vadd.f32 %v5914_v52, %v5906_v48  ;;  %v6651_v52 = vld [vmem:[#allocation15] ss:$0 sm:$0xff] }
0x2dc8   :  { %8049 = vtanh.f32 %v5916_v61  ;;  %v5991_v38 = vpop.permute.xlu0 %5990 }
0x2dc9   :  { %v5993_v0 = vadd.f32 %v5991_v38, %v5983_v45 }
0x2dcb   :  { %8051 = vtanh.f32 %v5993_v0 }
0x2dd2   :  { %v8050_v1 = vpop.eup %8049 }
0x2dd3   :  { %5919 = vrot.lane.b32.xlu1 %v8050_v1, %s8261_s5 }
0x2dd5   :  { %v8052_v8 = vpop.eup %8051 }
0x2dd6   :  { %5996 = vrot.lane.b32.xlu0 %v8052_v8, %s8261_s5 }
0x2e45   :  { %v5920_v18 = vpop.permute.xlu1 %5919 }
0x2e46   :  { %v5922_v19 = vmul.f32 %v8046_v40, %v5920_v18  ;;  %v6192_v40 = vld [vmem:[%s10251_s13 + $0x78] sm:$0xff] }
0x2e47   :  { %v7474_v35 = vpack.c.bf16 %v6192_v40, %v6191_v42 }
0x2e48   :  { %v6001_v20 = vrot.slane %v5922_v19, 6  ;;  %v5997_v21 = vpop.permute.xlu0 %5996 }
0x2e49   :  { %v5999_v22 = vmul.f32 %v8048_v46, %v5997_v21 }
0x2e4a   :  { %v6003_v23 = vadd.f32 %v6001_v20, %v10137_v51  ;;  %v7453_v51 = vpack.c.bf16 %v6178_v32, %v6177_v36 }
0x2e4b   :  { %v6005_v24 = vrot.slane %v5999_v22, 2 }
0x2e4c   :  { %v6008_v25 = vmul.f32 0.125, %v6003_v23 }
0x2e4d   :  { %v6007_v29 = vadd.f32 %v6005_v24, %v10141_v26  ;;  %v6179_v26 = vld [vmem:[%s10251_s13 + $0x10] sm:$0xff] }
0x2e4e   :  { %6095 = vrot.lane.b32.xlu1 %v6008_v25, %s8251_s7  ;;  %v7456_v39 = vpack.c.bf16 %v6180_v41, %v6179_v26 }
0x2e4f   :  { %v6009_v30 = vmul.f32 0.125, %v6007_v29 }
0x2e51   :  { %v6019_v27 = vrot.slane %v6009_v30, 6 }
0x2e53   :  { %6020 = vrot.lane.b32.xlu0 %v6019_v27, %s8251_s7 }
0x2ec0   :  { %v6096_v31 = vpop.permute.xlu1 %6095 }
0x2ec1   :  { %7403 = vmatmul.mubr.msk.f32.vlgmr.msra.gmra.mrb[116].mxu1 %vm3134_vm1, %v6096_v31 }
0x2ec5   :  { %v6021_v37 = vpop.permute.xlu0 %6020 }
0x2ec6   :  { %7392 = vmatmul.mubr.msk.f32.vlgmr.msra.gmra.mrb[84].mxu0 %vm3134_vm1, %v6021_v37 }
0x2ec7   :  { %7454 = vmatpush3.bf16.msra.mxu0 %v7453_v51  ;;  %7437 = vmatprep.mubr.msk.f32.mxu0 %vm8260_vm0, %v8258_v49  ;;  %v6184_v49 = vld [vmem:[%s10251_s13 + $0x38] sm:$0xff]  ;;  %s8215_s13 = scalar_lea.vmem %s6279_s12, 32 }
0x2ec8   :  { %7455 = vmatprep.subr.bf16.mxu0 %v8262_v6  ;;  %v7462_v62 = vpack.c.bf16 %v6184_v49, %v6183_v58  ;;  %p8216_p0 = scmp.ne.s32.totalorder %s6279_s12, %s8215_s13  ;;  %p8221_p2 = scmp.lt.s32.totalorder %s8215_s13, %s8215_s13 }
0x2eca   :  { %p8222_p3 = por %p8221_p2, %p8220_p1 }
0x2ecb   :  { %7457 = vmatpush3.bf16.msra.mxu0 %v7456_v39 }
0x2ecc   :  { %7458 = vmatprep.subr.bf16.mxu0 %v8262_v6  ;;  %p8223_p4 = pnand %p8222_p3, %p8216_p0 }
0x2ecf   :  { %7460 = vmatpush3.bf16.msra.mxu0 %v7459_v5 }
0x2ed0   :  { %7461 = vmatprep.subr.bf16.mxu0 %v8262_v6 }
0x2ed3   :  { %7463 = vmatpush3.bf16.msra.mxu0 %v7462_v62 }
0x2ed4   :  { %7464 = vmatprep.subr.bf16.mxu0 %v8262_v6 }
0x2ed7   :  { %7466 = vmatpush3.bf16.msra.mxu0 %v7465_v14 }
0x2ed8   :  { %7467 = vmatprep.subr.bf16.mxu0 %v8262_v6 }
0x2edb   :  { %7469 = vmatpush3.bf16.msra.mxu0 %v7468_v53 }
0x2edc   :  { %7470 = vmatprep.subr.bf16.mxu0 %v8262_v6 }
0x2edf   :  { %7472 = vmatpush3.bf16.msra.mxu0 %v7471_v43 }
0x2ee0   :  { %7473 = vmatprep.subr.bf16.mxu0 %v8262_v6 }
0x2ee3   :  { %7475 = vmatpush3.bf16.msra.mxu0 %v7474_v35 }
0x2f94   :  { %v6165_v54 = vpop.f32.mrb[116].mxu1 }
0x2f95   :  { %v7404_v46 = vpop.f32.mrb[117].mxu1 }
0x2f99   :  { %v6090_v60 = vpop.f32.mrb[84].mxu0 }
0x2f9a   :  { %v6166_v50 = vadd.f32 %v6165_v54, %v6090_v60  ;;  %v7393_v48 = vpop.f32.mrb[85].mxu0 }
0x2f9c   :  { %v6176_v59 = vadd.f32 %v6650_v33, %v6166_v50 }
0x2f9e   :  { %7438 = vmatmul.mubr.f32.vlgmr.msra.gmra.mrb[86].mxu0 %v6176_v59 }
0x3071   :  { %v6266_v61 = vpop.f32.mrb[86].mxu0 }
0x3072   :  { %v6267_v45 = vadd.f32 %v6651_v52, %v6266_v61  ;;  %v7439_v38 = vpop.f32.mrb[87].mxu0 }
0x3074   :  { %6271 = vst.msk [vmem:[#allocation16] sm:$0x3] %vm6270_vm6, %v6267_v45 }
0x3075   :  { %8226 = shalt.err (!%p8223_p4)
}
0x3076   :  { %s8227_s3 = scalar_lea.hbm %s10253_s15, 32 }
0x3077   :  { %p8228_p5 = scmp.ne.s32.totalorder %s10253_s15, %s8227_s3  ;;  %p8231_p6 = scmp.lt.u32.totalorder %s8227_s3, %s10253_s15 }
0x3079   :  { %p8233_p7 = pnand %p8231_p6, %p8228_p5 }
0x307b   :  { %8236 = shalt.err (!%p8233_p7)
}
0x307c   :  { %6281 = dma.vmem_to_hbm [thread:$0]  %s6279_s12, 32, %s10253_s15, [#allocation6]  }
0x307d   :  { %8245 = dma.done.wait [#allocation6], 32  }
0x307e   :  { %8246 = vsyncadd [#allocation6], 4294967264 }
0x307f   :  { %6285 = vsyncpa [#allocation5], 1 }
0x3080   :  { %6286 = vsyncpa [#allocation8], 1 }
0x3081   :  { %6287 = vsyncpa [#allocation11], 1 }
0x3082   :  { %6288 = vsyncpa [#allocation14], 1 }
0x3083   :  { %6289 = vsyncpa [#allocation6], 1 }

</bundles_post_ra>
